<compile_context>
chip_gen: v6e
topology: v6e:2x2x1
jax: 0.10.0
libtpu: 0.0.40
codegen_flags: <defaults>
</compile_context>

<pallas_src>
import numpy as np
import jax
import jax.numpy as jnp
from jax import lax
from jax.experimental import pallas as pl
from jax.experimental.pallas import tpu as pltpu

# ----------------------------- configuration --------------------------------
NODE_DIM = 8
EDGE_DIM = 4
HIDDEN = 128
OUTPUT_DIM = 256
NUM_LAYERS = 2          # reference default is 6; kept small for the example
HEADS = 4
N_NODES = 16
N_EDGES = 32
EA = N_EDGES + N_NODES  # edges + self loops
EP = 128                # padded edge-slot count (lane-dense)
BATCH = 4

F32 = jnp.float32
BF16 = jnp.bfloat16
NEG_INF = -1e30


# ------------------------------ fused kernel ---------------------------------
def _fused_gnn_kernel(
        x_ref, eattr_ref,
        sdT_ref, ssrc_ref, mask_ref, mean_ref,
        new_ref, neb_ref, eew_ref, eeb_ref, epw_ref, epb_ref,
        seln_ref, sele_ref, wstk_ref, gb_ref, gm_ref, bt_ref,
        lstmw_ref, lstmb_ref,
        w1_ref, b1_ref, w2_ref, b2_ref, w3_ref, b3_ref,
        o_ref):
    n = x_ref.shape[0]
    C = HIDDEN

    # ---- node / edge embeddings + EdgeAttentionLayer (vnf / network ctx = None) ----
    h = jnp.dot(x_ref[...].astype(BF16), new_ref[...],
                preferred_element_type=F32) + neb_ref[...]                        # [N, C]
    eemb = jnp.dot(eattr_ref[...].astype(BF16), eew_ref[...],
                   preferred_element_type=F32) + eeb_ref[...]                     # [E, C]
    # edge_attention == ones -> enhanced_edge_features = edge_proj(edge_emb)
    efeat = jnp.dot(eemb.astype(BF16), epw_ref[...],
                    preferred_element_type=F32) + epb_ref[...]                    # [E, C]

    # GATConv add_self_loops(fill_value='mean'): self-loop edge feature = mean of
    # the node's incoming edge features (mean_ref = one_hot(dst)^T / in_degree).
    loop_feat = jnp.dot(mean_ref[...], efeat.astype(BF16),
                        preferred_element_type=F32)                               # [N, C]
    e_aug = jnp.concatenate(
        [efeat, loop_feat, jnp.zeros((EP - EA, C), F32)], axis=0)                 # [EP, C]

    # Edge-attention logits for ALL layers, head-major, hoisted out of the loop:
    # a_edge_all[l*H + hd, e] = <e_aug[e], esel_hm[l, hd]>
    a_edge_all = lax.dot_general(sele_ref[...], e_aug.astype(BF16),
                                 (((1,), (1,)), ((), ())),
                                 preferred_element_type=F32)                      # [L*H, EP]

    sdT = sdT_ref[...]                     # [2N, EP]  [src^T ; dst^T] incidence (bf16)
    ssrc = ssrc_ref[...]                   # [EP, N]   one-hot(src), padded (bf16)
    mask3 = mask_ref[...][:, None, :]      # [N, 1, EP] additive 0 / -1e30 softmax mask

    # -------- NUM_LAYERS x (GATConv(heads=4, concat=False) + LN + residual + ReLU) --------
    # TODO(synk): for the real num_layers=6 config, switch to lax.fori_loop + pl.ds
    #             slicing of the stacked per-layer weights to bound vreg live ranges.
    for l in range(NUM_LAYERS):
        h_b = h.astype(BF16)

        # attention logits, head-major [H, EP]:
        #   alpha[hd, e] = a_src[src(e), hd] + a_dst[dst(e), hd] + a_edge[e, hd]
        a_nodes = lax.dot_general(seln_ref[l], h_b, (((1,), (1,)), ((), ())),
                                  preferred_element_type=F32)                     # [2H, N]
        a_lane = jnp.concatenate([a_nodes[:HEADS, :], a_nodes[HEADS:, :]], axis=1)  # [H, 2N]
        alpha = (jnp.dot(a_lane.astype(BF16), sdT, preferred_element_type=F32)
                 + a_edge_all[l * HEADS:(l + 1) * HEADS, :])                      # [H, EP]
        alpha = jnp.where(alpha > 0, alpha, 0.2 * alpha)                          # LeakyReLU(0.2)

        # fused masked per-(node, head) softmax over padded edge slots, lane-dense
        lg = (mask3 + alpha[None, :, :]).reshape(n * HEADS, EP)                   # [N*H, EP]
        m = jnp.max(lg, axis=-1, keepdims=True)
        p = jnp.exp(lg - m)
        inv = pl.reciprocal(jnp.sum(p, axis=-1, keepdims=True), approx=True)
        att = (p * inv).astype(BF16)                                              # [N*H, EP]

        # fused aggregation:
        #   out = (1/H) * sum_hd att_hd @ (ssrc @ h) @ Wlin_hd   + bias
        hsrc = jnp.dot(ssrc, h_b, preferred_element_type=F32)                     # [EP, C]
        t = jnp.dot(att, hsrc.astype(BF16), preferred_element_type=F32)           # [N*H, C]
        t = t.reshape(n, HEADS, C).reshape(n, HEADS * C)                          # [N, H*C]
        out = jnp.dot(t.astype(BF16), wstk_ref[l],
                      preferred_element_type=F32) + gb_ref[l]                     # [N, C]

        # LayerNorm(eps=1e-5) + residual + ReLU (outer loop body of the reference)
        mu = jnp.mean(out, axis=-1, keepdims=True)
        var = jnp.mean((out - mu) ** 2, axis=-1, keepdims=True)
        y = (out - mu) * lax.rsqrt(var + 1e-5) * gm_ref[l] + bt_ref[l]
        h = jnp.maximum(y + h, 0.0)

    # ------------------------ Set2Set(hidden, processing_steps=3) -------------------------
    lstm_w = lstmw_ref[...]                 # [3C, 4C]   [W_ih ; W_hh] merged (bf16)
    lstm_b = lstmb_ref[...]                 # [1, 4C]    b_ih + b_hh
    q_star = jnp.zeros((1, 2 * C), F32)
    hh = jnp.zeros((1, C), F32)
    cc = jnp.zeros((1, C), F32)
    for _ in range(3):
        inp = jnp.concatenate([q_star, hh], axis=1).astype(BF16)                  # [1, 3C]
        gates = jnp.dot(inp, lstm_w, preferred_element_type=F32) + lstm_b         # [1, 4C]
        i_g = jax.nn.sigmoid(gates[:, 0:C])
        f_g = jax.nn.sigmoid(gates[:, C:2 * C])
        g_g = jnp.tanh(gates[:, 2 * C:3 * C])
        o_g = jax.nn.sigmoid(gates[:, 3 * C:4 * C])
        cc = f_g * cc + i_g * g_g
        hh = o_g * jnp.tanh(cc)
        q = hh                                                                    # [1, C]
        # attention logits on the MXU (trans-B), row layout -> lane reductions
        e = lax.dot_general(q, h, (((1,), (1,)), ((), ())),
                            preferred_element_type=F32)                           # [1, N]
        e = e - jnp.max(e, axis=-1, keepdims=True)
        ex = jnp.exp(e)
        a_row = ex * pl.reciprocal(jnp.sum(ex, axis=-1, keepdims=True), approx=True)
        r = jnp.dot(a_row, h, preferred_element_type=F32)                         # [1, C]
        q_star = jnp.concatenate([q, r], axis=-1)                                 # [1, 2C]

    # ------------- vnf_context=None -> zero context; output_net + L2 normalize ------------
    comb = jnp.concatenate([q_star, jnp.zeros((1, C), F32)], axis=-1).astype(BF16)  # [1, 3C]
    y = jnp.maximum(jnp.dot(comb, w1_ref[...],
                            preferred_element_type=F32) + b1_ref[...], 0.0)
    y = jnp.maximum(jnp.dot(y.astype(BF16), w2_ref[...],
                            preferred_element_type=F32) + b2_ref[...], 0.0)       # [1, 128] (pad)
    y = jnp.maximum(jnp.dot(y.astype(BF16), w3_ref[...],
                            preferred_element_type=F32) + b3_ref[...], 0.0)       # [1, 256]
    nrm = jnp.sqrt(jnp.sum(y * y, axis=-1, keepdims=True))
    o_ref[...] = y / jnp.maximum(nrm, 1e-12)


# ----------------------- parameters (attention / heads folded at init) -----------------------
def init_params(key):
    ks = iter(jax.random.split(key, 64))

    def w(shape, scale=0.1):
        return jax.random.normal(next(ks), shape, F32) * scale

    HC = HEADS * HIDDEN
    p = {}
    p["node_emb_w"] = w((NODE_DIM, HIDDEN)).astype(BF16)
    p["node_emb_b"] = w((1, HIDDEN), 0.01)
    p["edge_emb_w"] = w((EDGE_DIM, HIDDEN)).astype(BF16)
    p["edge_emb_b"] = w((1, HIDDEN), 0.01)
    # TODO(synk): reference declares edge_proj = Linear(edge_dim=4, hidden) but feeds it the
    # already-embedded hidden-dim edge features (would raise in PyTorch); realized here as
    # Linear(hidden, hidden) so the declared data flow is runnable.
    p["edge_proj_w"] = w((HIDDEN, HIDDEN)).astype(BF16)
    p["edge_proj_b"] = w((1, HIDDEN), 0.01)

    seln_l, sele_l, wstk_l, gb_l, gm_l, bt_l = [], [], [], [], [], [], 
    for _ in range(NUM_LAYERS):
        wlin = w((HIDDEN, HC), 0.05)        # GATConv.lin      (bias=False)
        wedge = w((HIDDEN, HC), 0.05)       # GATConv.lin_edge (bias=False)
        a_src = w((HEADS, HIDDEN), 0.05)    # GATConv.att_src
        a_dst = w((HEADS, HIDDEN), 0.05)    # GATConv.att_dst
        a_edg = w((HEADS, HIDDEN), 0.05)    # GATConv.att_edge
        wlin_h = wlin.reshape(HIDDEN, HEADS, HIDDEN)     # [Cin, H, Cout]
        wedge_h = wedge.reshape(HIDDEN, HEADS, HIDDEN)
        # fold the per-head attention vectors into the projections (exact, init time):
        #   alpha_src[n, hd] = <h[n], nsrc_hm[hd]>  with  nsrc_hm[hd] = sum_c wlin[:,hd,c] a_src[hd,c]
        nsrc_hm = jnp.einsum('khc,hc->hk', wlin_h, a_src)          # [H, Cin]
        ndst_hm = jnp.einsum('khc,hc->hk', wlin_h, a_dst)          # [H, Cin]
        esel_hm = jnp.einsum('khc,hc->hk', wedge_h, a_edg)         # [H, Cin]
        seln_l.append(jnp.concatenate([nsrc_hm, ndst_hm], axis=0))  # [2H, Cin]
        sele_l.append(esel_hm)
        # head-stacked value projection with the concat=False head mean folded in:
        #   wstk[hd*Cin + k, c] = wlin[k, hd*Cout + c] / HEADS
        wstk_l.append(jnp.transpose(wlin_h, (1, 0, 2)).reshape(HC, HIDDEN) / HEADS)
        gb_l.append(w((1, HIDDEN), 0.01))                # GATConv.bias (concat=False)
        gm_l.append(jnp.ones((1, HIDDEN), F32))          # LayerNorm gamma
        bt_l.append(jnp.zeros((1, HIDDEN), F32))         # LayerNorm beta

    p["selnode_all"] = jnp.stack(seln_l).astype(BF16)          # [L, 2H, C]
    p["seledge_all"] = jnp.concatenate(sele_l, axis=0).astype(BF16)   # [L*H, C]
    p["wstk_all"] = jnp.stack(wstk_l).astype(BF16)             # [L, H*C, C]
    p["gat_bias_all"] = jnp.stack(gb_l)                        # [L, 1, C]
    p["gamma_all"] = jnp.stack(gm_l)
    p["beta_all"] = jnp.stack(bt_l)

    # Set2Set LSTM(2C -> C), torch gate order (i, f, g, o); [W_ih ; W_hh] merged
    w_ih = w((2 * HIDDEN, 4 * HIDDEN), 0.05)
    w_hh = w((HIDDEN, 4 * HIDDEN), 0.05)
    p["lstm_w"] = jnp.concatenate([w_ih, w_hh], axis=0).astype(BF16)   # [3C, 4C]
    p["lstm_b"] = w((1, 4 * HIDDEN), 0.01)                              # b_ih + b_hh combined

    # output head; the hidden//2 = 64 stage is zero-padded to 128 lanes (exact)
    HP = 128
    p["out_w1"] = w((3 * HIDDEN, HIDDEN)).astype(BF16)
    p["out_b1"] = w((1, HIDDEN), 0.01)
    w2 = jnp.zeros((HIDDEN, HP), F32).at[:, :HIDDEN // 2].set(w((HIDDEN, HIDDEN // 2)))
    b2 = jnp.zeros((1, HP), F32).at[:, :HIDDEN // 2].set(w((1, HIDDEN // 2), 0.01))
    w3 = jnp.zeros((HP, OUTPUT_DIM), F32).at[:HIDDEN // 2, :].set(w((HIDDEN // 2, OUTPUT_DIM)))
    p["out_w2"] = w2.astype(BF16)
    p["out_b2"] = b2
    p["out_w3"] = w3.astype(BF16)
    p["out_b3"] = w((1, OUTPUT_DIM), 0.01)
    return p


# ------------------- connectivity-static constants (built once, host) ---------------
def build_graph_constants(edge_index_np, n_nodes):
    src = np.asarray(edge_index_np[0])
    dst = np.asarray(edge_index_np[1])
    E = src.shape[0]
    assert E + n_nodes <= EP
    # one-hot incidence incl. self loops, padded to EP edge slots
    ssrc = np.zeros((EP, n_nodes), np.float32)
    sdst = np.zeros((EP, n_nodes), np.float32)
    ssrc[np.arange(E), src] = 1.0
    sdst[np.arange(E), dst] = 1.0
    ssrc[E + np.arange(n_nodes), np.arange(n_nodes)] = 1.0
    sdst[E + np.arange(n_nodes), np.arange(n_nodes)] = 1.0
    # stacked [src^T ; dst^T] -> per-edge node logits in ONE matmul
    sdT = np.concatenate([ssrc.T, sdst.T], axis=0)                        # [2N, EP]
    # additive segment-softmax mask (0 where dst(e)==n, else -1e30; pad slots -1e30)
    mask_pad = np.where(sdst.T > 0.5, 0.0, NEG_INF).astype(np.float32)    # [N, EP]
    mask_pad[:, E + n_nodes:] = NEG_INF
    # mean of incoming original edge features per node (self-loop fill_value='mean')
    sdstT = sdst[:E].T
    deg = np.maximum(sdstT.sum(axis=1, keepdims=True), 1.0)
    mean_mat = (sdstT / deg).astype(np.float32)                           # [N, E]
    return dict(sdT=jnp.asarray(sdT, dtype=BF16),
                ssrc=jnp.asarray(ssrc, dtype=BF16),
                mask=jnp.asarray(mask_pad),
                mean=jnp.asarray(mean_mat, dtype=BF16))


# ------------------------------------ forward ---------------------------------------
def _resident(a):
    """Full-array VMEM-resident block with a constant index map (weights / consts)."""
    nd = a.ndim

    def idx(b):
        return (0,) * nd

    return pl.BlockSpec(a.shape, idx)


@jax.jit
def forward(params, graph, x, edge_attr):
    B = x.shape[0]
    consts = (
        graph["sdT"], graph["ssrc"], graph["mask"], graph["mean"],
        params["node_emb_w"], params["node_emb_b"],
        params["edge_emb_w"], params["edge_emb_b"],
        params["edge_proj_w"], params["edge_proj_b"],
        params["selnode_all"], params["seledge_all"], params["wstk_all"],
        params["gat_bias_all"], params["gamma_all"], params["beta_all"],
        params["lstm_w"], params["lstm_b"],
        params["out_w1"], params["out_b1"],
        params["out_w2"], params["out_b2"],
        params["out_w3"], params["out_b3"],
    )
    out = pl.pallas_call(
        _fused_gnn_kernel,
        out_shape=jax.ShapeDtypeStruct((B, 1, OUTPUT_DIM), F32),
        grid=(B,),
        in_specs=[pl.BlockSpec((None, N_NODES, NODE_DIM), lambda b: (b, 0, 0)),
                  pl.BlockSpec((None, N_EDGES, EDGE_DIM), lambda b: (b, 0, 0))]
                 + [_resident(a) for a in consts],
        out_specs=pl.BlockSpec((None, 1, OUTPUT_DIM), lambda b: (b, 0, 0)),
        compiler_params=pltpu.CompilerParams(
            dimension_semantics=("parallel",)),                 # 2x on v7x (2 TCs/chip)
    )(x, edge_attr, *consts)
    return out[:, 0, :]


# -------------------------------------- main -----------------------------------------
if __name__ == "__main__":
    key = jax.random.PRNGKey(0)
    kx, ke, kp = jax.random.split(key, 3)

    # batch of graphs sharing a fixed small topology: 16 nodes, 32 directed edges
    x = jax.random.normal(kx, (BATCH, N_NODES, NODE_DIM), F32)        # data.x per graph
    edge_attr = jax.random.normal(ke, (BATCH, N_EDGES, EDGE_DIM), F32)
    src = np.concatenate([np.arange(N_NODES), np.arange(N_NODES)])
    dst = np.concatenate([(np.arange(N_NODES) + 1) % N_NODES,
                          (np.arange(N_NODES) + 3) % N_NODES])
    edge_index = np.stack([src, dst]).astype(np.int32)                # [2, 32]

    graph = build_graph_constants(edge_index, N_NODES)                # hoisted, built once
    params = init_params(kp)

    out = forward(params, graph, x, edge_attr)
    out = jax.block_until_ready(out)

    assert out.shape == (BATCH, OUTPUT_DIM)
    assert bool(jnp.all(jnp.isfinite(out)))
    norms = np.linalg.norm(np.asarray(out), axis=-1)                  # L2-normalized rows
    assert np.allclose(norms, 1.0, atol=2e-3), norms
    print("KERNEL_OK")
</pallas_src>

<mosaic_0001>
module attributes {stable_mosaic.version = 11 : i64} {
  func.func @_fused_gnn_kernel(%arg0: i32, %arg1: memref<1x16x8xf32, #tpu.memory_space<vmem>>, %arg2: memref<1x32x4xf32, #tpu.memory_space<vmem>>, %arg3: memref<32x128xbf16, #tpu.memory_space<vmem>>, %arg4: memref<128x16xbf16, #tpu.memory_space<vmem>>, %arg5: memref<16x128xf32, #tpu.memory_space<vmem>>, %arg6: memref<16x32xbf16, #tpu.memory_space<vmem>>, %arg7: memref<8x128xbf16, #tpu.memory_space<vmem>>, %arg8: memref<1x128xf32, #tpu.memory_space<vmem>>, %arg9: memref<4x128xbf16, #tpu.memory_space<vmem>>, %arg10: memref<1x128xf32, #tpu.memory_space<vmem>>, %arg11: memref<128x128xbf16, #tpu.memory_space<vmem>>, %arg12: memref<1x128xf32, #tpu.memory_space<vmem>>, %arg13: memref<2x8x128xbf16, #tpu.memory_space<vmem>>, %arg14: memref<8x128xbf16, #tpu.memory_space<vmem>>, %arg15: memref<2x512x128xbf16, #tpu.memory_space<vmem>>, %arg16: memref<2x1x128xf32, #tpu.memory_space<vmem>>, %arg17: memref<2x1x128xf32, #tpu.memory_space<vmem>>, %arg18: memref<2x1x128xf32, #tpu.memory_space<vmem>>, %arg19: memref<384x512xbf16, #tpu.memory_space<vmem>>, %arg20: memref<1x512xf32, #tpu.memory_space<vmem>>, %arg21: memref<384x128xbf16, #tpu.memory_space<vmem>>, %arg22: memref<1x128xf32, #tpu.memory_space<vmem>>, %arg23: memref<128x128xbf16, #tpu.memory_space<vmem>>, %arg24: memref<1x128xf32, #tpu.memory_space<vmem>>, %arg25: memref<128x256xbf16, #tpu.memory_space<vmem>>, %arg26: memref<1x256xf32, #tpu.memory_space<vmem>>, %arg27: memref<1x1x256xf32, #tpu.memory_space<vmem>>) attributes {dimension_semantics = [#tpu.dimension_semantics<parallel>], iteration_bounds = array<i64: 4>, scalar_prefetch = 0 : i64, scratch_operands = 0 : i64, tpu.core_type = #tpu.core_type<tc>, window_params = [{transform_indices = @transform_0, window_bounds = array<i64: 1, 16, 8>}, {transform_indices = @transform_1, window_bounds = array<i64: 1, 32, 4>}, {pipeline_mode = #tpu.pipeline_mode<synchronous>, transform_indices = @transform_2, window_bounds = array<i64: 32, 128>}, {pipeline_mode = #tpu.pipeline_mode<synchronous>, transform_indices = @transform_3, window_bounds = array<i64: 128, 16>}, {pipeline_mode = #tpu.pipeline_mode<synchronous>, transform_indices = @transform_4, window_bounds = array<i64: 16, 128>}, {pipeline_mode = #tpu.pipeline_mode<synchronous>, transform_indices = @transform_5, window_bounds = array<i64: 16, 32>}, {pipeline_mode = #tpu.pipeline_mode<synchronous>, transform_indices = @transform_6, window_bounds = array<i64: 8, 128>}, {pipeline_mode = #tpu.pipeline_mode<synchronous>, transform_indices = @transform_7, window_bounds = array<i64: 1, 128>}, {pipeline_mode = #tpu.pipeline_mode<synchronous>, transform_indices = @transform_8, window_bounds = array<i64: 4, 128>}, {pipeline_mode = #tpu.pipeline_mode<synchronous>, transform_indices = @transform_9, window_bounds = array<i64: 1, 128>}, {pipeline_mode = #tpu.pipeline_mode<synchronous>, transform_indices = @transform_10, window_bounds = array<i64: 128, 128>}, {pipeline_mode = #tpu.pipeline_mode<synchronous>, transform_indices = @transform_11, window_bounds = array<i64: 1, 128>}, {pipeline_mode = #tpu.pipeline_mode<synchronous>, transform_indices = @transform_12, window_bounds = array<i64: 2, 8, 128>}, {pipeline_mode = #tpu.pipeline_mode<synchronous>, transform_indices = @transform_13, window_bounds = array<i64: 8, 128>}, {pipeline_mode = #tpu.pipeline_mode<synchronous>, transform_indices = @transform_14, window_bounds = array<i64: 2, 512, 128>}, {pipeline_mode = #tpu.pipeline_mode<synchronous>, transform_indices = @transform_15, window_bounds = array<i64: 2, 1, 128>}, {pipeline_mode = #tpu.pipeline_mode<synchronous>, transform_indices = @transform_16, window_bounds = array<i64: 2, 1, 128>}, {pipeline_mode = #tpu.pipeline_mode<synchronous>, transform_indices = @transform_17, window_bounds = array<i64: 2, 1, 128>}, {pipeline_mode = #tpu.pipeline_mode<synchronous>, transform_indices = @transform_18, window_bounds = array<i64: 384, 512>}, {pipeline_mode = #tpu.pipeline_mode<synchronous>, transform_indices = @transform_19, window_bounds = array<i64: 1, 512>}, {pipeline_mode = #tpu.pipeline_mode<synchronous>, transform_indices = @transform_20, window_bounds = array<i64: 384, 128>}, {pipeline_mode = #tpu.pipeline_mode<synchronous>, transform_indices = @transform_21, window_bounds = array<i64: 1, 128>}, {pipeline_mode = #tpu.pipeline_mode<synchronous>, transform_indices = @transform_22, window_bounds = array<i64: 128, 128>}, {pipeline_mode = #tpu.pipeline_mode<synchronous>, transform_indices = @transform_23, window_bounds = array<i64: 1, 128>}, {pipeline_mode = #tpu.pipeline_mode<synchronous>, transform_indices = @transform_24, window_bounds = array<i64: 128, 256>}, {pipeline_mode = #tpu.pipeline_mode<synchronous>, transform_indices = @transform_25, window_bounds = array<i64: 1, 256>}, {transform_indices = @transform_26, window_bounds = array<i64: 1, 1, 256>}]} {
    %c0 = arith.constant 0 : index
    %c0_0 = arith.constant 0 : index
    %c0_1 = arith.constant 0 : index
    %0 = vector.load %arg1[%c0, %c0_0, %c0_1] : memref<1x16x8xf32, #tpu.memory_space<vmem>>, vector<1x16x8xf32>
    %1 = vector.shape_cast %0 : vector<1x16x8xf32> to vector<16x8xf32>
    %2 = arith.truncf %1 : vector<16x8xf32> to vector<16x8xbf16>
    %c0_2 = arith.constant 0 : index
    %c0_3 = arith.constant 0 : index
    %3 = vector.load %arg7[%c0_2, %c0_3] : memref<8x128xbf16, #tpu.memory_space<vmem>>, vector<8x128xbf16>
    %cst = arith.constant dense<0.000000e+00> : vector<16x128xf32>
    %4 = tpu.matmul %2, %3, %cst {dimension_numbers = #tpu.dot_dimension_numbers<[1], [0], [0], [1], [0, 0, 1, 1], [], []>} : vector<16x8xbf16>, vector<8x128xbf16>, vector<16x128xf32> -> vector<16x128xf32>
    %c0_4 = arith.constant 0 : index
    %c0_5 = arith.constant 0 : index
    %5 = vector.load %arg8[%c0_4, %c0_5] : memref<1x128xf32, #tpu.memory_space<vmem>>, vector<1x128xf32>
    %6 = vector.broadcast %5 : vector<1x128xf32> to vector<16x128xf32>
    %7 = arith.addf %4, %6 : vector<16x128xf32>
    %c0_6 = arith.constant 0 : index
    %c0_7 = arith.constant 0 : index
    %c0_8 = arith.constant 0 : index
    %8 = vector.load %arg2[%c0_6, %c0_7, %c0_8] : memref<1x32x4xf32, #tpu.memory_space<vmem>>, vector<1x32x4xf32>
    %9 = vector.shape_cast %8 : vector<1x32x4xf32> to vector<32x4xf32>
    %10 = arith.truncf %9 : vector<32x4xf32> to vector<32x4xbf16>
    %c0_9 = arith.constant 0 : index
    %c0_10 = arith.constant 0 : index
    %11 = vector.load %arg9[%c0_9, %c0_10] : memref<4x128xbf16, #tpu.memory_space<vmem>>, vector<4x128xbf16>
    %cst_11 = arith.constant dense<0.000000e+00> : vector<32x128xf32>
    %12 = tpu.matmul %10, %11, %cst_11 {dimension_numbers = #tpu.dot_dimension_numbers<[1], [0], [0], [1], [0, 0, 1, 1], [], []>} : vector<32x4xbf16>, vector<4x128xbf16>, vector<32x128xf32> -> vector<32x128xf32>
    %c0_12 = arith.constant 0 : index
    %c0_13 = arith.constant 0 : index
    %13 = vector.load %arg10[%c0_12, %c0_13] : memref<1x128xf32, #tpu.memory_space<vmem>>, vector<1x128xf32>
    %14 = vector.broadcast %13 : vector<1x128xf32> to vector<32x128xf32>
    %15 = arith.addf %12, %14 : vector<32x128xf32>
    %16 = arith.truncf %15 : vector<32x128xf32> to vector<32x128xbf16>
    %c0_14 = arith.constant 0 : index
    %c0_15 = arith.constant 0 : index
    %17 = vector.load %arg11[%c0_14, %c0_15] : memref<128x128xbf16, #tpu.memory_space<vmem>>, vector<128x128xbf16>
    %cst_16 = arith.constant dense<0.000000e+00> : vector<32x128xf32>
    %18 = tpu.matmul %16, %17, %cst_16 {dimension_numbers = #tpu.dot_dimension_numbers<[1], [0], [0], [1], [0, 0, 1, 1], [], []>} : vector<32x128xbf16>, vector<128x128xbf16>, vector<32x128xf32> -> vector<32x128xf32>
    %c0_17 = arith.constant 0 : index
    %c0_18 = arith.constant 0 : index
    %19 = vector.load %arg12[%c0_17, %c0_18] : memref<1x128xf32, #tpu.memory_space<vmem>>, vector<1x128xf32>
    %20 = vector.broadcast %19 : vector<1x128xf32> to vector<32x128xf32>
    %21 = arith.addf %18, %20 : vector<32x128xf32>
    %c0_19 = arith.constant 0 : index
    %c0_20 = arith.constant 0 : index
    %22 = vector.load %arg6[%c0_19, %c0_20] : memref<16x32xbf16, #tpu.memory_space<vmem>>, vector<16x32xbf16>
    %23 = arith.truncf %21 : vector<32x128xf32> to vector<32x128xbf16>
    %cst_21 = arith.constant dense<0.000000e+00> : vector<16x128xf32>
    %24 = tpu.matmul %22, %23, %cst_21 {dimension_numbers = #tpu.dot_dimension_numbers<[1], [0], [0], [1], [0, 0, 1, 1], [], []>} : vector<16x32xbf16>, vector<32x128xbf16>, vector<16x128xf32> -> vector<16x128xf32>
    %cst_22 = arith.constant 0.000000e+00 : f32
    %25 = vector.broadcast %cst_22 : f32 to vector<80x128xf32>
    %26 = tpu.concatenate %21, %24, %25 in 0 : vector<32x128xf32>, vector<16x128xf32>, vector<80x128xf32> -> vector<128x128xf32>
    %c0_23 = arith.constant 0 : index
    %c0_24 = arith.constant 0 : index
    %27 = vector.load %arg14[%c0_23, %c0_24] : memref<8x128xbf16, #tpu.memory_space<vmem>>, vector<8x128xbf16>
    %28 = arith.truncf %26 : vector<128x128xf32> to vector<128x128xbf16>
    %cst_25 = arith.constant dense<0.000000e+00> : vector<8x128xf32>
    %29 = tpu.matmul %27, %28, %cst_25 {dimension_numbers = #tpu.dot_dimension_numbers<[1], [1], [0], [0], [0, 0, 1, 0], [], []>} : vector<8x128xbf16>, vector<128x128xbf16>, vector<8x128xf32> -> vector<8x128xf32>
    %c0_26 = arith.constant 0 : index
    %c0_27 = arith.constant 0 : index
    %30 = vector.load %arg3[%c0_26, %c0_27] : memref<32x128xbf16, #tpu.memory_space<vmem>>, vector<32x128xbf16>
    %c0_28 = arith.constant 0 : index
    %c0_29 = arith.constant 0 : index
    %31 = vector.load %arg4[%c0_28, %c0_29] : memref<128x16xbf16, #tpu.memory_space<vmem>>, vector<128x16xbf16>
    %c0_30 = arith.constant 0 : index
    %c0_31 = arith.constant 0 : index
    %32 = vector.load %arg5[%c0_30, %c0_31] : memref<16x128xf32, #tpu.memory_space<vmem>>, vector<16x128xf32>
    %33 = vector.shape_cast %32 : vector<16x128xf32> to vector<16x1x128xf32>
    %34 = arith.truncf %7 : vector<16x128xf32> to vector<16x128xbf16>
    %c0_32 = arith.constant 0 : index
    %c0_33 = arith.constant 0 : index
    %c0_34 = arith.constant 0 : index
    %35 = vector.load %arg13[%c0_32, %c0_33, %c0_34] : memref<2x8x128xbf16, #tpu.memory_space<vmem>>, vector<1x8x128xbf16>
    %36 = vector.shape_cast %35 : vector<1x8x128xbf16> to vector<8x128xbf16>
    %cst_35 = arith.constant dense<0.000000e+00> : vector<8x16xf32>
    %37 = tpu.matmul %36, %34, %cst_35 {dimension_numbers = #tpu.dot_dimension_numbers<[1], [1], [0], [0], [0, 0, 1, 0], [], []>} : vector<8x128xbf16>, vector<16x128xbf16>, vector<8x16xf32> -> vector<8x16xf32>
    %38 = vector.extract_strided_slice %37 {offsets = [0, 0], sizes = [4, 16], strides = [1, 1]} : vector<8x16xf32> to vector<4x16xf32>
    %39 = vector.extract_strided_slice %37 {offsets = [4, 0], sizes = [4, 16], strides = [1, 1]} : vector<8x16xf32> to vector<4x16xf32>
    %40 = tpu.concatenate %38, %39 in 1 : vector<4x16xf32>, vector<4x16xf32> -> vector<4x32xf32>
    %41 = arith.truncf %40 : vector<4x32xf32> to vector<4x32xbf16>
    %cst_36 = arith.constant dense<0.000000e+00> : vector<4x128xf32>
    %42 = tpu.matmul %41, %30, %cst_36 {dimension_numbers = #tpu.dot_dimension_numbers<[1], [0], [0], [1], [0, 0, 1, 1], [], []>} : vector<4x32xbf16>, vector<32x128xbf16>, vector<4x128xf32> -> vector<4x128xf32>
    %43 = vector.extract_strided_slice %29 {offsets = [0, 0], sizes = [4, 128], strides = [1, 1]} : vector<8x128xf32> to vector<4x128xf32>
    %44 = arith.addf %42, %43 : vector<4x128xf32>
    %cst_37 = arith.constant 0.000000e+00 : f32
    %45 = vector.broadcast %cst_37 : f32 to vector<4x128xf32>
    %46 = arith.cmpf ogt, %44, %45 : vector<4x128xf32>
    %cst_38 = arith.constant 2.000000e-01 : f32
    %47 = vector.broadcast %cst_38 : f32 to vector<4x128xf32>
    %48 = arith.mulf %47, %44 : vector<4x128xf32>
    %49 = arith.select %46, %44, %48 : vector<4x128xi1>, vector<4x128xf32>
    %50 = vector.shape_cast %49 : vector<4x128xf32> to vector<1x4x128xf32>
    %51 = vector.broadcast %33 : vector<16x1x128xf32> to vector<16x4x128xf32>
    %52 = vector.broadcast %50 : vector<1x4x128xf32> to vector<16x4x128xf32>
    %53 = arith.addf %51, %52 : vector<16x4x128xf32>
    %54 = vector.shape_cast %53 : vector<16x4x128xf32> to vector<64x128xf32>
    %cst_39 = arith.constant dense<0xFF800000> : vector<64xf32>
    %55 = vector.multi_reduction <maximumf>, %54, %cst_39 [1] : vector<64x128xf32> to vector<64xf32>
    %56 = vector.shape_cast %55 : vector<64xf32> to vector<64x1xf32>
    %57 = vector.broadcast %56 : vector<64x1xf32> to vector<64x128xf32>
    %58 = arith.subf %54, %57 : vector<64x128xf32>
    %59 = math.exp %58 : vector<64x128xf32>
    %cst_40 = arith.constant dense<0.000000e+00> : vector<64xf32>
    %60 = vector.multi_reduction <add>, %59, %cst_40 [1] : vector<64x128xf32> to vector<64xf32>
    %61 = vector.shape_cast %60 : vector<64xf32> to vector<64x1xf32>
    %62 = tpu.reciprocal %61 {approx = true} : vector<64x1xf32> -> vector<64x1xf32>
    %63 = vector.broadcast %62 : vector<64x1xf32> to vector<64x128xf32>
    %64 = arith.mulf %59, %63 : vector<64x128xf32>
    %65 = arith.truncf %64 : vector<64x128xf32> to vector<64x128xbf16>
    %cst_41 = arith.constant dense<0.000000e+00> : vector<128x128xf32>
    %66 = tpu.matmul %31, %34, %cst_41 {dimension_numbers = #tpu.dot_dimension_numbers<[1], [0], [0], [1], [0, 0, 1, 1], [], []>} : vector<128x16xbf16>, vector<16x128xbf16>, vector<128x128xf32> -> vector<128x128xf32>
    %67 = arith.truncf %66 : vector<128x128xf32> to vector<128x128xbf16>
    %cst_42 = arith.constant dense<0.000000e+00> : vector<64x128xf32>
    %68 = tpu.matmul %65, %67, %cst_42 {dimension_numbers = #tpu.dot_dimension_numbers<[1], [0], [0], [1], [0, 0, 1, 1], [], []>} : vector<64x128xbf16>, vector<128x128xbf16>, vector<64x128xf32> -> vector<64x128xf32>
    %69 = vector.shape_cast %68 : vector<64x128xf32> to vector<16x4x128xf32>
    %70 = vector.shape_cast %69 : vector<16x4x128xf32> to vector<16x512xf32>
    %71 = arith.truncf %70 : vector<16x512xf32> to vector<16x512xbf16>
    %c0_43 = arith.constant 0 : index
    %c0_44 = arith.constant 0 : index
    %c0_45 = arith.constant 0 : index
    %72 = vector.load %arg15[%c0_43, %c0_44, %c0_45] : memref<2x512x128xbf16, #tpu.memory_space<vmem>>, vector<1x512x128xbf16>
    %73 = vector.shape_cast %72 : vector<1x512x128xbf16> to vector<512x128xbf16>
    %cst_46 = arith.constant dense<0.000000e+00> : vector<16x128xf32>
    %74 = tpu.matmul %71, %73, %cst_46 {dimension_numbers = #tpu.dot_dimension_numbers<[1], [0], [0], [1], [0, 0, 1, 1], [], []>} : vector<16x512xbf16>, vector<512x128xbf16>, vector<16x128xf32> -> vector<16x128xf32>
    %c0_47 = arith.constant 0 : index
    %c0_48 = arith.constant 0 : index
    %c0_49 = arith.constant 0 : index
    %75 = vector.load %arg16[%c0_47, %c0_48, %c0_49] : memref<2x1x128xf32, #tpu.memory_space<vmem>>, vector<1x1x128xf32>
    %76 = vector.shape_cast %75 : vector<1x1x128xf32> to vector<1x128xf32>
    %77 = vector.broadcast %76 : vector<1x128xf32> to vector<16x128xf32>
    %78 = arith.addf %74, %77 : vector<16x128xf32>
    %cst_50 = arith.constant dense<0.000000e+00> : vector<16xf32>
    %79 = vector.multi_reduction <add>, %78, %cst_50 [1] : vector<16x128xf32> to vector<16xf32>
    %80 = vector.shape_cast %79 : vector<16xf32> to vector<16x1xf32>
    %cst_51 = arith.constant 1.280000e+02 : f32
    %81 = vector.broadcast %cst_51 : f32 to vector<16x1xf32>
    %82 = arith.divf %80, %81 : vector<16x1xf32>
    %83 = vector.broadcast %82 : vector<16x1xf32> to vector<16x128xf32>
    %84 = arith.subf %78, %83 : vector<16x128xf32>
    %85 = arith.mulf %84, %84 : vector<16x128xf32>
    %cst_52 = arith.constant dense<0.000000e+00> : vector<16xf32>
    %86 = vector.multi_reduction <add>, %85, %cst_52 [1] : vector<16x128xf32> to vector<16xf32>
    %87 = vector.shape_cast %86 : vector<16xf32> to vector<16x1xf32>
    %cst_53 = arith.constant 1.280000e+02 : f32
    %88 = vector.broadcast %cst_53 : f32 to vector<16x1xf32>
    %89 = arith.divf %87, %88 : vector<16x1xf32>
    %90 = vector.broadcast %82 : vector<16x1xf32> to vector<16x128xf32>
    %91 = arith.subf %78, %90 : vector<16x128xf32>
    %cst_54 = arith.constant 9.99999974E-6 : f32
    %92 = vector.broadcast %cst_54 : f32 to vector<16x1xf32>
    %93 = arith.addf %89, %92 : vector<16x1xf32>
    %94 = math.rsqrt %93 : vector<16x1xf32>
    %95 = vector.broadcast %94 : vector<16x1xf32> to vector<16x128xf32>
    %96 = arith.mulf %91, %95 : vector<16x128xf32>
    %c0_55 = arith.constant 0 : index
    %c0_56 = arith.constant 0 : index
    %c0_57 = arith.constant 0 : index
    %97 = vector.load %arg17[%c0_55, %c0_56, %c0_57] : memref<2x1x128xf32, #tpu.memory_space<vmem>>, vector<1x1x128xf32>
    %98 = vector.shape_cast %97 : vector<1x1x128xf32> to vector<1x128xf32>
    %99 = vector.broadcast %98 : vector<1x128xf32> to vector<16x128xf32>
    %100 = arith.mulf %96, %99 : vector<16x128xf32>
    %c0_58 = arith.constant 0 : index
    %c0_59 = arith.constant 0 : index
    %c0_60 = arith.constant 0 : index
    %101 = vector.load %arg18[%c0_58, %c0_59, %c0_60] : memref<2x1x128xf32, #tpu.memory_space<vmem>>, vector<1x1x128xf32>
    %102 = vector.shape_cast %101 : vector<1x1x128xf32> to vector<1x128xf32>
    %103 = vector.broadcast %102 : vector<1x128xf32> to vector<16x128xf32>
    %104 = arith.addf %100, %103 : vector<16x128xf32>
    %105 = arith.addf %104, %7 : vector<16x128xf32>
    %cst_61 = arith.constant 0.000000e+00 : f32
    %106 = vector.broadcast %cst_61 : f32 to vector<16x128xf32>
    %107 = arith.maximumf %105, %106 : vector<16x128xf32>
    %108 = arith.truncf %107 : vector<16x128xf32> to vector<16x128xbf16>
    %c1 = arith.constant 1 : index
    %c0_62 = arith.constant 0 : index
    %c0_63 = arith.constant 0 : index
    %109 = vector.load %arg13[%c1, %c0_62, %c0_63] : memref<2x8x128xbf16, #tpu.memory_space<vmem>>, vector<1x8x128xbf16>
    %110 = vector.shape_cast %109 : vector<1x8x128xbf16> to vector<8x128xbf16>
    %cst_64 = arith.constant dense<0.000000e+00> : vector<8x16xf32>
    %111 = tpu.matmul %110, %108, %cst_64 {dimension_numbers = #tpu.dot_dimension_numbers<[1], [1], [0], [0], [0, 0, 1, 0], [], []>} : vector<8x128xbf16>, vector<16x128xbf16>, vector<8x16xf32> -> vector<8x16xf32>
    %112 = vector.extract_strided_slice %111 {offsets = [0, 0], sizes = [4, 16], strides = [1, 1]} : vector<8x16xf32> to vector<4x16xf32>
    %113 = vector.extract_strided_slice %111 {offsets = [4, 0], sizes = [4, 16], strides = [1, 1]} : vector<8x16xf32> to vector<4x16xf32>
    %114 = tpu.concatenate %112, %113 in 1 : vector<4x16xf32>, vector<4x16xf32> -> vector<4x32xf32>
    %115 = arith.truncf %114 : vector<4x32xf32> to vector<4x32xbf16>
    %cst_65 = arith.constant dense<0.000000e+00> : vector<4x128xf32>
    %116 = tpu.matmul %115, %30, %cst_65 {dimension_numbers = #tpu.dot_dimension_numbers<[1], [0], [0], [1], [0, 0, 1, 1], [], []>} : vector<4x32xbf16>, vector<32x128xbf16>, vector<4x128xf32> -> vector<4x128xf32>
    %117 = vector.extract_strided_slice %29 {offsets = [4, 0], sizes = [4, 128], strides = [1, 1]} : vector<8x128xf32> to vector<4x128xf32>
    %118 = arith.addf %116, %117 : vector<4x128xf32>
    %cst_66 = arith.constant 0.000000e+00 : f32
    %119 = vector.broadcast %cst_66 : f32 to vector<4x128xf32>
    %120 = arith.cmpf ogt, %118, %119 : vector<4x128xf32>
    %cst_67 = arith.constant 2.000000e-01 : f32
    %121 = vector.broadcast %cst_67 : f32 to vector<4x128xf32>
    %122 = arith.mulf %121, %118 : vector<4x128xf32>
    %123 = arith.select %120, %118, %122 : vector<4x128xi1>, vector<4x128xf32>
    %124 = vector.shape_cast %123 : vector<4x128xf32> to vector<1x4x128xf32>
    %125 = vector.broadcast %33 : vector<16x1x128xf32> to vector<16x4x128xf32>
    %126 = vector.broadcast %124 : vector<1x4x128xf32> to vector<16x4x128xf32>
    %127 = arith.addf %125, %126 : vector<16x4x128xf32>
    %128 = vector.shape_cast %127 : vector<16x4x128xf32> to vector<64x128xf32>
    %cst_68 = arith.constant dense<0xFF800000> : vector<64xf32>
    %129 = vector.multi_reduction <maximumf>, %128, %cst_68 [1] : vector<64x128xf32> to vector<64xf32>
    %130 = vector.shape_cast %129 : vector<64xf32> to vector<64x1xf32>
    %131 = vector.broadcast %130 : vector<64x1xf32> to vector<64x128xf32>
    %132 = arith.subf %128, %131 : vector<64x128xf32>
    %133 = math.exp %132 : vector<64x128xf32>
    %cst_69 = arith.constant dense<0.000000e+00> : vector<64xf32>
    %134 = vector.multi_reduction <add>, %133, %cst_69 [1] : vector<64x128xf32> to vector<64xf32>
    %135 = vector.shape_cast %134 : vector<64xf32> to vector<64x1xf32>
    %136 = tpu.reciprocal %135 {approx = true} : vector<64x1xf32> -> vector<64x1xf32>
    %137 = vector.broadcast %136 : vector<64x1xf32> to vector<64x128xf32>
    %138 = arith.mulf %133, %137 : vector<64x128xf32>
    %139 = arith.truncf %138 : vector<64x128xf32> to vector<64x128xbf16>
    %cst_70 = arith.constant dense<0.000000e+00> : vector<128x128xf32>
    %140 = tpu.matmul %31, %108, %cst_70 {dimension_numbers = #tpu.dot_dimension_numbers<[1], [0], [0], [1], [0, 0, 1, 1], [], []>} : vector<128x16xbf16>, vector<16x128xbf16>, vector<128x128xf32> -> vector<128x128xf32>
    %141 = arith.truncf %140 : vector<128x128xf32> to vector<128x128xbf16>
    %cst_71 = arith.constant dense<0.000000e+00> : vector<64x128xf32>
    %142 = tpu.matmul %139, %141, %cst_71 {dimension_numbers = #tpu.dot_dimension_numbers<[1], [0], [0], [1], [0, 0, 1, 1], [], []>} : vector<64x128xbf16>, vector<128x128xbf16>, vector<64x128xf32> -> vector<64x128xf32>
    %143 = vector.shape_cast %142 : vector<64x128xf32> to vector<16x4x128xf32>
    %144 = vector.shape_cast %143 : vector<16x4x128xf32> to vector<16x512xf32>
    %145 = arith.truncf %144 : vector<16x512xf32> to vector<16x512xbf16>
    %c1_72 = arith.constant 1 : index
    %c0_73 = arith.constant 0 : index
    %c0_74 = arith.constant 0 : index
    %146 = vector.load %arg15[%c1_72, %c0_73, %c0_74] : memref<2x512x128xbf16, #tpu.memory_space<vmem>>, vector<1x512x128xbf16>
    %147 = vector.shape_cast %146 : vector<1x512x128xbf16> to vector<512x128xbf16>
    %cst_75 = arith.constant dense<0.000000e+00> : vector<16x128xf32>
    %148 = tpu.matmul %145, %147, %cst_75 {dimension_numbers = #tpu.dot_dimension_numbers<[1], [0], [0], [1], [0, 0, 1, 1], [], []>} : vector<16x512xbf16>, vector<512x128xbf16>, vector<16x128xf32> -> vector<16x128xf32>
    %c1_76 = arith.constant 1 : index
    %c0_77 = arith.constant 0 : index
    %c0_78 = arith.constant 0 : index
    %149 = vector.load %arg16[%c1_76, %c0_77, %c0_78] : memref<2x1x128xf32, #tpu.memory_space<vmem>>, vector<1x1x128xf32>
    %150 = vector.shape_cast %149 : vector<1x1x128xf32> to vector<1x128xf32>
    %151 = vector.broadcast %150 : vector<1x128xf32> to vector<16x128xf32>
    %152 = arith.addf %148, %151 : vector<16x128xf32>
    %cst_79 = arith.constant dense<0.000000e+00> : vector<16xf32>
    %153 = vector.multi_reduction <add>, %152, %cst_79 [1] : vector<16x128xf32> to vector<16xf32>
    %154 = vector.shape_cast %153 : vector<16xf32> to vector<16x1xf32>
    %cst_80 = arith.constant 1.280000e+02 : f32
    %155 = vector.broadcast %cst_80 : f32 to vector<16x1xf32>
    %156 = arith.divf %154, %155 : vector<16x1xf32>
    %157 = vector.broadcast %156 : vector<16x1xf32> to vector<16x128xf32>
    %158 = arith.subf %152, %157 : vector<16x128xf32>
    %159 = arith.mulf %158, %158 : vector<16x128xf32>
    %cst_81 = arith.constant dense<0.000000e+00> : vector<16xf32>
    %160 = vector.multi_reduction <add>, %159, %cst_81 [1] : vector<16x128xf32> to vector<16xf32>
    %161 = vector.shape_cast %160 : vector<16xf32> to vector<16x1xf32>
    %cst_82 = arith.constant 1.280000e+02 : f32
    %162 = vector.broadcast %cst_82 : f32 to vector<16x1xf32>
    %163 = arith.divf %161, %162 : vector<16x1xf32>
    %164 = vector.broadcast %156 : vector<16x1xf32> to vector<16x128xf32>
    %165 = arith.subf %152, %164 : vector<16x128xf32>
    %cst_83 = arith.constant 9.99999974E-6 : f32
    %166 = vector.broadcast %cst_83 : f32 to vector<16x1xf32>
    %167 = arith.addf %163, %166 : vector<16x1xf32>
    %168 = math.rsqrt %167 : vector<16x1xf32>
    %169 = vector.broadcast %168 : vector<16x1xf32> to vector<16x128xf32>
    %170 = arith.mulf %165, %169 : vector<16x128xf32>
    %c1_84 = arith.constant 1 : index
    %c0_85 = arith.constant 0 : index
    %c0_86 = arith.constant 0 : index
    %171 = vector.load %arg17[%c1_84, %c0_85, %c0_86] : memref<2x1x128xf32, #tpu.memory_space<vmem>>, vector<1x1x128xf32>
    %172 = vector.shape_cast %171 : vector<1x1x128xf32> to vector<1x128xf32>
    %173 = vector.broadcast %172 : vector<1x128xf32> to vector<16x128xf32>
    %174 = arith.mulf %170, %173 : vector<16x128xf32>
    %c1_87 = arith.constant 1 : index
    %c0_88 = arith.constant 0 : index
    %c0_89 = arith.constant 0 : index
    %175 = vector.load %arg18[%c1_87, %c0_88, %c0_89] : memref<2x1x128xf32, #tpu.memory_space<vmem>>, vector<1x1x128xf32>
    %176 = vector.shape_cast %175 : vector<1x1x128xf32> to vector<1x128xf32>
    %177 = vector.broadcast %176 : vector<1x128xf32> to vector<16x128xf32>
    %178 = arith.addf %174, %177 : vector<16x128xf32>
    %179 = arith.addf %178, %107 : vector<16x128xf32>
    %cst_90 = arith.constant 0.000000e+00 : f32
    %180 = vector.broadcast %cst_90 : f32 to vector<16x128xf32>
    %181 = arith.maximumf %179, %180 : vector<16x128xf32>
    %c0_91 = arith.constant 0 : index
    %c0_92 = arith.constant 0 : index
    %182 = vector.load %arg19[%c0_91, %c0_92] : memref<384x512xbf16, #tpu.memory_space<vmem>>, vector<384x512xbf16>
    %c0_93 = arith.constant 0 : index
    %c0_94 = arith.constant 0 : index
    %183 = vector.load %arg20[%c0_93, %c0_94] : memref<1x512xf32, #tpu.memory_space<vmem>>, vector<1x512xf32>
    %cst_95 = arith.constant 0.000000e+00 : f32
    %184 = vector.broadcast %cst_95 : f32 to vector<1x256xf32>
    %cst_96 = arith.constant 0.000000e+00 : f32
    %185 = vector.broadcast %cst_96 : f32 to vector<1x128xf32>
    %cst_97 = arith.constant 0.000000e+00 : f32
    %186 = vector.broadcast %cst_97 : f32 to vector<1x128xf32>
    %187 = tpu.concatenate %184, %185 in 1 : vector<1x256xf32>, vector<1x128xf32> -> vector<1x384xf32>
    %188 = arith.truncf %187 : vector<1x384xf32> to vector<1x384xbf16>
    %cst_98 = arith.constant dense<0.000000e+00> : vector<1x512xf32>
    %189 = tpu.matmul %188, %182, %cst_98 {dimension_numbers = #tpu.dot_dimension_numbers<[1], [0], [0], [1], [0, 0, 1, 1], [], []>} : vector<1x384xbf16>, vector<384x512xbf16>, vector<1x512xf32> -> vector<1x512xf32>
    %190 = arith.addf %189, %183 : vector<1x512xf32>
    %191 = vector.extract_strided_slice %190 {offsets = [0, 0], sizes = [1, 128], strides = [1, 1]} : vector<1x512xf32> to vector<1x128xf32>
    %192 = arith.negf %191 : vector<1x128xf32>
    %193 = math.exp %192 : vector<1x128xf32>
    %cst_99 = arith.constant 1.000000e+00 : f32
    %194 = vector.broadcast %cst_99 : f32 to vector<1x128xf32>
    %195 = arith.addf %194, %193 : vector<1x128xf32>
    %196 = arith.divf %194, %195 : vector<1x128xf32>
    %197 = vector.extract_strided_slice %190 {offsets = [0, 128], sizes = [1, 128], strides = [1, 1]} : vector<1x512xf32> to vector<1x128xf32>
    %198 = arith.negf %197 : vector<1x128xf32>
    %199 = math.exp %198 : vector<1x128xf32>
    %cst_100 = arith.constant 1.000000e+00 : f32
    %200 = vector.broadcast %cst_100 : f32 to vector<1x128xf32>
    %201 = arith.addf %200, %199 : vector<1x128xf32>
    %202 = arith.divf %200, %201 : vector<1x128xf32>
    %203 = vector.extract_strided_slice %190 {offsets = [0, 256], sizes = [1, 128], strides = [1, 1]} : vector<1x512xf32> to vector<1x128xf32>
    %204 = math.tanh %203 : vector<1x128xf32>
    %205 = vector.extract_strided_slice %190 {offsets = [0, 384], sizes = [1, 128], strides = [1, 1]} : vector<1x512xf32> to vector<1x128xf32>
    %206 = arith.negf %205 : vector<1x128xf32>
    %207 = math.exp %206 : vector<1x128xf32>
    %cst_101 = arith.constant 1.000000e+00 : f32
    %208 = vector.broadcast %cst_101 : f32 to vector<1x128xf32>
    %209 = arith.addf %208, %207 : vector<1x128xf32>
    %210 = arith.divf %208, %209 : vector<1x128xf32>
    %211 = arith.mulf %202, %186 : vector<1x128xf32>
    %212 = arith.mulf %196, %204 : vector<1x128xf32>
    %213 = arith.addf %211, %212 : vector<1x128xf32>
    %214 = math.tanh %213 : vector<1x128xf32>
    %215 = arith.mulf %210, %214 : vector<1x128xf32>
    %cst_102 = arith.constant dense<0.000000e+00> : vector<1x16xf32>
    %216 = tpu.matmul %215, %181, %cst_102 {dimension_numbers = #tpu.dot_dimension_numbers<[1], [1], [0], [0], [0, 0, 1, 0], [], []>} : vector<1x128xf32>, vector<16x128xf32>, vector<1x16xf32> -> vector<1x16xf32>
    %cst_103 = arith.constant dense<0xFF800000> : vector<1xf32>
    %217 = vector.multi_reduction <maximumf>, %216, %cst_103 [1] : vector<1x16xf32> to vector<1xf32>
    %218 = vector.shape_cast %217 : vector<1xf32> to vector<1x1xf32>
    %219 = vector.broadcast %218 : vector<1x1xf32> to vector<1x16xf32>
    %220 = arith.subf %216, %219 : vector<1x16xf32>
    %221 = math.exp %220 : vector<1x16xf32>
    %cst_104 = arith.constant dense<0.000000e+00> : vector<1xf32>
    %222 = vector.multi_reduction <add>, %221, %cst_104 [1] : vector<1x16xf32> to vector<1xf32>
    %223 = vector.shape_cast %222 : vector<1xf32> to vector<1x1xf32>
    %224 = tpu.reciprocal %223 {approx = true} : vector<1x1xf32> -> vector<1x1xf32>
    %225 = vector.broadcast %224 : vector<1x1xf32> to vector<1x16xf32>
    %226 = arith.mulf %221, %225 : vector<1x16xf32>
    %cst_105 = arith.constant dense<0.000000e+00> : vector<1x128xf32>
    %227 = tpu.matmul %226, %181, %cst_105 {dimension_numbers = #tpu.dot_dimension_numbers<[1], [0], [0], [1], [0, 0, 1, 1], [], []>} : vector<1x16xf32>, vector<16x128xf32>, vector<1x128xf32> -> vector<1x128xf32>
    %228 = tpu.concatenate %215, %227 in 1 : vector<1x128xf32>, vector<1x128xf32> -> vector<1x256xf32>
    %229 = tpu.concatenate %228, %215 in 1 : vector<1x256xf32>, vector<1x128xf32> -> vector<1x384xf32>
    %230 = arith.truncf %229 : vector<1x384xf32> to vector<1x384xbf16>
    %cst_106 = arith.constant dense<0.000000e+00> : vector<1x512xf32>
    %231 = tpu.matmul %230, %182, %cst_106 {dimension_numbers = #tpu.dot_dimension_numbers<[1], [0], [0], [1], [0, 0, 1, 1], [], []>} : vector<1x384xbf16>, vector<384x512xbf16>, vector<1x512xf32> -> vector<1x512xf32>
    %232 = arith.addf %231, %183 : vector<1x512xf32>
    %233 = vector.extract_strided_slice %232 {offsets = [0, 0], sizes = [1, 128], strides = [1, 1]} : vector<1x512xf32> to vector<1x128xf32>
    %234 = arith.negf %233 : vector<1x128xf32>
    %235 = math.exp %234 : vector<1x128xf32>
    %cst_107 = arith.constant 1.000000e+00 : f32
    %236 = vector.broadcast %cst_107 : f32 to vector<1x128xf32>
    %237 = arith.addf %236, %235 : vector<1x128xf32>
    %238 = arith.divf %236, %237 : vector<1x128xf32>
    %239 = vector.extract_strided_slice %232 {offsets = [0, 128], sizes = [1, 128], strides = [1, 1]} : vector<1x512xf32> to vector<1x128xf32>
    %240 = arith.negf %239 : vector<1x128xf32>
    %241 = math.exp %240 : vector<1x128xf32>
    %cst_108 = arith.constant 1.000000e+00 : f32
    %242 = vector.broadcast %cst_108 : f32 to vector<1x128xf32>
    %243 = arith.addf %242, %241 : vector<1x128xf32>
    %244 = arith.divf %242, %243 : vector<1x128xf32>
    %245 = vector.extract_strided_slice %232 {offsets = [0, 256], sizes = [1, 128], strides = [1, 1]} : vector<1x512xf32> to vector<1x128xf32>
    %246 = math.tanh %245 : vector<1x128xf32>
    %247 = vector.extract_strided_slice %232 {offsets = [0, 384], sizes = [1, 128], strides = [1, 1]} : vector<1x512xf32> to vector<1x128xf32>
    %248 = arith.negf %247 : vector<1x128xf32>
    %249 = math.exp %248 : vector<1x128xf32>
    %cst_109 = arith.constant 1.000000e+00 : f32
    %250 = vector.broadcast %cst_109 : f32 to vector<1x128xf32>
    %251 = arith.addf %250, %249 : vector<1x128xf32>
    %252 = arith.divf %250, %251 : vector<1x128xf32>
    %253 = arith.mulf %244, %213 : vector<1x128xf32>
    %254 = arith.mulf %238, %246 : vector<1x128xf32>
    %255 = arith.addf %253, %254 : vector<1x128xf32>
    %256 = math.tanh %255 : vector<1x128xf32>
    %257 = arith.mulf %252, %256 : vector<1x128xf32>
    %cst_110 = arith.constant dense<0.000000e+00> : vector<1x16xf32>
    %258 = tpu.matmul %257, %181, %cst_110 {dimension_numbers = #tpu.dot_dimension_numbers<[1], [1], [0], [0], [0, 0, 1, 0], [], []>} : vector<1x128xf32>, vector<16x128xf32>, vector<1x16xf32> -> vector<1x16xf32>
    %cst_111 = arith.constant dense<0xFF800000> : vector<1xf32>
    %259 = vector.multi_reduction <maximumf>, %258, %cst_111 [1] : vector<1x16xf32> to vector<1xf32>
    %260 = vector.shape_cast %259 : vector<1xf32> to vector<1x1xf32>
    %261 = vector.broadcast %260 : vector<1x1xf32> to vector<1x16xf32>
    %262 = arith.subf %258, %261 : vector<1x16xf32>
    %263 = math.exp %262 : vector<1x16xf32>
    %cst_112 = arith.constant dense<0.000000e+00> : vector<1xf32>
    %264 = vector.multi_reduction <add>, %263, %cst_112 [1] : vector<1x16xf32> to vector<1xf32>
    %265 = vector.shape_cast %264 : vector<1xf32> to vector<1x1xf32>
    %266 = tpu.reciprocal %265 {approx = true} : vector<1x1xf32> -> vector<1x1xf32>
    %267 = vector.broadcast %266 : vector<1x1xf32> to vector<1x16xf32>
    %268 = arith.mulf %263, %267 : vector<1x16xf32>
    %cst_113 = arith.constant dense<0.000000e+00> : vector<1x128xf32>
    %269 = tpu.matmul %268, %181, %cst_113 {dimension_numbers = #tpu.dot_dimension_numbers<[1], [0], [0], [1], [0, 0, 1, 1], [], []>} : vector<1x16xf32>, vector<16x128xf32>, vector<1x128xf32> -> vector<1x128xf32>
    %270 = tpu.concatenate %257, %269 in 1 : vector<1x128xf32>, vector<1x128xf32> -> vector<1x256xf32>
    %271 = tpu.concatenate %270, %257 in 1 : vector<1x256xf32>, vector<1x128xf32> -> vector<1x384xf32>
    %272 = arith.truncf %271 : vector<1x384xf32> to vector<1x384xbf16>
    %cst_114 = arith.constant dense<0.000000e+00> : vector<1x512xf32>
    %273 = tpu.matmul %272, %182, %cst_114 {dimension_numbers = #tpu.dot_dimension_numbers<[1], [0], [0], [1], [0, 0, 1, 1], [], []>} : vector<1x384xbf16>, vector<384x512xbf16>, vector<1x512xf32> -> vector<1x512xf32>
    %274 = arith.addf %273, %183 : vector<1x512xf32>
    %275 = vector.extract_strided_slice %274 {offsets = [0, 0], sizes = [1, 128], strides = [1, 1]} : vector<1x512xf32> to vector<1x128xf32>
    %276 = arith.negf %275 : vector<1x128xf32>
    %277 = math.exp %276 : vector<1x128xf32>
    %cst_115 = arith.constant 1.000000e+00 : f32
    %278 = vector.broadcast %cst_115 : f32 to vector<1x128xf32>
    %279 = arith.addf %278, %277 : vector<1x128xf32>
    %280 = arith.divf %278, %279 : vector<1x128xf32>
    %281 = vector.extract_strided_slice %274 {offsets = [0, 128], sizes = [1, 128], strides = [1, 1]} : vector<1x512xf32> to vector<1x128xf32>
    %282 = arith.negf %281 : vector<1x128xf32>
    %283 = math.exp %282 : vector<1x128xf32>
    %cst_116 = arith.constant 1.000000e+00 : f32
    %284 = vector.broadcast %cst_116 : f32 to vector<1x128xf32>
    %285 = arith.addf %284, %283 : vector<1x128xf32>
    %286 = arith.divf %284, %285 : vector<1x128xf32>
    %287 = vector.extract_strided_slice %274 {offsets = [0, 256], sizes = [1, 128], strides = [1, 1]} : vector<1x512xf32> to vector<1x128xf32>
    %288 = math.tanh %287 : vector<1x128xf32>
    %289 = vector.extract_strided_slice %274 {offsets = [0, 384], sizes = [1, 128], strides = [1, 1]} : vector<1x512xf32> to vector<1x128xf32>
    %290 = arith.negf %289 : vector<1x128xf32>
    %291 = math.exp %290 : vector<1x128xf32>
    %cst_117 = arith.constant 1.000000e+00 : f32
    %292 = vector.broadcast %cst_117 : f32 to vector<1x128xf32>
    %293 = arith.addf %292, %291 : vector<1x128xf32>
    %294 = arith.divf %292, %293 : vector<1x128xf32>
    %295 = arith.mulf %286, %255 : vector<1x128xf32>
    %296 = arith.mulf %280, %288 : vector<1x128xf32>
    %297 = arith.addf %295, %296 : vector<1x128xf32>
    %298 = math.tanh %297 : vector<1x128xf32>
    %299 = arith.mulf %294, %298 : vector<1x128xf32>
    %cst_118 = arith.constant dense<0.000000e+00> : vector<1x16xf32>
    %300 = tpu.matmul %299, %181, %cst_118 {dimension_numbers = #tpu.dot_dimension_numbers<[1], [1], [0], [0], [0, 0, 1, 0], [], []>} : vector<1x128xf32>, vector<16x128xf32>, vector<1x16xf32> -> vector<1x16xf32>
    %cst_119 = arith.constant dense<0xFF800000> : vector<1xf32>
    %301 = vector.multi_reduction <maximumf>, %300, %cst_119 [1] : vector<1x16xf32> to vector<1xf32>
    %302 = vector.shape_cast %301 : vector<1xf32> to vector<1x1xf32>
    %303 = vector.broadcast %302 : vector<1x1xf32> to vector<1x16xf32>
    %304 = arith.subf %300, %303 : vector<1x16xf32>
    %305 = math.exp %304 : vector<1x16xf32>
    %cst_120 = arith.constant dense<0.000000e+00> : vector<1xf32>
    %306 = vector.multi_reduction <add>, %305, %cst_120 [1] : vector<1x16xf32> to vector<1xf32>
    %307 = vector.shape_cast %306 : vector<1xf32> to vector<1x1xf32>
    %308 = tpu.reciprocal %307 {approx = true} : vector<1x1xf32> -> vector<1x1xf32>
    %309 = vector.broadcast %308 : vector<1x1xf32> to vector<1x16xf32>
    %310 = arith.mulf %305, %309 : vector<1x16xf32>
    %cst_121 = arith.constant dense<0.000000e+00> : vector<1x128xf32>
    %311 = tpu.matmul %310, %181, %cst_121 {dimension_numbers = #tpu.dot_dimension_numbers<[1], [0], [0], [1], [0, 0, 1, 1], [], []>} : vector<1x16xf32>, vector<16x128xf32>, vector<1x128xf32> -> vector<1x128xf32>
    %312 = tpu.concatenate %299, %311 in 1 : vector<1x128xf32>, vector<1x128xf32> -> vector<1x256xf32>
    %cst_122 = arith.constant 0.000000e+00 : f32
    %313 = vector.broadcast %cst_122 : f32 to vector<1x128xf32>
    %314 = tpu.concatenate %312, %313 in 1 : vector<1x256xf32>, vector<1x128xf32> -> vector<1x384xf32>
    %315 = arith.truncf %314 : vector<1x384xf32> to vector<1x384xbf16>
    %c0_123 = arith.constant 0 : index
    %c0_124 = arith.constant 0 : index
    %316 = vector.load %arg21[%c0_123, %c0_124] : memref<384x128xbf16, #tpu.memory_space<vmem>>, vector<384x128xbf16>
    %cst_125 = arith.constant dense<0.000000e+00> : vector<1x128xf32>
    %317 = tpu.matmul %315, %316, %cst_125 {dimension_numbers = #tpu.dot_dimension_numbers<[1], [0], [0], [1], [0, 0, 1, 1], [], []>} : vector<1x384xbf16>, vector<384x128xbf16>, vector<1x128xf32> -> vector<1x128xf32>
    %c0_126 = arith.constant 0 : index
    %c0_127 = arith.constant 0 : index
    %318 = vector.load %arg22[%c0_126, %c0_127] : memref<1x128xf32, #tpu.memory_space<vmem>>, vector<1x128xf32>
    %319 = arith.addf %317, %318 : vector<1x128xf32>
    %cst_128 = arith.constant 0.000000e+00 : f32
    %320 = vector.broadcast %cst_128 : f32 to vector<1x128xf32>
    %321 = arith.maximumf %319, %320 : vector<1x128xf32>
    %322 = arith.truncf %321 : vector<1x128xf32> to vector<1x128xbf16>
    %c0_129 = arith.constant 0 : index
    %c0_130 = arith.constant 0 : index
    %323 = vector.load %arg23[%c0_129, %c0_130] : memref<128x128xbf16, #tpu.memory_space<vmem>>, vector<128x128xbf16>
    %cst_131 = arith.constant dense<0.000000e+00> : vector<1x128xf32>
    %324 = tpu.matmul %322, %323, %cst_131 {dimension_numbers = #tpu.dot_dimension_numbers<[1], [0], [0], [1], [0, 0, 1, 1], [], []>} : vector<1x128xbf16>, vector<128x128xbf16>, vector<1x128xf32> -> vector<1x128xf32>
    %c0_132 = arith.constant 0 : index
    %c0_133 = arith.constant 0 : index
    %325 = vector.load %arg24[%c0_132, %c0_133] : memref<1x128xf32, #tpu.memory_space<vmem>>, vector<1x128xf32>
    %326 = arith.addf %324, %325 : vector<1x128xf32>
    %cst_134 = arith.constant 0.000000e+00 : f32
    %327 = vector.broadcast %cst_134 : f32 to vector<1x128xf32>
    %328 = arith.maximumf %326, %327 : vector<1x128xf32>
    %329 = arith.truncf %328 : vector<1x128xf32> to vector<1x128xbf16>
    %c0_135 = arith.constant 0 : index
    %c0_136 = arith.constant 0 : index
    %330 = vector.load %arg25[%c0_135, %c0_136] : memref<128x256xbf16, #tpu.memory_space<vmem>>, vector<128x256xbf16>
    %cst_137 = arith.constant dense<0.000000e+00> : vector<1x256xf32>
    %331 = tpu.matmul %329, %330, %cst_137 {dimension_numbers = #tpu.dot_dimension_numbers<[1], [0], [0], [1], [0, 0, 1, 1], [], []>} : vector<1x128xbf16>, vector<128x256xbf16>, vector<1x256xf32> -> vector<1x256xf32>
    %c0_138 = arith.constant 0 : index
    %c0_139 = arith.constant 0 : index
    %332 = vector.load %arg26[%c0_138, %c0_139] : memref<1x256xf32, #tpu.memory_space<vmem>>, vector<1x256xf32>
    %333 = arith.addf %331, %332 : vector<1x256xf32>
    %cst_140 = arith.constant 0.000000e+00 : f32
    %334 = vector.broadcast %cst_140 : f32 to vector<1x256xf32>
    %335 = arith.maximumf %333, %334 : vector<1x256xf32>
    %336 = arith.mulf %335, %335 : vector<1x256xf32>
    %cst_141 = arith.constant dense<0.000000e+00> : vector<1xf32>
    %337 = vector.multi_reduction <add>, %336, %cst_141 [1] : vector<1x256xf32> to vector<1xf32>
    %338 = vector.shape_cast %337 : vector<1xf32> to vector<1x1xf32>
    %339 = math.sqrt %338 : vector<1x1xf32>
    %cst_142 = arith.constant 9.99999996E-13 : f32
    %340 = vector.broadcast %cst_142 : f32 to vector<1x1xf32>
    %341 = arith.maximumf %339, %340 : vector<1x1xf32>
    %342 = vector.broadcast %341 : vector<1x1xf32> to vector<1x256xf32>
    %343 = arith.divf %335, %342 : vector<1x256xf32>
    %c0_143 = arith.constant 0 : index
    %c0_144 = arith.constant 0 : index
    %c0_145 = arith.constant 0 : index
    %344 = vector.load %arg27[%c0_143, %c0_144, %c0_145] : memref<1x1x256xf32, #tpu.memory_space<vmem>>, vector<1x1x256xf32>
    %345 = vector.shape_cast %344 : vector<1x1x256xf32> to vector<1x256xf32>
    %346 = vector.shape_cast %343 : vector<1x256xf32> to vector<1x1x256xf32>
    tpu.vector_store %arg27[%c0_143, %c0_144, %c0_145], %346 {strides = array<i32>} : memref<1x1x256xf32, #tpu.memory_space<vmem>>, vector<1x1x256xf32>,
    return
  }
  func.func @transform_0(%arg0: i32) -> (i32, i32, i32) {
    %c0_i32 = arith.constant 0 : i32
    %c0_i32_0 = arith.constant 0 : i32
    %c0_i32_1 = arith.constant 0 : i32
    return %arg0, %c0_i32, %c0_i32_0 : i32, i32, i32
  }
  func.func @transform_1(%arg0: i32) -> (i32, i32, i32) {
    %c0_i32 = arith.constant 0 : i32
    %c0_i32_0 = arith.constant 0 : i32
    %c0_i32_1 = arith.constant 0 : i32
    return %arg0, %c0_i32, %c0_i32_0 : i32, i32, i32
  }
  func.func @transform_2(%arg0: i32) -> (i32, i32) {
    %c0_i32 = arith.constant 0 : i32
    %c0_i32_0 = arith.constant 0 : i32
    %c0_i32_1 = arith.constant 0 : i32
    return %c0_i32, %c0_i32_0 : i32, i32
  }
  func.func @transform_3(%arg0: i32) -> (i32, i32) {
    %c0_i32 = arith.constant 0 : i32
    %c0_i32_0 = arith.constant 0 : i32
    %c0_i32_1 = arith.constant 0 : i32
    return %c0_i32, %c0_i32_0 : i32, i32
  }
  func.func @transform_4(%arg0: i32) -> (i32, i32) {
    %c0_i32 = arith.constant 0 : i32
    %c0_i32_0 = arith.constant 0 : i32
    %c0_i32_1 = arith.constant 0 : i32
    return %c0_i32, %c0_i32_0 : i32, i32
  }
  func.func @transform_5(%arg0: i32) -> (i32, i32) {
    %c0_i32 = arith.constant 0 : i32
    %c0_i32_0 = arith.constant 0 : i32
    %c0_i32_1 = arith.constant 0 : i32
    return %c0_i32, %c0_i32_0 : i32, i32
  }
  func.func @transform_6(%arg0: i32) -> (i32, i32) {
    %c0_i32 = arith.constant 0 : i32
    %c0_i32_0 = arith.constant 0 : i32
    %c0_i32_1 = arith.constant 0 : i32
    return %c0_i32, %c0_i32_0 : i32, i32
  }
  func.func @transform_7(%arg0: i32) -> (i32, i32) {
    %c0_i32 = arith.constant 0 : i32
    %c0_i32_0 = arith.constant 0 : i32
    %c0_i32_1 = arith.constant 0 : i32
    return %c0_i32, %c0_i32_0 : i32, i32
  }
  func.func @transform_8(%arg0: i32) -> (i32, i32) {
    %c0_i32 = arith.constant 0 : i32
    %c0_i32_0 = arith.constant 0 : i32
    %c0_i32_1 = arith.constant 0 : i32
    return %c0_i32, %c0_i32_0 : i32, i32
  }
  func.func @transform_9(%arg0: i32) -> (i32, i32) {
    %c0_i32 = arith.constant 0 : i32
    %c0_i32_0 = arith.constant 0 : i32
    %c0_i32_1 = arith.constant 0 : i32
    return %c0_i32, %c0_i32_0 : i32, i32
  }
  func.func @transform_10(%arg0: i32) -> (i32, i32) {
    %c0_i32 = arith.constant 0 : i32
    %c0_i32_0 = arith.constant 0 : i32
    %c0_i32_1 = arith.constant 0 : i32
    return %c0_i32, %c0_i32_0 : i32, i32
  }
  func.func @transform_11(%arg0: i32) -> (i32, i32) {
    %c0_i32 = arith.constant 0 : i32
    %c0_i32_0 = arith.constant 0 : i32
    %c0_i32_1 = arith.constant 0 : i32
    return %c0_i32, %c0_i32_0 : i32, i32
  }
  func.func @transform_12(%arg0: i32) -> (i32, i32, i32) {
    %c0_i32 = arith.constant 0 : i32
    %c0_i32_0 = arith.constant 0 : i32
    %c0_i32_1 = arith.constant 0 : i32
    %c0_i32_2 = arith.constant 0 : i32
    return %c0_i32, %c0_i32_0, %c0_i32_1 : i32, i32, i32
  }
  func.func @transform_13(%arg0: i32) -> (i32, i32) {
    %c0_i32 = arith.constant 0 : i32
    %c0_i32_0 = arith.constant 0 : i32
    %c0_i32_1 = arith.constant 0 : i32
    return %c0_i32, %c0_i32_0 : i32, i32
  }
  func.func @transform_14(%arg0: i32) -> (i32, i32, i32) {
    %c0_i32 = arith.constant 0 : i32
    %c0_i32_0 = arith.constant 0 : i32
    %c0_i32_1 = arith.constant 0 : i32
    %c0_i32_2 = arith.constant 0 : i32
    return %c0_i32, %c0_i32_0, %c0_i32_1 : i32, i32, i32
  }
  func.func @transform_15(%arg0: i32) -> (i32, i32, i32) {
    %c0_i32 = arith.constant 0 : i32
    %c0_i32_0 = arith.constant 0 : i32
    %c0_i32_1 = arith.constant 0 : i32
    %c0_i32_2 = arith.constant 0 : i32
    return %c0_i32, %c0_i32_0, %c0_i32_1 : i32, i32, i32
  }
  func.func @transform_16(%arg0: i32) -> (i32, i32, i32) {
    %c0_i32 = arith.constant 0 : i32
    %c0_i32_0 = arith.constant 0 : i32
    %c0_i32_1 = arith.constant 0 : i32
    %c0_i32_2 = arith.constant 0 : i32
    return %c0_i32, %c0_i32_0, %c0_i32_1 : i32, i32, i32
  }
  func.func @transform_17(%arg0: i32) -> (i32, i32, i32) {
    %c0_i32 = arith.constant 0 : i32
    %c0_i32_0 = arith.constant 0 : i32
    %c0_i32_1 = arith.constant 0 : i32
    %c0_i32_2 = arith.constant 0 : i32
    return %c0_i32, %c0_i32_0, %c0_i32_1 : i32, i32, i32
  }
  func.func @transform_18(%arg0: i32) -> (i32, i32) {
    %c0_i32 = arith.constant 0 : i32
    %c0_i32_0 = arith.constant 0 : i32
    %c0_i32_1 = arith.constant 0 : i32
    return %c0_i32, %c0_i32_0 : i32, i32
  }
  func.func @transform_19(%arg0: i32) -> (i32, i32) {
    %c0_i32 = arith.constant 0 : i32
    %c0_i32_0 = arith.constant 0 : i32
    %c0_i32_1 = arith.constant 0 : i32
    return %c0_i32, %c0_i32_0 : i32, i32
  }
  func.func @transform_20(%arg0: i32) -> (i32, i32) {
    %c0_i32 = arith.constant 0 : i32
    %c0_i32_0 = arith.constant 0 : i32
    %c0_i32_1 = arith.constant 0 : i32
    return %c0_i32, %c0_i32_0 : i32, i32
  }
  func.func @transform_21(%arg0: i32) -> (i32, i32) {
    %c0_i32 = arith.constant 0 : i32
    %c0_i32_0 = arith.constant 0 : i32
    %c0_i32_1 = arith.constant 0 : i32
    return %c0_i32, %c0_i32_0 : i32, i32
  }
  func.func @transform_22(%arg0: i32) -> (i32, i32) {
    %c0_i32 = arith.constant 0 : i32
    %c0_i32_0 = arith.constant 0 : i32
    %c0_i32_1 = arith.constant 0 : i32
    return %c0_i32, %c0_i32_0 : i32, i32
  }
  func.func @transform_23(%arg0: i32) -> (i32, i32) {
    %c0_i32 = arith.constant 0 : i32
    %c0_i32_0 = arith.constant 0 : i32
    %c0_i32_1 = arith.constant 0 : i32
    return %c0_i32, %c0_i32_0 : i32, i32
  }
  func.func @transform_24(%arg0: i32) -> (i32, i32) {
    %c0_i32 = arith.constant 0 : i32
    %c0_i32_0 = arith.constant 0 : i32
    %c0_i32_1 = arith.constant 0 : i32
    return %c0_i32, %c0_i32_0 : i32, i32
  }
  func.func @transform_25(%arg0: i32) -> (i32, i32) {
    %c0_i32 = arith.constant 0 : i32
    %c0_i32_0 = arith.constant 0 : i32
    %c0_i32_1 = arith.constant 0 : i32
    return %c0_i32, %c0_i32_0 : i32, i32
  }
  func.func @transform_26(%arg0: i32) -> (i32, i32, i32) {
    %c0_i32 = arith.constant 0 : i32
    %c0_i32_0 = arith.constant 0 : i32
    %c0_i32_1 = arith.constant 0 : i32
    return %arg0, %c0_i32, %c0_i32_0 : i32, i32, i32
  }
}

</mosaic_0001>

<bundles_post_ra>
// kernel: forward.1
= control target key start
LH: loop header
LB: loop body
LE: loop exit
PB: predicated region body
PF: predicated region fallthrough
CT: control target
= control target key end

     0   :  { %s10682_s0 = inlined_call_operand.vmem [shape: f32[4,16,8], index: 0, kind: input, shape index: {}]   ;;  %s10683_s1 = inlined_call_operand.vmem [shape: f32[4,32,4], index: 1, kind: input, shape index: {}]   ;;  %s10684_s2 = inlined_call_operand.hbm [shape: bf16[32,128], index: 2, kind: input, shape index: {}]   ;;  %s10685_s3 = inlined_call_operand.vmem [shape: bf16[128,16], index: 3, kind: input, shape index: {}]   ;;  %s10686_s4 = inlined_call_operand.hbm [shape: f32[16,128], index: 4, kind: input, shape index: {}]   ;;  %s10687_s5 = inlined_call_operand.hbm [shape: bf16[16,32], index: 5, kind: input, shape index: {}]   ;;  %s10688_s6 = inlined_call_operand.hbm [shape: bf16[8,128], index: 6, kind: input, shape index: {}]   ;;  %s10689_s7 = inlined_call_operand.hbm [shape: f32[1,128], index: 7, kind: input, shape index: {}]   ;;  %s10690_s8 = inlined_call_operand.hbm [shape: bf16[4,128], index: 8, kind: input, shape index: {}]   ;;  %s10691_s9 = inlined_call_operand.hbm [shape: f32[1,128], index: 9, kind: input, shape index: {}]   ;;  %s10692_s10 = inlined_call_operand.hbm [shape: bf16[128,128], index: 10, kind: input, shape index: {}]   ;;  %s10693_s11 = inlined_call_operand.hbm [shape: f32[1,128], index: 11, kind: input, shape index: {}]   ;;  %s10694_s12 = inlined_call_operand.hbm [shape: bf16[2,8,128], index: 12, kind: input, shape index: {}]   ;;  %s10695_s13 = inlined_call_operand.hbm [shape: bf16[8,128], index: 13, kind: input, shape index: {}]   ;;  %s10696_s14 = inlined_call_operand.hbm [shape: bf16[2,512,128], index: 14, kind: input, shape index: {}]   ;;  %s10697_s15 = inlined_call_operand.hbm [shape: f32[2,1,128], index: 15, kind: input, shape index: {}]   ;;  %s10698_s16 = inlined_call_operand.hbm [shape: f32[2,1,128], index: 16, kind: input, shape index: {}]   ;;  %s10699_s17 = inlined_call_operand.hbm [shape: f32[2,1,128], index: 17, kind: input, shape index: {}]   ;;  %s10700_s18 = inlined_call_operand.hbm [shape: bf16[384,512], index: 18, kind: input, shape index: {}]   ;;  %s10701_s19 = inlined_call_operand.hbm [shape: f32[1,512], index: 19, kind: input, shape index: {}]   ;;  %s10702_s20 = inlined_call_operand.vmem [shape: bf16[384,128], index: 20, kind: input, shape index: {}]   ;;  %s10703_s21 = inlined_call_operand.hbm [shape: f32[1,128], index: 21, kind: input, shape index: {}]   ;;  %s10704_s22 = inlined_call_operand.hbm [shape: bf16[128,128], index: 22, kind: input, shape index: {}]   ;;  %s10705_s23 = inlined_call_operand.hbm [shape: f32[1,128], index: 23, kind: input, shape index: {}]   ;;  %s10706_s24 = inlined_call_operand.vmem [shape: bf16[128,256], index: 24, kind: input, shape index: {}]   ;;  %s10707_s25 = inlined_call_operand.hbm [shape: f32[1,256], index: 25, kind: input, shape index: {}]   ;;  %s10708_s26 = inlined_call_operand.vmem [shape: f32[4,1,256], index: 26, kind: output, shape index: {}]  }
   0x1   :  { %10826 = sst [smem:[#allocation111_spill]] %s10682_s0 }
   0x2   :  { %10827 = sst [smem:[#allocation112_spill]] %s10683_s1 }
   0x3   :  { %10828 = sst [smem:[#allocation113_spill]] %s10684_s2 }
   0x4   :  { %10829 = sst [smem:[#allocation114_spill]] %s10685_s3 }
   0x5   :  { %10830 = sst [smem:[#allocation115_spill]] %s10686_s4 }
   0x6   :  { %10831 = sst [smem:[#allocation116_spill]] %s10687_s5 }
   0x7   :  { %10832 = sst [smem:[#allocation117_spill]] %s10688_s6 }
   0x8   :  { %10833 = sst [smem:[#allocation118_spill]] %s10689_s7 }
   0x9   :  { %10834 = sst [smem:[#allocation119_spill]] %s10690_s8 }
   0xa   :  { %10835 = sst [smem:[#allocation120_spill]] %s10691_s9 }
   0xb   :  { %10836 = sst [smem:[#allocation121_spill]] %s10692_s10 }
   0xc   :  { %10837 = sst [smem:[#allocation122_spill]] %s10708_s26 }
   0xd   :  { %31 = vsyncpa [#allocation3], 0 }
   0xe   :  { %32 = vsyncpa [#allocation5], 0 }
   0xf   :  { %33 = vsyncpa [#allocation8], 0 }
  0x10   :  { %34 = vsyncpa [#allocation11], 0 }
  0x11   :  { %35 = vsyncpa [#allocation14], 0 }
  0x12   :  { %36 = vsyncpa [#allocation17], 0 }
  0x13   :  { %37 = vsyncpa [#allocation20], 0 }
  0x14   :  { %38 = vsyncpa [#allocation23], 0 }
  0x15   :  { %39 = vsyncpa [#allocation26], 0 }
  0x16   :  { %40 = vsyncpa [#allocation29], 0 }
  0x17   :  { %41 = vsyncpa [#allocation32], 0  ;;  %s9080_s27 = smov 0  }
  0x18 LB: > { %10838 = sst [smem:[#allocation45_spill]] %s8905_s27  ;;  %s8907_s3 = smov [#allocation4]   ;;  %s8905_s27 = sphi %s9080_s27, %s47_s27  }
  0x19   : > { %s662_s7 = sshll.u32 %s8907_s3, 4  ;;  %s9086_s28 = sadd.s32 4294967295, %s8905_s27   ;;  %s663_s7 = int_to_ptr.vmem [resolvable:$true] %s662_s7 }
  0x1a   : > { %p6800_p0 = scmp.ge.s32.totalorder %s8905_s27, 1  ;;  %p634_p1 = scmp.lt.s32.totalorder %s8905_s27, 5 }
  0x1b   : > { %p10710_p2 = scmp.eq.s32.totalorder %s9086_s28, 0  ;;  %s8908_s4 = smov [#allocation7]  }
  0x1c   : > { %p9091_p3 = pnand %p6800_p0, %p634_p1  ;;  %s689_s29 = sshll.u32 %s8908_s4, 4  ;;  %s690_s29 = int_to_ptr.vmem [resolvable:$true] %s689_s29 }
  0x1d   : > { %s8909_s9 = smov [#allocation10]   ;;  %s8320_s5 = scalar_lea.vmem %s663_s7, 256 }
  0x1e   : > { %s10839_s8 = scalar_select %p9091_p3, 1, 0 }
  0x1f   : > { %p7673_p4 = pneg %p9091_p3  ;;  %s711_s30 = sshll.u32 %s8909_s9, 4  ;;  %s9103_s30 = int_to_ptr.vmem [resolvable:$true] %s711_s30 }
  0x20   : > { %p8321_p7 = scmp.ne.s32.totalorder %s663_s7, %s8320_s5  ;;  %p8328_p10 = scmp.lt.s32.totalorder %s663_s7, %s663_s7 }
  0x21   : > { %p9099_p5 = pnand %p10710_p2, %p7673_p4  ;;  %p8329_p11 = scmp.lt.s32.totalorder %s8320_s5, %s8320_s5 }
  0x23   : > { %p9107_p6 = pneg %p9099_p5  ;;  %p8330_p12 = por %p8329_p11, %p8328_p10 }
  0x25   : > { %p8323_p8 = pnand %p8321_p7, %p9107_p6 }
  0x27   : > { %p8324_p9 = pneg %p8323_p8 }
  0x29   : > { %p8331_p13 = pnand %p8330_p12, %p8324_p9 }
  0x2b   : > { %8334 = shalt.err (!%p8331_p13)
}
  0x2c   : > { %s8910_s10 = smov 128   ;;  %s8911_s6 = smov 8  }
  0x2d   : > { %s10842_s4 = sld [smem:[#allocation115_spill]]  ;;  %s8346_s9 = scalar_lea.vmem %s690_s29, 64 }
  0x2e   : > { %p8347_p0 = scmp.ne.s32.totalorder %s690_s29, %s8346_s9  ;;  %p8354_p7 = scmp.lt.s32.totalorder %s690_s29, %s690_s29 }
  0x2f   : > { %p8355_p8 = scmp.lt.s32.totalorder %s8346_s9, %s8346_s9 }
  0x30   : > { %p8349_p1 = pnand %p8347_p0, %p9107_p6 }
  0x31   : > { %p8356_p2 = por %p8355_p8, %p8354_p7 }
  0x32   : > { %p8350_p4 = pneg %p8349_p1 }
  0x33   : > { %7679 = dma.hbm_to_vmem [thread:$0]  (!%p9099_p5), %s10842_s4, 256, %s663_s7, [#allocation5], %s8910_s10, %s8910_s10, %s8911_s6  }
  0x34   : > { %p8357_p10 = pnand %p8356_p2, %p8350_p4 }
  0x36   : > { %8360 = shalt.err (!%p8357_p10)
}
  0x37   : > { %s10843_s26 = sld [smem:[#allocation117_spill]]  ;;  %s8372_s7 = scalar_lea.vmem %s9103_s30, 32 }
  0x38   : > { %p8373_p9 = scmp.ne.s32.totalorder %s9103_s30, %s8372_s7  ;;  %p8380_p13 = scmp.lt.s32.totalorder %s9103_s30, %s9103_s30 }
  0x39   : > { %p8381_p0 = scmp.lt.s32.totalorder %s8372_s7, %s8372_s7 }
  0x3a   : > { %p8375_p11 = pnand %p8373_p9, %p9107_p6 }
  0x3b   : > { %p8382_p2 = por %p8381_p0, %p8380_p13 }
  0x3c   : > { %p8376_p12 = pneg %p8375_p11 }
  0x3d   : > { %7685 = dma.hbm_to_vmem [thread:$0]  (!%p9099_p5), %s10843_s26, 64, %s690_s29, [#allocation8]  }
  0x3e   : > { %p8383_p1 = pnand %p8382_p2, %p8376_p12 }
  0x40   : > { %8386 = shalt.err (!%p8383_p1)
}
  0x41   : > { %s10844_s6 = sld [smem:[#allocation119_spill]]  ;;  %s8912_s26 = smov [#allocation13]  }
  0x42   : > { %s732_s29 = sshll.u32 %s8912_s26, 4  ;;  %s8913_s1 = smov [#allocation16]   ;;  %s733_s29 = int_to_ptr.vmem [resolvable:$true] %s732_s29 }
  0x43   : > { %s756_s3 = sshll.u32 %s8913_s1, 4  ;;  %s8398_s4 = scalar_lea.vmem %s733_s29, 1024  ;;  %s757_s3 = int_to_ptr.vmem [resolvable:$true] %s756_s3 }
  0x44   : > { %p8399_p4 = scmp.ne.s32.totalorder %s733_s29, %s8398_s4  ;;  %p8406_p10 = scmp.lt.s32.totalorder %s733_s29, %s733_s29 }
  0x45   : > { %p8407_p9 = scmp.lt.s32.totalorder %s8398_s4, %s8398_s4 }
  0x46   : > { %p8401_p7 = pnand %p8399_p4, %p9107_p6 }
  0x47   : > { %7691 = dma.hbm_to_vmem [thread:$0]  (!%p9099_p5), %s10844_s6, 32, %s9103_s30, [#allocation11]  }
  0x48   : > { %p8402_p8 = pneg %p8401_p7  ;;  %p8408_p11 = por %p8407_p9, %p8406_p10 }
  0x4a   : > { %p8409_p12 = pnand %p8408_p11, %p8402_p8 }
  0x4c   : > { %8412 = shalt.err (!%p8409_p12)
}
  0x4d   : > { %s10714_s9 = smov 64   ;;  %s10719_s30 = smov 4  }
  0x4e   : > { %s10845_s27 = sld [smem:[#allocation121_spill]]  ;;  %s8424_s10 = scalar_lea.vmem %s757_s3, 128 }
  0x4f   : > { %p8425_p13 = scmp.ne.s32.totalorder %s757_s3, %s8424_s10  ;;  %p8432_p1 = scmp.lt.s32.totalorder %s757_s3, %s757_s3 }
  0x50   : > { %p8433_p4 = scmp.lt.s32.totalorder %s8424_s10, %s8424_s10 }
  0x51   : > { %p8427_p0 = pnand %p8425_p13, %p9107_p6 }
  0x52   : > { %p8434_p7 = por %p8433_p4, %p8432_p1 }
  0x53   : > { %p8428_p2 = pneg %p8427_p0 }
  0x54   : > { %7697 = dma.hbm_to_vmem [thread:$0]  (!%p9099_p5), %s10845_s27, 1024, %s733_s29, [#allocation14], %s10714_s9, %s10714_s9, %s10719_s30  }
  0x55   : > { %p8435_p8 = pnand %p8434_p7, %p8428_p2 }
  0x57   : > { %8438 = shalt.err (!%p8435_p8)
}
  0x58   : > { %7703 = dma.hbm_to_vmem [thread:$0]  (!%p9099_p5), %s10694_s12, 128, %s757_s3, [#allocation17], %s10714_s9, %s10714_s9, %s10719_s30  }
  0x59   : > { %s8916_s29 = smov [#allocation19]  }
  0x5a   : > { %s780_s1 = sshll.u32 %s8916_s29, 4  ;;  %s781_s1 = int_to_ptr.vmem [resolvable:$true] %s780_s1 }
  0x5b   : > { %s8450_s4 = scalar_lea.vmem %s781_s1, 8192  ;;  %p8458_p12 = scmp.lt.s32.totalorder %s781_s1, %s781_s1 }
  0x5c   : > { %p8451_p10 = scmp.ne.s32.totalorder %s781_s1, %s8450_s4  ;;  %p8459_p13 = scmp.lt.s32.totalorder %s8450_s4, %s8450_s4 }
  0x5e   : > { %p8453_p9 = pnand %p8451_p10, %p9107_p6  ;;  %p8460_p0 = por %p8459_p13, %p8458_p12 }
  0x60   : > { %p8454_p11 = pneg %p8453_p9 }
  0x62   : > { %p8461_p2 = pnand %p8460_p0, %p8454_p11 }
  0x64   : > { %8464 = shalt.err (!%p8461_p2)
}
  0x65   : > { %7709 = dma.hbm_to_vmem [thread:$0]  (!%p9099_p5), %s10696_s14, 8192, %s781_s1, [#allocation20], %s10714_s9, %s10714_s9, %s10719_s30  }
  0x66   : > { %s8917_s7 = smov [#allocation22]   ;;  %s8918_s10 = smov [#allocation25]  }
  0x67   : > { %s806_s27 = sshll.u32 %s8917_s7, 4  ;;  %s832_s6 = sshll.u32 %s8918_s10, 4  ;;  %s807_s27 = int_to_ptr.vmem [resolvable:$true] %s806_s27  ;;  %s833_s6 = int_to_ptr.vmem [resolvable:$true] %s832_s6 }
  0x68   : > { %s8476_s26 = scalar_lea.vmem %s807_s27, 32  ;;  %p8484_p8 = scmp.lt.s32.totalorder %s807_s27, %s807_s27 }
  0x69   : > { %p8477_p1 = scmp.ne.s32.totalorder %s807_s27, %s8476_s26  ;;  %p8485_p10 = scmp.lt.s32.totalorder %s8476_s26, %s8476_s26 }
  0x6b   : > { %p8479_p4 = pnand %p8477_p1, %p9107_p6  ;;  %p8486_p9 = por %p8485_p10, %p8484_p8 }
  0x6d   : > { %p8480_p7 = pneg %p8479_p4 }
  0x6f   : > { %p8487_p11 = pnand %p8486_p9, %p8480_p7 }
  0x71   : > { %8490 = shalt.err (!%p8487_p11)
}
  0x72   : > { %s10717_s29 = smov 16   ;;  %s10712_s4 = smov 1  }
  0x73   : > { %7715 = dma.hbm_to_vmem [thread:$0]  (!%p9099_p5), %s10698_s16, 32, %s807_s27, [#allocation23], %s10717_s29, %s10717_s29, %s10712_s4  }
  0x74   : > { %s8502_s3 = scalar_lea.vmem %s833_s6, 12288  ;;  %p8510_p2 = scmp.lt.s32.totalorder %s833_s6, %s833_s6 }
  0x75   : > { %p8503_p12 = scmp.ne.s32.totalorder %s833_s6, %s8502_s3  ;;  %p8511_p1 = scmp.lt.s32.totalorder %s8502_s3, %s8502_s3 }
  0x77   : > { %p8505_p13 = pnand %p8503_p12, %p9107_p6  ;;  %p8512_p4 = por %p8511_p1, %p8510_p2 }
  0x79   : > { %p8506_p0 = pneg %p8505_p13 }
  0x7b   : > { %p8513_p7 = pnand %p8512_p4, %p8506_p0 }
  0x7d   : > { %8516 = shalt.err (!%p8513_p7)
}
  0x7e   : > { %s8921_s7 = smov 256   ;;  %s8922_s27 = smov [#allocation28]  }
  0x7f   : > { %7721 = dma.hbm_to_vmem [thread:$0]  (!%p9099_p5), %s10700_s18, 12288, %s833_s6, [#allocation26], %s8921_s7, %s8921_s7, %s10717_s29  }
  0x80   : > { %s860_s1 = sshll.u32 %s8922_s27, 4  ;;  %s8923_s5 = smov [#allocation31]   ;;  %s861_s1 = int_to_ptr.vmem [resolvable:$true] %s860_s1 }
  0x81   : > { %s884_s4 = sshll.u32 %s8923_s5, 4  ;;  %s8528_s9 = scalar_lea.vmem %s861_s1, 16  ;;  %s885_s4 = int_to_ptr.vmem [resolvable:$true] %s884_s4 }
  0x82   : > { %p8529_p8 = scmp.ne.s32.totalorder %s861_s1, %s8528_s9  ;;  %s8535_s3 = scalar_lea.vmem %s861_s1, 32 }
  0x83   : > { %p8536_p11 = scmp.lt.s32.totalorder %s861_s1, %s861_s1  ;;  %p8537_p12 = scmp.lt.s32.totalorder %s8535_s3, %s8528_s9 }
  0x84   : > { %p8531_p10 = pnand %p8529_p8, %p9107_p6 }
  0x85   : > { %p8538_p13 = por %p8537_p12, %p8536_p11 }
  0x86   : > { %p8532_p9 = pneg %p8531_p10 }
  0x88   : > { %p8539_p0 = pnand %p8538_p13, %p8532_p9 }
  0x8a   : > { %8542 = shalt.err (!%p8539_p0)
}
  0x8b   : > { %7727 = dma.hbm_to_vmem [thread:$0]  (!%p9099_p5), %s10703_s21, 16, %s861_s1, [#allocation29]  }
  0x8c   : > { %s8554_s10 = scalar_lea.vmem %s885_s4, 16  ;;  %s8561_s26 = scalar_lea.vmem %s885_s4, 32 }
  0x8d   : > { %p8555_p2 = scmp.ne.s32.totalorder %s885_s4, %s8554_s10  ;;  %p8562_p7 = scmp.lt.s32.totalorder %s885_s4, %s885_s4 }
  0x8e   : > { %p8563_p8 = scmp.lt.s32.totalorder %s8561_s26, %s8554_s10 }
  0x8f   : > { %p8557_p1 = pnand %p8555_p2, %p9107_p6 }
  0x90   : > { %p8564_p10 = por %p8563_p8, %p8562_p7 }
  0x91   : > { %p8558_p4 = pneg %p8557_p1 }
  0x93   : > { %p8565_p3 = pnand %p8564_p10, %p8558_p4 }
  0x95   : > { %8568 = shalt.err (!%p8565_p3)
}
  0x96   : > { %7733 = dma.hbm_to_vmem [thread:$0]  (!%p9099_p5), %s10705_s23, 16, %s885_s4, [#allocation32]  }
  0x97   : > { %s8924_s5 = smov [#allocation2]   ;;  %s8925_s3 = smov [#allocation6]  }
  0x98   : > { %s646_s1 = sshll.u32 %s8924_s5, 4  ;;  %s675_s6 = sshll.u32 %s8925_s3, 4  ;;  %s647_s1 = int_to_ptr.vmem [resolvable:$true] %s646_s1  ;;  %s676_s6 = int_to_ptr.vmem [resolvable:$true] %s675_s6 }
  0x99   : > { %s8580_s7 = scalar_lea.vmem %s647_s1, 256  ;;  %p8588_p13 = scmp.lt.s32.totalorder %s647_s1, %s647_s1 }
  0x9a   : > { %p8581_p9 = scmp.ne.s32.totalorder %s647_s1, %s8580_s7  ;;  %p8589_p3 = scmp.lt.s32.totalorder %s8580_s7, %s8580_s7 }
  0x9c   : > { %p8583_p11 = pnand %p8581_p9, %p9107_p6  ;;  %p8590_p0 = por %p8589_p3, %p8588_p13 }
  0x9e   : > { %p8584_p12 = pneg %p8583_p11 }
  0xa0   : > { %p8591_p2 = pnand %p8590_p0, %p8584_p12 }
  0xa2   : > { %8594 = shalt.err (!%p8591_p2)
}
  0xa3   : > { %s10846_s4 = smov 64   ;;  %s10847_s9 = sld [smem:[#allocation113_spill]] }
  0xa4   : > { %s8606_s27 = scalar_lea.vmem %s676_s6, 128  ;;  %p8614_p8 = scmp.lt.s32.totalorder %s676_s6, %s676_s6 }
  0xa5   : > { %p8607_p1 = scmp.ne.s32.totalorder %s676_s6, %s8606_s27  ;;  %p8615_p10 = scmp.lt.s32.totalorder %s8606_s27, %s8606_s27 }
  0xa7   : > { %p8609_p4 = pnand %p8607_p1, %p9107_p6  ;;  %p8616_p9 = por %p8615_p10, %p8614_p8 }
  0xa9   : > { %7676 = dma.hbm_to_vmem [thread:$0]  (!%p9099_p5), %s10847_s9, 256, %s647_s1, [#allocation3], %s10846_s4, %s10846_s4, %s10719_s30  }
  0xaa   : > { %p8610_p7 = pneg %p8609_p4 }
  0xac   : > { %p8617_p11 = pnand %p8616_p9, %p8610_p7 }
  0xae   : > { %8620 = shalt.err (!%p8617_p11)
}
  0xaf   : > { %s10848_s7 = sld [smem:[#allocation116_spill]]  ;;  %s8926_s1 = smov [#allocation9]  }
  0xb0   : > { %s700_s10 = sshll.u32 %s8926_s1, 4  ;;  %s8927_s26 = smov [#allocation12]   ;;  %s701_s10 = int_to_ptr.vmem [resolvable:$true] %s700_s10 }
  0xb1   : > { %s722_s9 = sshll.u32 %s8927_s26, 4  ;;  %s8632_s27 = scalar_lea.vmem %s701_s10, 16  ;;  %s723_s9 = int_to_ptr.vmem [resolvable:$true] %s722_s9 }
  0xb2   : > { %p8633_p12 = scmp.ne.s32.totalorder %s701_s10, %s8632_s27  ;;  %s8639_s29 = scalar_lea.vmem %s701_s10, 32 }
  0xb3   : > { %p8640_p0 = scmp.lt.s32.totalorder %s701_s10, %s701_s10  ;;  %p8641_p2 = scmp.lt.s32.totalorder %s8639_s29, %s8632_s27 }
  0xb4   : > { %p8635_p13 = pnand %p8633_p12, %p9107_p6 }
  0xb5   : > { %7682 = dma.hbm_to_vmem [thread:$0]  (!%p9099_p5), %s10848_s7, 128, %s676_s6, [#allocation5], %s10846_s4, %s10846_s4, %s10719_s30  }
  0xb6   : > { %p8636_p3 = pneg %p8635_p13  ;;  %p8642_p1 = por %p8641_p2, %p8640_p0 }
  0xb8   : > { %p8643_p4 = pnand %p8642_p1, %p8636_p3 }
  0xba   : > { %8646 = shalt.err (!%p8643_p4)
}
  0xbb   : > { %s10849_s3 = sld [smem:[#allocation118_spill]]  ;;  %s8658_s7 = scalar_lea.vmem %s723_s9, 16 }
  0xbc   : > { %p8659_p7 = scmp.ne.s32.totalorder %s723_s9, %s8658_s7  ;;  %s8665_s1 = scalar_lea.vmem %s723_s9, 32 }
  0xbd   : > { %p8666_p9 = scmp.lt.s32.totalorder %s723_s9, %s723_s9  ;;  %p8667_p11 = scmp.lt.s32.totalorder %s8665_s1, %s8658_s7 }
  0xbe   : > { %p8661_p8 = pnand %p8659_p7, %p9107_p6 }
  0xbf   : > { %p8668_p12 = por %p8667_p11, %p8666_p9 }
  0xc0   : > { %p8662_p10 = pneg %p8661_p8 }
  0xc1   : > { %7688 = dma.hbm_to_vmem [thread:$0]  (!%p9099_p5), %s10849_s3, 16, %s701_s10, [#allocation8]  }
  0xc2   : > { %p8669_p13 = pnand %p8668_p12, %p8662_p10 }
  0xc4   : > { %8672 = shalt.err (!%p8669_p13)
}
  0xc5   : > { %s10850_s27 = sld [smem:[#allocation120_spill]]  ;;  %s8928_s6 = smov [#allocation15]  }
  0xc6   : > { %s746_s10 = sshll.u32 %s8928_s6, 4  ;;  %s8929_s5 = smov [#allocation18]   ;;  %s747_s10 = int_to_ptr.vmem [resolvable:$true] %s746_s10 }
  0xc7   : > { %s770_s3 = sshll.u32 %s8929_s5, 4  ;;  %s8684_s30 = scalar_lea.vmem %s747_s10, 16  ;;  %s771_s3 = int_to_ptr.vmem [resolvable:$true] %s770_s3 }
  0xc8   : > { %p8685_p3 = scmp.ne.s32.totalorder %s747_s10, %s8684_s30  ;;  %s8691_s7 = scalar_lea.vmem %s747_s10, 32 }
  0xc9   : > { %p8692_p1 = scmp.lt.s32.totalorder %s747_s10, %s747_s10  ;;  %p8693_p4 = scmp.lt.s32.totalorder %s8691_s7, %s8684_s30 }
  0xca   : > { %p8687_p0 = pnand %p8685_p3, %p9107_p6 }
  0xcb   : > { %7694 = dma.hbm_to_vmem [thread:$0]  (!%p9099_p5), %s10850_s27, 16, %s723_s9, [#allocation11]  }
  0xcc   : > { %p8688_p2 = pneg %p8687_p0  ;;  %p8694_p7 = por %p8693_p4, %p8692_p1 }
  0xce   : > { %p8695_p8 = pnand %p8694_p7, %p8688_p2 }
  0xd0   : > { %8698 = shalt.err (!%p8695_p8)
}
  0xd1   : > { %7700 = dma.hbm_to_vmem [thread:$0]  (!%p9099_p5), %s10693_s11, 16, %s747_s10, [#allocation14]  }
  0xd2   : > { %s8710_s29 = scalar_lea.vmem %s771_s3, 64  ;;  %p8718_p12 = scmp.lt.s32.totalorder %s771_s3, %s771_s3 }
  0xd3   : > { %p8711_p10 = scmp.ne.s32.totalorder %s771_s3, %s8710_s29  ;;  %p8719_p13 = scmp.lt.s32.totalorder %s8710_s29, %s8710_s29 }
  0xd5   : > { %p8713_p9 = pnand %p8711_p10, %p9107_p6  ;;  %p8720_p3 = por %p8719_p13, %p8718_p12 }
  0xd7   : > { %p8714_p11 = pneg %p8713_p9 }
  0xd9   : > { %p8721_p0 = pnand %p8720_p3, %p8714_p11 }
  0xdb   : > { %8724 = shalt.err (!%p8721_p0)
}
  0xdc   : > { %7706 = dma.hbm_to_vmem [thread:$0]  (!%p9099_p5), %s10695_s13, 64, %s771_s3, [#allocation17]  }
  0xdd   : > { %s8930_s27 = smov [#allocation21]   ;;  %s8931_s10 = smov [#allocation24]  }
  0xde   : > { %s793_s6 = sshll.u32 %s8930_s27, 4  ;;  %s819_s5 = sshll.u32 %s8931_s10, 4  ;;  %s794_s6 = int_to_ptr.vmem [resolvable:$true] %s793_s6  ;;  %s820_s5 = int_to_ptr.vmem [resolvable:$true] %s819_s5 }
  0xdf   : > { %s8736_s7 = scalar_lea.vmem %s794_s6, 32  ;;  %p8744_p7 = scmp.lt.s32.totalorder %s794_s6, %s794_s6 }
  0xe0   : > { %p8737_p2 = scmp.ne.s32.totalorder %s794_s6, %s8736_s7  ;;  %p8745_p8 = scmp.lt.s32.totalorder %s8736_s7, %s8736_s7 }
  0xe2   : > { %p8739_p1 = pnand %p8737_p2, %p9107_p6  ;;  %p8746_p10 = por %p8745_p8, %p8744_p7 }
  0xe4   : > { %p8740_p4 = pneg %p8739_p1 }
  0xe6   : > { %p8747_p9 = pnand %p8746_p10, %p8740_p4 }
  0xe8   : > { %8750 = shalt.err (!%p8747_p9)
}
  0xe9   : > { %s10851_s9 = smov 1   ;;  %s10852_s3 = smov 16  }
  0xea   : > { %7712 = dma.hbm_to_vmem [thread:$0]  (!%p9099_p5), %s10697_s15, 32, %s794_s6, [#allocation20], %s10852_s3, %s10852_s3, %s10851_s9  }
  0xeb   : > { %s8762_s30 = scalar_lea.vmem %s820_s5, 32  ;;  %p8770_p3 = scmp.lt.s32.totalorder %s820_s5, %s820_s5 }
  0xec   : > { %p8763_p11 = scmp.ne.s32.totalorder %s820_s5, %s8762_s30  ;;  %p8771_p0 = scmp.lt.s32.totalorder %s8762_s30, %s8762_s30 }
  0xee   : > { %p8765_p12 = pnand %p8763_p11, %p9107_p6  ;;  %p8772_p2 = por %p8771_p0, %p8770_p3 }
  0xf0   : > { %p8766_p13 = pneg %p8765_p12 }
  0xf2   : > { %p8773_p1 = pnand %p8772_p2, %p8766_p13 }
  0xf4   : > { %8776 = shalt.err (!%p8773_p1)
}
  0xf5   : > { %7718 = dma.hbm_to_vmem [thread:$0]  (!%p9099_p5), %s10699_s17, 32, %s820_s5, [#allocation23], %s10852_s3, %s10852_s3, %s10851_s9  }
  0xf6   : > { %s8932_s6 = smov [#allocation27]   ;;  %s8933_s7 = smov [#allocation30]  }
  0xf7   : > { %s846_s10 = sshll.u32 %s8932_s6, 4  ;;  %s870_s1 = sshll.u32 %s8933_s7, 4  ;;  %s847_s10 = int_to_ptr.vmem [resolvable:$true] %s846_s10  ;;  %s871_s1 = int_to_ptr.vmem [resolvable:$true] %s870_s1 }
  0xf8   : > { %s8788_s29 = scalar_lea.vmem %s847_s10, 64  ;;  %p8796_p10 = scmp.lt.s32.totalorder %s847_s10, %s847_s10 }
  0xf9   : > { %p8789_p4 = scmp.ne.s32.totalorder %s847_s10, %s8788_s29  ;;  %p8797_p9 = scmp.lt.s32.totalorder %s8788_s29, %s8788_s29 }
  0xfb   : > { %p8791_p7 = pnand %p8789_p4, %p9107_p6  ;;  %p8798_p11 = por %p8797_p9, %p8796_p10 }
  0xfd   : > { %p8792_p8 = pneg %p8791_p7 }
  0xff   : > { %p8799_p12 = pnand %p8798_p11, %p8792_p8 }
 0x101   : > { %8802 = shalt.err (!%p8799_p12)
}
 0x102   : > { %7724 = dma.hbm_to_vmem [thread:$0]  (!%p9099_p5), %s10701_s19, 64, %s847_s10, [#allocation26]  }
 0x103   : > { %s8814_s9 = scalar_lea.vmem %s871_s1, 1024  ;;  %p8822_p2 = scmp.lt.s32.totalorder %s871_s1, %s871_s1 }
 0x104   : > { %p8815_p13 = scmp.ne.s32.totalorder %s871_s1, %s8814_s9  ;;  %p8823_p1 = scmp.lt.s32.totalorder %s8814_s9, %s8814_s9 }
 0x106   : > { %p8817_p3 = pnand %p8815_p13, %p9107_p6  ;;  %p8824_p4 = por %p8823_p1, %p8822_p2 }
 0x108   : > { %p8818_p0 = pneg %p8817_p3 }
 0x10a   : > { %p8825_p7 = pnand %p8824_p4, %p8818_p0 }
 0x10c   : > { %8828 = shalt.err (!%p8825_p7)
}
 0x10d   : > { %s10853_s3 = smov 4   ;;  %s8934_s6 = smov [#allocation33]  }
 0x10e   : > { %7730 = dma.hbm_to_vmem [thread:$0]  (!%p9099_p5), %s10704_s22, 1024, %s871_s1, [#allocation29], %s10846_s4, %s10846_s4, %s10853_s3  }
 0x10f   : > { %s898_s10 = sshll.u32 %s8934_s6, 4  ;;  %s899_s10 = int_to_ptr.vmem [resolvable:$true] %s898_s10 }
 0x110   : > { %s8840_s7 = scalar_lea.vmem %s899_s10, 32  ;;  %p8848_p11 = scmp.lt.s32.totalorder %s899_s10, %s899_s10 }
 0x111   : > { %p8841_p8 = scmp.ne.s32.totalorder %s899_s10, %s8840_s7  ;;  %p8849_p12 = scmp.lt.s32.totalorder %s8840_s7, %s8840_s7 }
 0x113   : > { %p8843_p10 = pnand %p8841_p8, %p9107_p6  ;;  %p8850_p13 = por %p8849_p12, %p8848_p11 }
 0x115   : > { %p8844_p9 = pneg %p8843_p10 }
 0x117   : > { %p8851_p3 = pnand %p8850_p13, %p8844_p9 }
 0x119   : > { %8854 = shalt.err (!%p8851_p3)
}
 0x11a   : > { %7736 = dma.hbm_to_vmem [thread:$0]  (!%p9099_p5), %s10707_s25, 32, %s899_s10, [#allocation32]  }
 0x11b   : > { %p10854_p0 = scmp.ne.s32.totalorder %s10839_s8, 0 }
 0x11d   : > { %927 = sbr.rel (%p10854_p0) target bundleno = 7271 (0x1c67), region = 124 }
 0x122   : > { %p10855_p2 = scmp.eq.s32.totalorder %s9086_s28, 0 }
 0x124   : > { %8860 = dma.done.wait (%p10855_p2), [#allocation3], 256   ;;  %p10856_p6 = pmov %p10855_p2 }
 0x125   : > { %p10857_p1 = pmov %p10855_p2 }
 0x126   : > { %8862 = vsyncadd (%p10856_p6), [#allocation3], 4294967040 }
 0x127   : > { %8864 = dma.done.wait (%p10857_p1), [#allocation5], 384   ;;  %p10858_p4 = pmov %p10857_p1 }
 0x128   : > { %p10859_p7 = pmov %p10857_p1 }
 0x129   : > { %8866 = vsyncadd (%p10858_p4), [#allocation5], 4294966912 }
 0x12a   : > { %8868 = dma.done.wait (%p10859_p7), [#allocation8], 80   ;;  %p10860_p5 = pmov %p10857_p1 }
 0x12b   : > { %p10861_p8 = pmov %p10857_p1 }
 0x12c   : > { %8870 = vsyncadd (%p10860_p5), [#allocation8], 4294967216 }
 0x12d   : > { %8872 = dma.done.wait (%p10861_p8), [#allocation11], 48   ;;  %p10862_p10 = pmov %p10857_p1 }
 0x12e   : > { %p10863_p9 = pmov %p10857_p1 }
 0x12f   : > { %8874 = vsyncadd (%p10862_p10), [#allocation11], 4294967248 }
 0x130   : > { %8876 = dma.done.wait (%p10863_p9), [#allocation14], 1040   ;;  %p10864_p11 = pmov %p10857_p1 }
 0x131   : > { %p10865_p12 = pmov %p10857_p1 }
 0x132   : > { %8878 = vsyncadd (%p10864_p11), [#allocation14], 4294966256 }
 0x133   : > { %8880 = dma.done.wait (%p10865_p12), [#allocation17], 192   ;;  %p10866_p13 = pmov %p10857_p1 }
 0x134   : > { %p10867_p3 = pmov %p10857_p1 }
 0x135   : > { %8882 = vsyncadd (%p10866_p13), [#allocation17], 4294967104 }
 0x136   : > { %8884 = dma.done.wait (%p10867_p3), [#allocation20], 8224   ;;  %p10868_p0 = pmov %p10857_p1 }
 0x138   : > { %8886 = vsyncadd (%p10868_p0), [#allocation20], 4294959072  ;;  %p10869_p2 = pmov %p10868_p0 }
 0x139   : > { %p10870_p6 = pmov %p10868_p0 }
 0x13a   : > { %8888 = dma.done.wait (%p10869_p2), [#allocation23], 64  }
 0x13b   : > { %8890 = vsyncadd (%p10870_p6), [#allocation23], 4294967232  ;;  %p10871_p1 = pmov %p10868_p0 }
 0x13c   : > { %p10872_p4 = pmov %p10868_p0 }
 0x13d   : > { %8892 = dma.done.wait (%p10871_p1), [#allocation26], 12352  }
 0x13e   : > { %8894 = vsyncadd (%p10872_p4), [#allocation26], 4294954944  ;;  %p10873_p7 = pmov %p10868_p0 }
 0x13f   : > { %p10874_p5 = pmov %p10868_p0 }
 0x140   : > { %8896 = dma.done.wait (%p10873_p7), [#allocation29], 1040  }
 0x141   : > { %8898 = vsyncadd (%p10874_p5), [#allocation29], 4294966256  ;;  %p10875_p8 = pmov %p10868_p0 }
 0x142   : > { %p10876_p10 = pmov %p10868_p0 }
 0x143   : > { %8900 = dma.done.wait (%p10875_p8), [#allocation32], 48  }
 0x144   : > { %8902 = vsyncadd (%p10876_p10), [#allocation32], 4294967248  ;;  %p1081_p9 = scmp.lt.s32.totalorder %s9086_s28, 3  ;;  %v10721_v0 = vmov 0.0   ;;  %vm8936_vm0 = vmmov 0   ;;  %vm1177_vm1 = vcmask 1041408  }
 0x145   : > { %7344 = vmatprep.subr.bf16.mxu0 %v10721_v0  ;;  %7346 = vmatprep.mubr.msk.bf16.mxu0 %vm8936_vm0, %v10721_v0  ;;  %s10877_s4 = sld [smem:[#allocation112_spill]]  ;;  %vm1111_vm2 = vcmask 1043456   ;;  %v1162_v1 = vld [vmem:[#allocation10] sm:$0x3]  ;;  %vm1170_vm3 = vcmask 31744   ;;  %vm1107_vm4 = vcmask 64512  }
 0x146   : > { %s11044_s28 = smov (!%p1081_p9, %s9086_s28), 3  ;;  %s10878_s26 = sld [smem:[#allocation111_spill]]  ;;  %7588 = vmatprep.subr.msk.bf16.mxu1 %vm1177_vm1, %v1162_v1  ;;  %v1179_v4 = vsel %vm1177_vm1, %v1162_v1, 0  ;;  %v1099_v8 = vld [vmem:[#allocation7] sm:$0xf]  ;;  %v7827_v16 = vld [vmem:[#allocation13 + $0x28] sm:$0xff]  }
 0x147   : > { %s7123_s8 = sshll.u32 %s11044_s28, 5  ;;  %s7122_s5 = sshll.u32 %s11044_s28, 4  ;;  %7351 = vmatpush3.bf16.msra.mxu1 %v1179_v4  ;;  %v1113_v10 = vsel %vm1111_vm2, %v1099_v8, 0  ;;  %v7825_v14 = vld [vmem:[#allocation13 + $0x38] sm:$0xff]   ;;  %v7826_v15 = vld [vmem:[#allocation13 + $0x30] sm:$0xff]   ;;  %v7828_v17 = vld [vmem:[#allocation13 + $0x20] sm:$0xff]  }
 0x148   : > { %7345 = vmatpush3.bf16.msra.mxu0 %v1113_v10  ;;  %7376 = vmatprep.subr.bf16.mxu1 %v10721_v0  ;;  %v7829_v18 = vld [vmem:[#allocation13 + $0x18] sm:$0xff]   ;;  %v7830_v19 = vld [vmem:[#allocation13 + $0x10] sm:$0xff]   ;;  %v7831_v20 = vld [vmem:[#allocation13 + $0x8] sm:$0xff]   ;;  %s8937_s6 = smov 16   ;;  %vm1361_vm5 = vcmask 261120   ;;  %vm1618_vm6 = vcmask 130048  }
 0x149   : > { %7356 = vmatprep.subr.bf16.mxu0 %v7825_v14  ;;  %v7832_v21 = vld [vmem:[#allocation13] sm:$0xff]   ;;  %v6850_v25 = vld [vmem:[#allocation9] ss:$0 sm:$0xff]  ;;  %v6852_v28 = vld [vmem:[#allocation12] ss:$0 sm:$0xff]  ;;  %s10879_s29 = sld [smem:[#allocation114_spill]] }
 0x14a   : > { %v1572_v41 = vld [vmem:[#allocation16] sm:$0xf]  ;;  %v6855_v43 = vld [vmem:[#allocation15] ss:$0 sm:$0xff]  ;;  %v7833_v56 = vld [vmem:[#allocation6] sm:$0xff]   ;;  %vm5181_vm9 = vcmask 122880  }
 0x14b   : > { %s1090_s1 = scalar_lea.vmem %s10877_s4, %s7123_s8  ;;  %v1406_v1 = vld [vmem:[#allocation18] sm:$0xf]  ;;  %v7835_v4 = vld [vmem:[#allocation2] sm:$0xff]   ;;  %vm6491_vm10 = vcmask 1040384   ;;  %s6849_s7 = sshll.u32 %s11044_s28, 1 }
 0x14c   : > { %v1156_v2 = vld [vmem:[%s1090_s1] sm:$0xff]  ;;  %v1157_v3 = vld [vmem:[%s1090_s1 + $0x8] sm:$0xff]  ;;  %s1085_s27 = scalar_lea.vmem %s10878_s26, %s7122_s5  ;;  %v1158_v6 = vld [vmem:[%s1090_s1 + $0x10] sm:$0xff]  ;;  %s11040_s0 = sld [smem:[#allocation122_spill]] }
 0x14d   : > { %v1160_v5 = vpack.c.bf16 %v1157_v3, %v1156_v2  ;;  %v1159_v7 = vld [vmem:[%s1090_s1 + $0x18] sm:$0xff]  ;;  %v1096_v11 = vld [vmem:[%s1085_s27] sm:$0xff]  ;;  %v1097_v12 = vld [vmem:[%s1085_s27 + $0x8] sm:$0xff] }
 0x14e   : > { %v1161_v9 = vpack.c.bf16 %v1159_v7, %v1158_v6  ;;  %v1098_v13 = vpack.c.bf16 %v1097_v12, %v1096_v11  ;;  %v7834_v2 = vld [vmem:[#allocation2 + $0x8] sm:$0xff]  }
 0x14f   : > { %7352 = vmatprep.mubr.msk.bf16.mxu1 %vm1170_vm3, %v1160_v5  ;;  %v7838_v7 = vld [vmem:[%s10879_s29] sm:$0xff]   ;;  %v7839_v8 = vld [vmem:[%s10879_s29 + $0x8] sm:$0xff]   ;;  %v7841_v10 = vld [vmem:[%s10879_s29 + $0x18] sm:$0xff]  }
 0x150   : > { %7353 = vmatmul.mubr.msk.bf16.vlgmr.msra.gmra.mxu1 %vm1170_vm3, %v1161_v9  ;;  %7347 = vmatmul.mubr.msk.bf16.vlgmr.msra.gmra.mxu0 %vm1107_vm4, %v1098_v13  ;;  %v7840_v9 = vld [vmem:[%s10879_s29 + $0x10] sm:$0xff]   ;;  %v7842_v11 = vld [vmem:[%s10879_s29 + $0x20] sm:$0xff]   ;;  %v7843_v12 = vld [vmem:[%s10879_s29 + $0x28] sm:$0xff]  }
 0x151   : > { %7380 = vmatprep.mubr.msk.bf16.mxu1 %vm8936_vm0, %v10721_v0  ;;  %7357 = vmatpush3.bf16.msra.mxu0 %v7825_v14  ;;  %v7844_v13 = vld [vmem:[%s10879_s29 + $0x30] sm:$0xff]   ;;  %v7845_v14 = vld [vmem:[%s10879_s29 + $0x38] sm:$0xff]  }
 0x152   : > { %7358 = vmatprep.subr.bf16.mxu0 %v7826_v15  ;;  %s1094_s2 = scalar_lea.vmem %s11040_s0, %s6849_s7 }
 0x155   : > { %7359 = vmatpush3.bf16.msra.mxu0 %v7826_v15  ;;  %v8938_v15 = vmov 1966171168  }
 0x156   : > { %7360 = vmatprep.subr.bf16.mxu0 %v7827_v16 }
 0x159   : > { %7361 = vmatpush3.bf16.msra.mxu0 %v7827_v16  ;;  %v1475_v16 = vunpack.c.l.s4 %v8938_v15 }
 0x15a   : > { %7362 = vmatprep.subr.bf16.mxu0 %v7828_v17 }
 0x15d   : > { %7363 = vmatpush3.bf16.msra.mxu0 %v7828_v17  ;;  %v10720_v17 = vlaneseq }
 0x15e   : > { %7364 = vmatprep.subr.bf16.mxu0 %v7829_v18 }
 0x161   : > { %7365 = vmatpush3.bf16.msra.mxu0 %v7829_v18  ;;  %v1476_v18 = vunpack.c.0.s8 %v1475_v16 }
 0x162   : > { %7366 = vmatprep.subr.bf16.mxu0 %v7830_v19 }
 0x165   : > { %7367 = vmatpush3.bf16.msra.mxu0 %v7830_v19  ;;  %v9413_v19 = vshrl.u32 %v10720_v17, 7 }
 0x166   : > { %7368 = vmatprep.subr.bf16.mxu0 %v7831_v20 }
 0x167   : > { %10880 = vst [vmem:[#allocation46_spill] sm:$0xff] %v9413_v19 }
 0x169   : > { %7369 = vmatpush3.bf16.msra.mxu0 %v7831_v20  ;;  %v9416_v20 = vsub.s32 %v1476_v18, %v9413_v19 }
 0x16a   : > { %7370 = vmatprep.subr.bf16.mxu0 %v7832_v21 }
 0x16b   : > { %10881 = vst [vmem:[#allocation47_spill] sm:$0xff] %v9416_v20 }
 0x16d   : > { %7371 = vmatpush3.bf16.msra.mxu0 %v7832_v21  ;;  %v1469_v21 = vld [vmem:[#allocation4] sm:$0xff] }
 0x16e   : > { %7394 = vmatprep.subr.bf16.mxu0 %v10721_v0 }
 0x210   : > { %v7354_v22 = vpop.f32.mrf.mxu1  ;;  %v1149_v23 = vpop.f32.mrf.mxu0 }
 0x211   : > { %v9358_v29 = vadd.f32 %v6850_v25, %v1149_v23  ;;  %v1224_v37 = vadd.f32 %v7354_v22, %v6852_v28  ;;  %v1480_v22 = vrot.slane %v1469_v21, %v9416_v20  ;;  %v1473_v23 = vcombine.high %v1469_v21, %v1469_v21 }
 0x212   : > { %v1215_v24 = vpop.f32.mrf.mxu1  ;;  %v7348_v26 = vpop.f32.mrf.mxu0 }
 0x213   : > { %v1216_v34 = vadd.f32 %v6852_v28, %v1215_v24  ;;  %v1488_v24 = vcombine.high %v1480_v22, %v1480_v22 }
 0x214   : > { %v7355_v27 = vpop.f32.mrf.mxu1  ;;  %v1152_v30 = vpop.f32.mrf.mxu0 }
 0x215   : > { %v1227_v31 = vadd.f32 %v7355_v27, %v6852_v28  ;;  %v9360_v33 = vadd.f32 %v6850_v25, %v1152_v30  ;;  %v1487_v25 = vrot.slane %v1473_v23, %v9416_v20  ;;  %v1510_v30 = vrot.slane %v1488_v24, %v9416_v20 }
 0x216   : > { %v1218_v32 = vpop.f32.mrf.mxu1  ;;  %v7349_v36 = vpop.f32.mrf.mxu0 }
 0x217   : > { %v1219_v35 = vadd.f32 %v6852_v28, %v1218_v32  ;;  %v1571_v39 = vpack.c.bf16 %v9360_v33, %v9358_v29  ;;  %v1231_v40 = vpack.c.bf16 %v1227_v31, %v1224_v37  ;;  %v1496_v28 = vrot.slane %v1480_v22, %v9416_v20 }
 0x218   : > { %v1489_v31 = vcombine.high %v1487_v25, %v1487_v25 }
 0x219   : > { %v1230_v38 = vpack.c.bf16 %v1219_v35, %v1216_v34  ;;  %v1470_v34 = vld [vmem:[#allocation4 + $0x8] sm:$0xff]  ;;  %v1518_v37 = vcombine.high %v1496_v28, %v1496_v28 }
 0x21a   : > { %v1529_v35 = vrot.slane %v1470_v34, %v9416_v20 }
 0x21b   : > { %7372 = vmatprep.mubr.bf16.mxu0 %v1230_v38  ;;  %v1520_v38 = vcombine.high %v1510_v30, %v1510_v30 }
 0x21c   : > { %7373 = vmatmul.mubr.bf16.vlgmr.msra.gmra.mxu0 %v1231_v40  ;;  %v1503_v40 = vrot.slane %v1487_v25, %v9416_v20 }
 0x21d   : > { %7395 = vmatpush3.bf16.xpose.msra.mxu0 %v1571_v39  ;;  %7396 = vmatprep.mubr.msk.bf16.mxu0 %vm8936_vm0, %v10721_v0 }
 0x21e   : > { %7408 = vmatprep.subr.bf16.mxu0 %v1571_v39 }
 0x224   : > { %7397 = vmatmul.mubr.bf16.vlgmr.msra.gmra.mxu0 %v1572_v41  ;;  %v1517_v41 = vrot.slane %v1489_v31, %v9416_v20 }
 0x225   : > { %7409 = vmatpush3.bf16.msra.mxu0 %v1571_v39  ;;  %7410 = vmatprep.mubr.msk.bf16.mxu0 %vm1618_vm6, %v7838_v7  ;;  %v9426_v39 = vsub.s32 0, %v9413_v19 }
 0x227   : > { %10882 = vst [vmem:[#allocation48_spill] sm:$0xff] %v9426_v39 }
 0x22c   : > { %7411 = vmatmul.mubr.msk.bf16.vlgmr.msra.gmra.mxu0 %vm1618_vm6, %v7839_v8 }
 0x22d   : > { %7414 = vmatprep.mubr.msk.bf16.mxu0 %vm1618_vm6, %v7840_v9 }
 0x234   : > { %7415 = vmatmul.mubr.msk.bf16.gmra.mxu0 %vm1618_vm6, %v7841_v10 }
 0x235   : > { %7418 = vmatprep.mubr.msk.bf16.mxu0 %vm1618_vm6, %v7842_v11 }
 0x23c   : > { %7419 = vmatmul.mubr.msk.bf16.gmra.mxu0 %vm1618_vm6, %v7843_v12 }
 0x23d   : > { %7422 = vmatprep.mubr.msk.bf16.mxu0 %vm1618_vm6, %v7844_v13 }
 0x244   : > { %7423 = vmatmul.mubr.msk.bf16.gmra.mxu0 %vm1618_vm6, %v7845_v14 }
 0x2dc   : > { %v7374_v42 = vpop.f32.mrf.mxu0 }
 0x2dd   : > { %v1346_v46 = vadd.f32 %v7374_v42, %v6855_v43 }
 0x2de   : > { %v1337_v44 = vpop.f32.mrf.mxu0 }
 0x2df   : > { %v1338_v52 = vadd.f32 %v6855_v43, %v1337_v44  ;;  %v1537_v44 = vcombine.high %v1529_v35, %v1529_v35 }
 0x2e0   : > { %v7375_v45 = vpop.f32.mrf.mxu0 }
 0x2e1   : > { %v1349_v47 = vadd.f32 %v7375_v45, %v6855_v43  ;;  %v1522_v45 = vcombine.high %v1470_v34, %v1470_v34 }
 0x2e2   : > { %v1340_v48 = vpop.f32.mrf.mxu0 }
 0x2e3   : > { %v1355_v49 = vpack.c.bf16 %v1349_v47, %v1346_v46  ;;  %v1341_v50 = vadd.f32 %v6855_v43, %v1340_v48  ;;  %v9432_v47 = vrot.slane %v1518_v37, %v9426_v39  ;;  %v9435_v48 = vrot.slane %v1520_v38, %v9426_v39 }
 0x2e4   : > { %v1607_v51 = vpop.f32.mrf.mxu0 }
 0x2e5   : > { %7377 = vmatpush3.bf16.msra.mxu1 %v1355_v49  ;;  %v1614_v53 = vrot.slane %v1607_v51, 4  ;;  %v1354_v55 = vpack.c.bf16 %v1341_v50, %v1338_v52  ;;  %v9441_v50 = vrot.slane %v1510_v30, %v9426_v39  ;;  %v1519_v52 = vcombine.high %v1503_v40, %v1503_v40 }
 0x2e6   : > { %7378 = vmatprep.subr.bf16.mxu1 %v10721_v0  ;;  %v7398_v54 = vpop.f32.mrf.mxu0 }
 0x2e7   : > { %1615 = vrot.lane.b32.xlu0 %v1614_v53, %s8937_s6  ;;  %v1521_v53 = vcombine.high %v1517_v41, %v1517_v41 }
 0x2e8   : > { %v1610_v57 = vpop.f32.mrf.mxu0 }
 0x2e9   : > { %7379 = vmatpush3.bf16.msra.mxu1 %v1354_v55 }
 0x2ea   : > { %v7399_v58 = vpop.f32.mrf.mxu0  ;;  %7384 = vmatprep.subr.bf16.mxu1 %v10721_v0 }
 0x2eb   : > { %v1536_v58 = vrot.slane %v1522_v45, %v9416_v20 }
 0x2ec   : > { %7381 = vmatmul.mubr.msk.bf16.vlgmr.msra.gmra.mxu1 %vm1361_vm5, %v7833_v56  ;;  %v9447_v56 = vrot.slane %v1517_v41, %v9426_v39 }
 0x2ed   : > { %7390 = vmatprep.mubr.msk.bf16.mxu1 %vm8936_vm0, %v10721_v0  ;;  %v1538_v12 = vcombine.high %v1536_v58, %v1536_v58  ;;  %v1552_v21 = vrot.slane %v1536_v58, %v9416_v20 }
 0x2ef   : > { %v1566_v22 = vrot.slane %v1538_v12, %v9416_v20  ;;  %v1568_v31 = vcombine.high %v1552_v21, %v1552_v21 }
 0x2f1   : > { %v9514_v30 = vrot.slane %v1566_v22, %v9426_v39  ;;  %v9525_v37 = vrot.slane %v1568_v31, %v9426_v39 }
 0x359   : > { %v1616_v3 = vpop.permute.xlu0 %1615 }
 0x35a   : > { %v1619_v5 = vsel %vm1618_vm6, %v1607_v51, %v1616_v3  ;;  %v1545_v3 = vrot.slane %v1529_v35, %v9416_v20 }
 0x35b   : > { %v1620_v6 = vpack.c.bf16 %v1619_v5, %v1619_v5 }
 0x35c   : > { %v9481_v9 = vrot.slane %v1545_v3, %v9426_v39  ;;  %v1567_v11 = vcombine.high %v1545_v3, %v1545_v3 }
 0x35e   : > { %v9495_v18 = vrot.slane %v1567_v11, %v9426_v39 }
 0x3ac   : > { %v1399_v59 = vpop.f32.mrf.mxu1 }
 0x3ae   : > { %v7382_v60 = vpop.f32.mrf.mxu1 }
 0x3b0   : > { %v1402_v61 = vpop.f32.mrf.mxu1 }
 0x3b1   : > { %v1407_v62 = vpack.c.bf16 %v1402_v61, %v1399_v59 }
 0x3b2   : > { %v7383_v63 = vpop.f32.mrf.mxu1 }
 0x3b3   : > { %7385 = vmatpush3.bf16.xpose.msra.mxu1 %v1407_v62 }
 0x3b4   : > { %7386 = vmatprep.subr.bf16.mxu1 %v10721_v0 }
 0x3bb   : > { %7387 = vmatpush3.bf16.xpose.msra.mxu1 %v1355_v49  ;;  %v9438_v49 = vrot.slane %v1496_v28, %v9426_v39  ;;  %v9511_v28 = vrot.slane %v1552_v21, %v9426_v39 }
 0x3bc   : > { %7388 = vmatprep.subr.bf16.mxu1 %v10721_v0 }
 0x3c3   : > { %7389 = vmatpush3.bf16.xpose.msra.mxu1 %v1354_v55  ;;  %v9444_v55 = vrot.slane %v1503_v40, %v9426_v39 }
 0x3c4   : > { %7400 = vmatprep.subr.bf16.mxu1 %v10721_v0 }
 0x3ca   : > { %7391 = vmatmul.mubr.bf16.vlgmr.msra.gmra.mxu1 %v1406_v1  ;;  %v9463_v1 = vrot.slane %v1519_v52, %v9426_v39 }
 0x3cb   : > { %7401 = vmatpush3.bf16.msra.mxu1 %v7834_v2  ;;  %7404 = vmatprep.mubr.msk.bf16.mxu1 %vm8936_vm0, %v10721_v0  ;;  %v9466_v2 = vrot.slane %v1521_v53, %v9426_v39 }
 0x3cc   : > { %7402 = vmatprep.subr.bf16.mxu1 %v10721_v0 }
 0x3cf   : > { %7403 = vmatpush3.bf16.msra.mxu1 %v7835_v4  ;;  %v1559_v4 = vrot.slane %v1537_v44, %v9416_v20 }
 0x3d1   : > { %v9484_v10 = vrot.slane %v1559_v4, %v9426_v39  ;;  %v1569_v16 = vcombine.high %v1559_v4, %v1559_v4 }
 0x3d2   : > { %7405 = vmatmul.mubr.msk.bf16.vlgmr.msra.gmra.mxu1 %vm1361_vm5, %v1620_v6 }
 0x48a   : > { %v9420_v26 = vpop.f32.mrf.mxu1 }
 0x48c   : > { %v7392_v27 = vpop.f32.mrf.mxu1 }
 0x48d   : > { %v9508_v27 = vrot.slane %v1569_v16, %v9426_v39 }
 0x48e   : > { %v1446_v32 = vpop.f32.mrf.mxu1 }
 0x490   : > { %v7393_v36 = vpop.f32.mrf.mxu1 }
 0x491   : > { %v1570_v36 = vcombine.high %v1566_v22, %v1566_v22 }
 0x492   : > { %v1670_v42 = vpop.f32.mrf.mxu1 }
 0x493   : > { %v1671_v43 = vadd.f32 %v1670_v42, %v9420_v26  ;;  %v9536_v42 = vrot.slane %v1570_v36, %v9426_v39  ;;  %v8939_v36 = vmov 839922192  }
 0x494   : > { %v7406_v46 = vpop.f32.mrf.mxu1 }
 0x495   : > { %vm1676_vm7 = vcmp.gt.f32.partialorder %v1671_v43, 0.0  ;;  %v1677_v51 = vmul.f32 0.2, %v1671_v43 }
 0x496   : > { %v1673_v54 = vpop.f32.mrf.mxu1 }
 0x497   : > { %v1678_v57 = vsel %vm1676_vm7, %v1671_v43, %v1677_v51  ;;  %v7412_v51 = vpop.f32.mrf.mxu0 }
 0x498   : > { %v7407_v59 = vpop.f32.mrf.mxu1  ;;  %v9451_v60 = vadd.f32 %v9432_v47, %v1678_v57  ;;  %v9454_v61 = vadd.f32 %v9435_v48, %v1678_v57  ;;  %v9457_v62 = vadd.f32 %v9438_v49, %v1678_v57  ;;  %v9460_v63 = vadd.f32 %v9441_v50, %v1678_v57 }
 0x499   : > { %v9475_v7 = vadd.f32 %v9444_v55, %v1678_v57  ;;  %v9478_v8 = vadd.f32 %v9447_v56, %v1678_v57  ;;  %v9489_v14 = vadd.f32 %v9463_v1, %v1678_v57  ;;  %v9492_v15 = vadd.f32 %v9466_v2, %v1678_v57  ;;  %v2349_v52 = vpop.f32.mrf.mxu0 }
 0x49a   : > { %v1792_v5 = vcombine.low %v9451_v60, %v9454_v61  ;;  %v1791_v6 = vcombine.low %v9457_v62, %v9460_v63  ;;  %v9502_v24 = vadd.f32 %v9481_v9, %v1678_v57  ;;  %v9505_v25 = vadd.f32 %v9484_v10, %v1678_v57 }
 0x49b   : > { %v1793_v13 = vcombine.low %v9475_v7, %v9478_v8  ;;  %v1794_v23 = vcombine.low %v9489_v14, %v9492_v15  ;;  %v9519_v34 = vadd.f32 %v9495_v18, %v1678_v57  ;;  %v9522_v35 = vadd.f32 %v9508_v27, %v1678_v57  ;;  %v7413_v53 = vpop.f32.mrf.mxu0 }
 0x49c   : > { %1809 = vmax.xlane.f32.xlu1 %v1792_v5  ;;  %1807 = vmax.xlane.f32.xlu0 %v1791_v6  ;;  %v1795_v32 = vcombine.low %v9502_v24, %v9505_v25  ;;  %v9530_v40 = vadd.f32 %v9511_v28, %v1678_v57  ;;  %v9533_v41 = vadd.f32 %v9514_v30, %v1678_v57 }
 0x49d   : > { %v1796_v38 = vcombine.low %v9519_v34, %v9522_v35  ;;  %v9541_v44 = vadd.f32 %v9525_v37, %v1678_v57  ;;  %v9544_v45 = vadd.f32 %v9536_v42, %v1678_v57  ;;  %v2352_v54 = vpop.f32.mrf.mxu0 }
 0x49e   : > { %v1797_v43 = vcombine.low %v9530_v40, %v9533_v41 }
 0x49f   : > { %v1798_v46 = vcombine.low %v9541_v44, %v9544_v45  ;;  %v7416_v58 = vpop.f32.mrf.mxu0 }
 0x4a0   : > { %1811 = vmax.xlane.f32.xlu1 %v1793_v13 }
 0x4a1   : > { %v2365_v59 = vpop.f32.mrf.mxu0 }
 0x4a3   : > { %v7417_v3 = vpop.f32.mrf.mxu0 }
 0x4a4   : > { %1813 = vmax.xlane.f32.xlu1 %v1794_v23  ;;  %v2415_v17 = vpack.c.bf16 %v7417_v3, %v7416_v58 }
 0x4a5   : > { %v2368_v4 = vpop.f32.mrf.mxu0 }
 0x4a7   : > { %v7420_v5 = vpop.f32.mrf.mxu0 }
 0x4a8   : > { %1815 = vmax.xlane.f32.xlu1 %v1795_v32 }
 0x4a9   : > { %v2381_v6 = vpop.f32.mrf.mxu0 }
 0x4ab   : > { %v7421_v11 = vpop.f32.mrf.mxu0 }
 0x4ac   : > { %1817 = vmax.xlane.f32.xlu1 %v1796_v38  ;;  %v2417_v31 = vpack.c.bf16 %v7421_v11, %v7420_v5  ;;  %v1832_v38 = vunpack.c.l.s4 %v8939_v36 }
 0x4ad   : > { %v2384_v12 = vpop.f32.mrf.mxu0 }
 0x4ae   : > { %v2416_v32 = vpack.c.bf16 %v2384_v12, %v2381_v6  ;;  %v1833_v0 = vunpack.c.0.s8 %v1832_v38  ;;  %v2413_v6 = vpack.c.bf16 %v7413_v53, %v7412_v51 }
 0x4af   : > { %v7424_v13 = vpop.f32.mrf.mxu0 }
 0x4b0   : > { %1819 = vmax.xlane.f32.xlu1 %v1797_v43  ;;  %v8940_v43 = vmov 1985246804  }
 0x4b1   : > { %v2397_v57 = vpop.f32.mrf.mxu0 }
 0x4b3   : > { %v7425_v16 = vpop.f32.mrf.mxu0 }
 0x4b4   : > { %1821 = vmax.xlane.f32.xlu1 %v1798_v46  ;;  %v2419_v21 = vpack.c.bf16 %v7425_v16, %v7424_v13  ;;  %v1839_v46 = vunpack.c.l.s4 %v8940_v43  ;;  %v2414_v13 = vpack.c.bf16 %v2368_v4, %v2365_v59  ;;  %v2412_v4 = vpack.c.bf16 %v2352_v54, %v2349_v52 }
 0x4b5   : > { %v2400_v22 = vpop.f32.mrf.mxu0 }
 0x4b6   : > { %7426 = vmatprep.subr.bf16.mxu1 %v2419_v21  ;;  %v2418_v23 = vpack.c.bf16 %v2400_v22, %v2397_v57  ;;  %v1840_v20 = vunpack.c.0.s8 %v1839_v46  ;;  %v9549_v57 = vsub.s32 %v1833_v0, %v9413_v19 }
 0x4b7   : > { %7427 = vmatpush3.bf16.msra.mxu1 %v2419_v21 }
 0x4b8   : > { %7428 = vmatprep.subr.bf16.mxu1 %v2418_v23  ;;  %v9552_v5 = vsub.s32 %v1840_v20, %v9413_v19 }
 0x4bb   : > { %7429 = vmatpush3.bf16.msra.mxu1 %v2418_v23 }
 0x4bc   : > { %7430 = vmatprep.subr.bf16.mxu1 %v2417_v31 }
 0x4bf   : > { %7431 = vmatpush3.bf16.msra.mxu1 %v2417_v31 }
 0x4c0   : > { %7432 = vmatprep.subr.bf16.mxu1 %v2416_v32 }
 0x4c3   : > { %7433 = vmatpush3.bf16.msra.mxu1 %v2416_v32 }
 0x4c4   : > { %7434 = vmatprep.subr.bf16.mxu1 %v2415_v17 }
 0x4c7   : > { %7435 = vmatpush3.bf16.msra.mxu1 %v2415_v17 }
 0x4c8   : > { %7436 = vmatprep.subr.bf16.mxu1 %v2414_v13 }
 0x4cb   : > { %7437 = vmatpush3.bf16.msra.mxu1 %v2414_v13 }
 0x4cc   : > { %7438 = vmatprep.subr.bf16.mxu1 %v2413_v6 }
 0x4cf   : > { %7439 = vmatpush3.bf16.msra.mxu1 %v2413_v6 }
 0x4d0   : > { %7440 = vmatprep.subr.bf16.mxu1 %v2412_v4 }
 0x4d3   : > { %7441 = vmatpush3.bf16.msra.mxu1 %v2412_v4 }
 0x525   : > { %v1810_v11 = vpop.xlane.xlu1 %1809  ;;  %v1808_v12 = vpop.xlane.xlu0 %1807 }
 0x526   : > { %v1851_v16 = vrot.slane %v1810_v11, %v9549_v57  ;;  %v1858_v58 = vrot.slane %v1810_v11, %v9552_v5  ;;  %v1837_v3 = vrot.slane %v1808_v12, %v9549_v57  ;;  %v1844_v59 = vrot.slane %v1808_v12, %v9552_v5 }
 0x528   : > { %v1961_v0 = vsub.f32 %v9451_v60, %v1851_v16  ;;  %v1962_v20 = vsub.f32 %v9454_v61, %v1858_v58  ;;  %v1959_v17 = vsub.f32 %v9457_v62, %v1837_v3  ;;  %v1960_v51 = vsub.f32 %v9460_v63, %v1844_v59 }
 0x529   : > { %v1812_v53 = vpop.xlane.xlu1 %1811 }
 0x52a   : > { %v1979_v21 = vmul.f32 1.442695, %v1961_v0  ;;  %v1981_v22 = vmul.f32 1.442695, %v1962_v20  ;;  %v1975_v23 = vmul.f32 1.442695, %v1959_v17  ;;  %v1865_v31 = vrot.slane %v1812_v53, %v9549_v57 }
 0x52b   : > { %v1977_v32 = vmul.f32 1.442695, %v1960_v51  ;;  %v1872_v36 = vrot.slane %v1812_v53, %v9552_v5 }
 0x52c   : > { %8110 = vpow2.f32 %v1979_v21  ;;  %v1963_v60 = vsub.f32 %v9475_v7, %v1865_v31 }
 0x52d   : > { %8112 = vpow2.f32 %v1981_v22  ;;  %v1964_v61 = vsub.f32 %v9478_v8, %v1872_v36  ;;  %v1814_v62 = vpop.xlane.xlu1 %1813 }
 0x52e   : > { %8114 = vpow2.f32 %v1975_v23  ;;  %v1983_v63 = vmul.f32 1.442695, %v1963_v60  ;;  %v1879_v52 = vrot.slane %v1814_v62, %v9549_v57  ;;  %v1886_v54 = vrot.slane %v1814_v62, %v9552_v5 }
 0x52f   : > { %8116 = vpow2.f32 %v1977_v32  ;;  %v1985_v38 = vmul.f32 1.442695, %v1964_v61 }
 0x530   : > { %8118 = vpow2.f32 %v1983_v63  ;;  %v1965_v43 = vsub.f32 %v9489_v14, %v1879_v52  ;;  %v1966_v46 = vsub.f32 %v9492_v15, %v1886_v54 }
 0x531   : > { %8120 = vpow2.f32 %v1985_v38  ;;  %v1816_v7 = vpop.xlane.xlu1 %1815 }
 0x532   : > { %v1987_v13 = vmul.f32 1.442695, %v1965_v43  ;;  %v1989_v6 = vmul.f32 1.442695, %v1966_v46  ;;  %v1893_v8 = vrot.slane %v1816_v7, %v9549_v57  ;;  %v1900_v11 = vrot.slane %v1816_v7, %v9552_v5 }
 0x534   : > { %8122 = vpow2.f32 %v1987_v13  ;;  %v1967_v12 = vsub.f32 %v9502_v24, %v1893_v8  ;;  %v1968_v16 = vsub.f32 %v9505_v25, %v1900_v11 }
 0x535   : > { %8124 = vpow2.f32 %v1989_v6  ;;  %v1818_v58 = vpop.xlane.xlu1 %1817 }
 0x536   : > { %v1991_v3 = vmul.f32 1.442695, %v1967_v12  ;;  %v1993_v59 = vmul.f32 1.442695, %v1968_v16  ;;  %v1907_v14 = vrot.slane %v1818_v58, %v9549_v57  ;;  %v1914_v15 = vrot.slane %v1818_v58, %v9552_v5 }
 0x538   : > { %8126 = vpow2.f32 %v1991_v3  ;;  %v1969_v4 = vsub.f32 %v9519_v34, %v1907_v14  ;;  %v1970_v0 = vsub.f32 %v9522_v35, %v1914_v15 }
 0x539   : > { %v9578_v20 = vpop.eup %8110  ;;  %8128 = vpow2.f32 %v1993_v59  ;;  %v1820_v17 = vpop.xlane.xlu1 %1819 }
 0x53a   : > { %v9580_v24 = vpop.eup %8112  ;;  %v1995_v25 = vmul.f32 1.442695, %v1969_v4  ;;  %v1997_v51 = vmul.f32 1.442695, %v1970_v0  ;;  %v1921_v53 = vrot.slane %v1820_v17, %v9549_v57  ;;  %v1928_v21 = vrot.slane %v1820_v17, %v9552_v5 }
 0x53b   : > { %v9584_v22 = vpop.eup %8114  ;;  %v2024_v43 = vcombine.low %v9578_v20, %v9580_v24 }
 0x53c   : > { %v9586_v23 = vpop.eup %8116  ;;  %8130 = vpow2.f32 %v1995_v25  ;;  %v1971_v34 = vsub.f32 %v9530_v40, %v1921_v53  ;;  %v1972_v35 = vsub.f32 %v9533_v41, %v1928_v21 }
 0x53d   : > { %v9590_v31 = vpop.eup %8118  ;;  %8132 = vpow2.f32 %v1997_v51  ;;  %v2023_v32 = vcombine.low %v9584_v22, %v9586_v23  ;;  %v1822_v36 = vpop.xlane.xlu1 %1821 }
 0x53e   : > { %v9594_v60 = vpop.eup %8120  ;;  %v1999_v61 = vmul.f32 1.442695, %v1971_v34  ;;  %v2001_v62 = vmul.f32 1.442695, %v1972_v35  ;;  %v1935_v63 = vrot.slane %v1822_v36, %v9549_v57  ;;  %v1942_v52 = vrot.slane %v1822_v36, %v9552_v5 }
 0x53f   : > { %2039 = vadd.xlane.f32.xlu1 %v2023_v32  ;;  %v2025_v40 = vcombine.low %v9590_v31, %v9594_v60 }
 0x540   : > { %8134 = vpow2.f32 %v1999_v61  ;;  %v1973_v41 = vsub.f32 %v9541_v44, %v1935_v63  ;;  %v1974_v54 = vsub.f32 %v9544_v45, %v1942_v52 }
 0x541   : > { %v9602_v38 = vpop.eup %8122  ;;  %8136 = vpow2.f32 %v2001_v62  ;;  %2043 = vadd.xlane.f32.xlu0 %v2025_v40 }
 0x542   : > { %v9606_v46 = vpop.eup %8124  ;;  %v2003_v7 = vmul.f32 1.442695, %v1973_v41  ;;  %v2005_v13 = vmul.f32 1.442695, %v1974_v54 }
 0x543   : > { %2041 = vadd.xlane.f32.xlu1 %v2024_v43  ;;  %v2026_v6 = vcombine.low %v9602_v38, %v9606_v46 }
 0x544   : > { %8138 = vpow2.f32 %v2003_v7 }
 0x545   : > { %v9610_v8 = vpop.eup %8126  ;;  %8140 = vpow2.f32 %v2005_v13 }
 0x546   : > { %v9612_v44 = vpop.eup %8128 }
 0x547   : > { %2045 = vadd.xlane.f32.xlu1 %v2026_v6  ;;  %v2027_v45 = vcombine.low %v9610_v8, %v9612_v44 }
 0x549   : > { %v9616_v11 = vpop.eup %8130  ;;  %2047 = vadd.xlane.f32.xlu0 %v2027_v45 }
 0x54a   : > { %v9618_v12 = vpop.eup %8132 }
 0x54b   : > { %v2028_v16 = vcombine.low %v9616_v11, %v9618_v12 }
 0x54d   : > { %v9622_v58 = vpop.eup %8134  ;;  %2049 = vadd.xlane.f32.xlu1 %v2028_v16 }
 0x54e   : > { %v9624_v3 = vpop.eup %8136 }
 0x54f   : > { %v2029_v59 = vcombine.low %v9622_v58, %v9624_v3 }
 0x551   : > { %v9628_v14 = vpop.eup %8138  ;;  %2051 = vadd.xlane.f32.xlu0 %v2029_v59 }
 0x552   : > { %v9630_v15 = vpop.eup %8140 }
 0x553   : > { %v2030_v4 = vcombine.low %v9628_v14, %v9630_v15 }
 0x555   : > { %2053 = vadd.xlane.f32.xlu1 %v2030_v4 }
 0x5c8   : > { %v2040_v0 = vpop.xlane.xlu1 %2039 }
 0x5c9   : > { %8142 = vrcp.f32 %v2040_v0 }
 0x5ca   : > { %v2044_v17 = vpop.xlane.xlu0 %2043 }
 0x5cb   : > { %8144 = vrcp.f32 %v2044_v17 }
 0x5cc   : > { %v2042_v25 = vpop.xlane.xlu1 %2041 }
 0x5cd   : > { %8146 = vrcp.f32 %v2042_v25 }
 0x5d0   : > { %v2046_v51 = vpop.xlane.xlu1 %2045 }
 0x5d1   : > { %8148 = vrcp.f32 %v2046_v51 }
 0x5d2   : > { %v2048_v53 = vpop.xlane.xlu0 %2047 }
 0x5d3   : > { %8150 = vrcp.f32 %v2048_v53 }
 0x5d6   : > { %v8143_v21 = vpop.eup %8142  ;;  %v2050_v34 = vpop.xlane.xlu1 %2049 }
 0x5d7   : > { %8152 = vrcp.f32 %v2050_v34  ;;  %v2077_v35 = vrot.slane %v8143_v21, %v9549_v57  ;;  %v2084_v32 = vrot.slane %v8143_v21, %v9552_v5 }
 0x5d8   : > { %v8145_v36 = vpop.eup %8144 }
 0x5d9   : > { %v2199_v63 = vmul.f32 %v9584_v22, %v2077_v35  ;;  %v2200_v52 = vmul.f32 %v9586_v23, %v2084_v32  ;;  %v2105_v40 = vrot.slane %v8145_v36, %v9549_v57  ;;  %v2112_v41 = vrot.slane %v8145_v36, %v9552_v5 }
 0x5da   : > { %v8147_v61 = vpop.eup %8146  ;;  %v2052_v62 = vpop.xlane.xlu0 %2051 }
 0x5db   : > { %8154 = vrcp.f32 %v2052_v62  ;;  %v2091_v54 = vrot.slane %v8147_v61, %v9549_v57  ;;  %v2098_v43 = vrot.slane %v8147_v61, %v9552_v5  ;;  %v2231_v16 = vcombine.low %v2199_v63, %v2200_v52 }
 0x5dc   : > { %v2203_v22 = vmul.f32 %v9590_v31, %v2105_v40  ;;  %v2204_v23 = vmul.f32 %v9594_v60, %v2112_v41 }
 0x5dd   : > { %v2201_v7 = vmul.f32 %v9578_v20, %v2091_v54  ;;  %v2202_v13 = vmul.f32 %v9580_v24, %v2098_v43 }
 0x5de   : > { %v8149_v6 = vpop.eup %8148  ;;  %v2054_v45 = vpop.xlane.xlu1 %2053  ;;  %v2233_v31 = vcombine.low %v2203_v22, %v2204_v23  ;;  %v7846_v22 = vld [vmem:[#allocation19 + $0x78] sm:$0xff]  }
 0x5df   : > { %8156 = vrcp.f32 %v2054_v45  ;;  %v2232_v59 = vcombine.low %v2201_v7, %v2202_v13  ;;  %v2119_v4 = vrot.slane %v8149_v6, %v9549_v57  ;;  %v2126_v0 = vrot.slane %v8149_v6, %v9552_v5  ;;  %v7847_v23 = vld [vmem:[#allocation19 + $0xf8] sm:$0xff]   ;;  %7172 = vmatprep.subr.bf16.mxu0 %v7846_v22 }
 0x5e0   : > { %v8151_v17 = vpop.eup %8150  ;;  %7194 = vmatprep.subr.bf16.mxu1 %v7847_v23  ;;  %v8942_v22 = vmov 1983009808  }
 0x5e1   : > { %v2247_v25 = vpack.c.bf16 %v2232_v59, %v2231_v16  ;;  %v2205_v51 = vmul.f32 %v9602_v38, %v2119_v4  ;;  %v2206_v20 = vmul.f32 %v9606_v46, %v2126_v0  ;;  %v2133_v24 = vrot.slane %v8151_v17, %v9549_v57  ;;  %v7848_v59 = vld [vmem:[#allocation19 + $0x38] sm:$0xff]   ;;  %v7850_v0 = vld [vmem:[#allocation19 + $0x70] sm:$0xff]  }
 0x5e2   : > { %v2140_v53 = vrot.slane %v8151_v17, %v9552_v5  ;;  %v7849_v4 = vld [vmem:[#allocation19 + $0xb8] sm:$0xff]   ;;  %7173 = vmatpush3.bf16.msra.mxu0 %v7848_v59  ;;  %v7852_v17 = vld [vmem:[#allocation19 + $0x30] sm:$0xff]   ;;  %v2554_v23 = vunpack.c.l.s4 %v8942_v22 }
 0x5e3   : > { %7442 = vmatprep.mubr.bf16.mxu1 %v2247_v25  ;;  %v2234_v21 = vcombine.low %v2205_v51, %v2206_v20  ;;  %v2207_v34 = vmul.f32 %v9610_v8, %v2133_v24  ;;  %7174 = vmatprep.subr.bf16.mxu0 %v7850_v0  ;;  %v7856_v25 = vld [vmem:[#allocation19 + $0x28] sm:$0xff]   ;;  %v7858_v20 = vld [vmem:[#allocation19 + $0x60] sm:$0xff]  }
 0x5e4   : > { %v8153_v60 = vpop.eup %8152  ;;  %v2208_v61 = vmul.f32 %v9612_v44, %v2140_v53  ;;  %v7857_v51 = vld [vmem:[#allocation19 + $0xa8] sm:$0xff]   ;;  %v7859_v24 = vld [vmem:[#allocation19 + $0xe0] sm:$0xff]  }
 0x5e5   : > { %v2248_v35 = vpack.c.bf16 %v2234_v21, %v2233_v31  ;;  %v2147_v32 = vrot.slane %v8153_v60, %v9549_v57  ;;  %v2154_v36 = vrot.slane %v8153_v60, %v9552_v5  ;;  %v7860_v53 = vld [vmem:[#allocation19 + $0x20] sm:$0xff]   ;;  %v7862_v21 = vld [vmem:[#allocation19 + $0x58] sm:$0xff]  }
 0x5e6   : > { %v2235_v63 = vcombine.low %v2207_v34, %v2208_v61  ;;  %7175 = vmatpush3.bf16.msra.mxu0 %v7852_v17  ;;  %v7861_v31 = vld [vmem:[#allocation19 + $0xa0] sm:$0xff]   ;;  %v7863_v60 = vld [vmem:[#allocation19 + $0xd8] sm:$0xff]   ;;  %v7868_v61 = vld [vmem:[#allocation19 + $0x10] sm:$0xff]   ;;  %v2555_v17 = vunpack.c.0.s8 %v2554_v23 }
 0x5e7   : > { %7443 = vmatmul.mubr.bf16.vlgmr.msra.gmra.mxu1 %v2248_v35  ;;  %v2209_v38 = vmul.f32 %v9616_v11, %v2147_v32  ;;  %v2210_v46 = vmul.f32 %v9618_v12, %v2154_v36  ;;  %v7864_v34 = vld [vmem:[#allocation19 + $0x18] sm:$0xff]   ;;  %v7866_v32 = vld [vmem:[#allocation19 + $0x50] sm:$0xff]  }
 0x5e8   : > { %v8155_v62 = vpop.eup %8154  ;;  %7195 = vmatpush3.bf16.msra.mxu1 %v7849_v4  ;;  %v7865_v35 = vld [vmem:[#allocation19 + $0x98] sm:$0xff]   ;;  %v7867_v36 = vld [vmem:[#allocation19 + $0xd0] sm:$0xff]  }
 0x5e9   : > { %v2236_v52 = vcombine.low %v2209_v38, %v2210_v46  ;;  %v2161_v40 = vrot.slane %v8155_v62, %v9549_v57  ;;  %v2168_v41 = vrot.slane %v8155_v62, %v9552_v5  ;;  %v7869_v38 = vld [vmem:[#allocation19 + $0x90] sm:$0xff]   ;;  %v7870_v46 = vld [vmem:[#allocation19 + $0x48] sm:$0xff]  }
 0x5ea   : > { %v7871_v62 = vld [vmem:[#allocation19 + $0xc8] sm:$0xff]  }
 0x5eb   : > { %v2249_v8 = vpack.c.bf16 %v2236_v52, %v2235_v63  ;;  %v2211_v44 = vmul.f32 %v9622_v58, %v2161_v40  ;;  %v2212_v11 = vmul.f32 %v9624_v3, %v2168_v41  ;;  %v7851_v58 = vld [vmem:[#allocation19 + $0xf0] sm:$0xff]   ;;  %v7872_v63 = vld [vmem:[#allocation19 + $0x8] sm:$0xff]   ;;  %v7874_v40 = vld [vmem:[#allocation19 + $0x40] sm:$0xff]  }
 0x5ec   : > { %v8157_v54 = vpop.eup %8156  ;;  %v7853_v3 = vld [vmem:[#allocation19 + $0xb0] sm:$0xff]   ;;  %7196 = vmatprep.subr.bf16.mxu1 %v7851_v58  ;;  %v7873_v52 = vld [vmem:[#allocation19 + $0x88] sm:$0xff]   ;;  %v7875_v41 = vld [vmem:[#allocation19 + $0xc0] sm:$0xff]  }
 0x5ed   : > { %7446 = vmatprep.mubr.bf16.mxu1 %v2249_v8  ;;  %v2175_v43 = vrot.slane %v8157_v54, %v9549_v57  ;;  %v2182_v7 = vrot.slane %v8157_v54, %v9552_v5  ;;  %v2237_v6 = vcombine.low %v2211_v44, %v2212_v11  ;;  %7197 = vmatpush3.bf16.msra.mxu1 %v7853_v3  ;;  %v7876_v8 = vld [vmem:[#allocation19] sm:$0xff]   ;;  %v8941_v11 = vmov 1935823168  }
 0x5ee   : > { %v7877_v54 = vld [vmem:[#allocation19 + $0x80] sm:$0xff]  }
 0x5ef   : > { %v2213_v12 = vmul.f32 %v9628_v14, %v2175_v43  ;;  %v2214_v13 = vmul.f32 %v9630_v15, %v2182_v7  ;;  %v7854_v14 = vld [vmem:[#allocation19 + $0x68] sm:$0xff]   ;;  %v10883_v43 = vmov 0.0  }
 0x5f0   : > { %v7855_v15 = vld [vmem:[#allocation19 + $0xe8] sm:$0xff]   ;;  %7176 = vmatprep.subr.bf16.mxu0 %v7854_v14 }
 0x5f1   : > { %v2238_v45 = vcombine.low %v2213_v12, %v2214_v13  ;;  %7198 = vmatprep.subr.bf16.mxu1 %v7855_v15  ;;  %7177 = vmatpush3.bf16.msra.mxu0 %v7856_v25  ;;  %v2486_v12 = vunpack.c.l.s4 %v8941_v11 }
 0x5f2   : > { %7199 = vmatpush3.bf16.msra.mxu1 %v7857_v51  ;;  %7178 = vmatprep.subr.bf16.mxu0 %v7858_v20 }
 0x5f3   : > { %v2250_v16 = vpack.c.bf16 %v2238_v45, %v2237_v6  ;;  %7200 = vmatprep.subr.bf16.mxu1 %v7859_v24  ;;  %v2487_v6 = vunpack.c.0.s8 %v2486_v12 }
 0x5f5   : > { %7447 = vmatmul.mubr.bf16.gmra.mxu1 %v2250_v16  ;;  %7179 = vmatpush3.bf16.msra.mxu0 %v7860_v53  ;;  %v9668_v16 = vsub.s32 %v2487_v6, %v9413_v19 }
 0x5f6   : > { %7201 = vmatpush3.bf16.msra.mxu1 %v7861_v31  ;;  %7180 = vmatprep.subr.bf16.mxu0 %v7862_v21  ;;  %v9677_v21 = vsub.s32 %v2555_v17, %v9413_v19 }
 0x5f7   : > { %7202 = vmatprep.subr.bf16.mxu1 %v7863_v60 }
 0x5f9   : > { %7181 = vmatpush3.bf16.msra.mxu0 %v7864_v34 }
 0x5fa   : > { %7203 = vmatpush3.bf16.msra.mxu1 %v7865_v35  ;;  %7182 = vmatprep.subr.bf16.mxu0 %v7866_v32 }
 0x5fb   : > { %7204 = vmatprep.subr.bf16.mxu1 %v7867_v36 }
 0x5fd   : > { %7183 = vmatpush3.bf16.msra.mxu0 %v7868_v61 }
 0x5fe   : > { %7205 = vmatpush3.bf16.msra.mxu1 %v7869_v38  ;;  %7184 = vmatprep.subr.bf16.mxu0 %v7870_v46 }
 0x5ff   : > { %7206 = vmatprep.subr.bf16.mxu1 %v7871_v62 }
 0x601   : > { %7185 = vmatpush3.bf16.msra.mxu0 %v7872_v63 }
 0x602   : > { %7207 = vmatpush3.bf16.msra.mxu1 %v7873_v52  ;;  %7186 = vmatprep.subr.bf16.mxu0 %v7874_v40 }
 0x603   : > { %7208 = vmatprep.subr.bf16.mxu1 %v7875_v41 }
 0x605   : > { %7187 = vmatpush3.bf16.msra.mxu0 %v7876_v8 }
 0x606   : > { %7209 = vmatpush3.bf16.msra.mxu1 %v7877_v54  ;;  %7450 = vmatprep.subr.bf16.mxu0 %v10883_v43 }
 0x6a7   : > { %v7444_v7 = vpop.f32.mrf.mxu1 }
 0x6a8   : > { %v2505_v14 = vrot.slane %v7444_v7, %v9668_v16 }
 0x6a9   : > { %v2454_v44 = vpop.f32.mrf.mxu1 }
 0x6aa   : > { %v2491_v0 = vrot.slane %v2454_v44, %v9668_v16 }
 0x6ab   : > { %v7445_v13 = vpop.f32.mrf.mxu1 }
 0x6ac   : > { %v2512_v58 = vrot.slane %v7445_v13, %v9668_v16 }
 0x6ad   : > { %v2457_v45 = vpop.f32.mrf.mxu1 }
 0x6ae   : > { %v2498_v59 = vrot.slane %v2457_v45, %v9668_v16  ;;  %v2551_v53 = vcombine.low %v2505_v14, %v2512_v58  ;;  %v2552_v31 = vcombine.high %v2505_v14, %v2512_v58 }
 0x6b0   : > { %v2549_v15 = vcombine.low %v2491_v0, %v2498_v59  ;;  %v2550_v25 = vcombine.high %v2491_v0, %v2498_v59  ;;  %v2573_v63 = vrot.slane %v2551_v53, %v9677_v21  ;;  %v2580_v52 = vrot.slane %v2552_v31, %v9677_v21 }
 0x6b2   : > { %v2559_v61 = vrot.slane %v2549_v15, %v9677_v21  ;;  %v2566_v38 = vrot.slane %v2550_v25, %v9677_v21 }
 0x6b4   : > { %v2581_v7 = vcombine.low %v2559_v61, %v2573_v63  ;;  %v2583_v44 = vcombine.low %v2566_v38, %v2580_v52  ;;  %v2582_v11 = vcombine.high %v2559_v61, %v2573_v63  ;;  %v2584_v12 = vcombine.high %v2566_v38, %v2580_v52 }
 0x6b5   : > { %v7448_v4 = vpop.f32.mrf.mxu1 }
 0x6b6   : > { %v2533_v20 = vrot.slane %v7448_v4, %v9668_v16 }
 0x6b7   : > { %v2470_v3 = vpop.f32.mrf.mxu1 }
 0x6b8   : > { %v2519_v34 = vrot.slane %v2470_v3, %v9668_v16  ;;  %v6885_v3 = vld [vmem:[#allocation21] ss:$0 sm:$0xff] }
 0x6b9   : > { %v7449_v51 = vpop.f32.mrf.mxu1 }
 0x6ba   : > { %v2540_v24 = vrot.slane %v7449_v51, %v9668_v16 }
 0x6bb   : > { %v2473_v60 = vpop.f32.mrf.mxu1 }
 0x6bc   : > { %v2587_v35 = vcombine.low %v2533_v20, %v2540_v24  ;;  %v2588_v32 = vcombine.high %v2533_v20, %v2540_v24  ;;  %v2526_v36 = vrot.slane %v2473_v60, %v9668_v16 }
 0x6be   : > { %v2585_v46 = vcombine.low %v2519_v34, %v2526_v36  ;;  %v2586_v62 = vcombine.high %v2519_v34, %v2526_v36  ;;  %v2609_v40 = vrot.slane %v2587_v35, %v9677_v21  ;;  %v2616_v41 = vrot.slane %v2588_v32, %v9677_v21 }
 0x6c0   : > { %v2595_v8 = vrot.slane %v2585_v46, %v9677_v21  ;;  %v2602_v54 = vrot.slane %v2586_v62, %v9677_v21 }
 0x6c2   : > { %v2617_v13 = vcombine.low %v2595_v8, %v2609_v40  ;;  %v2619_v6 = vcombine.low %v2602_v54, %v2616_v41  ;;  %v2618_v45 = vcombine.high %v2595_v8, %v2609_v40  ;;  %v2620_v22 = vcombine.high %v2602_v54, %v2616_v41 }
 0x6c4   : > { %v2629_v23 = vpack.c.bf16 %v2617_v13, %v2581_v7  ;;  %v2631_v59 = vpack.c.bf16 %v2619_v6, %v2583_v44  ;;  %v2630_v4 = vpack.c.bf16 %v2618_v45, %v2582_v11  ;;  %v2632_v0 = vpack.c.bf16 %v2620_v22, %v2584_v12  ;;  %v6918_v45 = vld [vmem:[#allocation22] ss:$0 sm:$0xff] }
 0x6c6   : > { %2928 = vmatprep.mubr.bf16.mxu0 %v2630_v4  ;;  %2969 = vmatprep.mubr.bf16.mxu1 %v2632_v0 }
 0x6c7   : > { %2929 = vmatmul.mubr.bf16.vlgmr.msra.gmra.mxu0 %v2629_v23  ;;  %2970 = vmatmul.mubr.bf16.vlgmr.msra.gmra.mxu1 %v2631_v59  ;;  %v6919_v23 = vld [vmem:[#allocation24] ss:$0 sm:$0xff] }
 0x6c8   : > { %7452 = vmatprep.mubr.msk.bf16.mxu0 %vm8936_vm0, %v10883_v43 }
 0x787   : > { %v7188_v58 = vpop.f32.mrf.mxu0  ;;  %v7210_v17 = vpop.f32.mrf.mxu1 }
 0x789   : > { %v7189_v14 = vpop.f32.mrf.mxu0  ;;  %v7211_v15 = vpop.f32.mrf.mxu1 }
 0x78a   : > { %v7190_v25 = vadd.f32 %v7189_v14, %v7188_v58  ;;  %v7212_v53 = vadd.f32 %v7211_v15, %v7210_v17 }
 0x78b   : > { %v7191_v51 = vpop.f32.mrf.mxu0  ;;  %v7213_v20 = vpop.f32.mrf.mxu1 }
 0x78c   : > { %v2931_v24 = vadd.f32 %v7190_v25, %v6885_v3 }
 0x78d   : > { %v7192_v31 = vpop.f32.mrf.mxu0  ;;  %v7214_v60 = vpop.f32.mrf.mxu1 }
 0x78e   : > { %v7193_v34 = vadd.f32 %v7192_v31, %v7191_v51  ;;  %v2972_v35 = vadd.f32 %v7212_v53, %v2931_v24  ;;  %v7215_v36 = vadd.f32 %v7214_v60, %v7213_v20  ;;  %v3025_v24 = vld [vmem:[#allocation16 + $0x4] sm:$0xf]  ;;  %v8278_v53 = vld [vmem:[#allocation2 + $0x8] sm:$0xff]  }
 0x790   : > { %v2934_v32 = vadd.f32 %v7193_v34, %v6885_v3  ;;  %2978 = vadd.xlane.f32.xlu0 %v2972_v35 }
 0x792   : > { %v2975_v61 = vadd.f32 %v7215_v36, %v2934_v32 }
 0x794   : > { %2980 = vadd.xlane.f32.xlu1 %v2975_v61 }
 0x819   : > { %v2979_v38 = vpop.xlane.xlu0 %2978 }
 0x81a   : > { %v2983_v46 = vmul.f32 0.0078125, %v2979_v38  ;;  %v8280_v38 = vld [vmem:[%s10879_s29] sm:$0xff]  }
 0x81c   : > { %v2985_v62 = vsub.f32 %v2972_v35, %v2983_v46  ;;  %v8281_v46 = vld [vmem:[%s10879_s29 + $0x8] sm:$0xff]  }
 0x81d   : > { %v2981_v63 = vpop.xlane.xlu1 %2980 }
 0x81e   : > { %v2984_v52 = vmul.f32 0.0078125, %v2981_v63  ;;  %v2987_v40 = vmul.f32 %v2985_v62, %v2985_v62  ;;  %v8283_v63 = vld [vmem:[%s10879_s29 + $0x18] sm:$0xff]  }
 0x820   : > { %v2986_v41 = vsub.f32 %v2975_v61, %v2984_v52  ;;  %2989 = vadd.xlane.f32.xlu0 %v2987_v40  ;;  %v8284_v52 = vld [vmem:[%s10879_s29 + $0x20] sm:$0xff]   ;;  %v8285_v40 = vld [vmem:[%s10879_s29 + $0x28] sm:$0xff]  }
 0x822   : > { %v2988_v8 = vmul.f32 %v2986_v41, %v2986_v41 }
 0x824   : > { %2991 = vadd.xlane.f32.xlu1 %v2988_v8  ;;  %v8287_v8 = vld [vmem:[%s10879_s29 + $0x38] sm:$0xff]  }
 0x8a9   : > { %v2990_v54 = vpop.xlane.xlu0 %2989 }
 0x8aa   : > { %v2993_v7 = vmul.f32 0.0078125, %v2990_v54  ;;  %v3074_v54 = vrot.slane %v9420_v26, 4 }
 0x8ac   : > { %v2995_v44 = vadd.f32 1e-05, %v2993_v7 }
 0x8ad   : > { %v2992_v11 = vpop.xlane.xlu1 %2991 }
 0x8ae   : > { %8158 = vrsqrt.f32 %v2995_v44  ;;  %v2994_v12 = vmul.f32 0.0078125, %v2992_v11 }
 0x8b0   : > { %v2996_v13 = vadd.f32 1e-05, %v2994_v12 }
 0x8b2   : > { %8160 = vrsqrt.f32 %v2996_v13 }
 0x8bb   : > { %v8159_v6 = vpop.eup %8158 }
 0x8bc   : > { %v2999_v22 = vmul.f32 %v8159_v6, %v2985_v62  ;;  %v8282_v62 = vld [vmem:[%s10879_s29 + $0x10] sm:$0xff]  }
 0x8be   : > { %v3008_v59 = vmul.f32 %v6918_v45, %v2999_v22 }
 0x8bf   : > { %v8161_v4 = vpop.eup %8160 }
 0x8c0   : > { %v3000_v0 = vmul.f32 %v8161_v4, %v2986_v41  ;;  %v3017_v58 = vadd.f32 %v6919_v23, %v3008_v59  ;;  %v8286_v41 = vld [vmem:[%s10879_s29 + $0x30] sm:$0xff]  }
 0x8c2   : > { %v3009_v17 = vmul.f32 %v6918_v45, %v3000_v0  ;;  %v9692_v14 = vadd.f32 %v3017_v58, %v9358_v29  ;;  %v8279_v29 = vld [vmem:[#allocation2] sm:$0xff]  }
 0x8c4   : > { %v3018_v3 = vadd.f32 %v6919_v23, %v3009_v17  ;;  %v10725_v25 = vmax.f32 %v9692_v14, 0.0 }
 0x8c6   : > { %v9695_v15 = vadd.f32 %v3018_v3, %v9360_v33 }
 0x8c8   : > { %v10726_v51 = vmax.f32 %v9695_v15, 0.0 }
 0x8ca   : > { %v3023_v20 = vpack.c.bf16 %v10726_v51, %v10725_v25  ;;  %v10095_v25 = vld [vmem:[#allocation25 + $0x144] ss:$16 sps:$4 sm:$0xff]   ;;  %v10098_v51 = vld [vmem:[#allocation25 + $0x2c] ss:$16 sps:$4 sm:$0xff]  }
 0x8cb   : > { %10923 = vst [vmem:[#allocation88_spill] sm:$0xff] %v10095_v25 }
 0x8cc   : > { %7451 = vmatpush3.bf16.xpose.msra.mxu0 %v3023_v20 }
 0x8cd   : > { %7456 = vmatprep.subr.bf16.mxu0 %v10883_v43 }
 0x8d3   : > { %7453 = vmatmul.mubr.bf16.vlgmr.msra.gmra.mxu0 %v3025_v24 }
 0x8d4   : > { %7457 = vmatpush3.bf16.msra.mxu0 %v8278_v53  ;;  %7460 = vmatprep.mubr.msk.bf16.mxu0 %vm8936_vm0, %v10883_v43 }
 0x8d5   : > { %7458 = vmatprep.subr.bf16.mxu0 %v10883_v43 }
 0x8d8   : > { %7459 = vmatpush3.bf16.msra.mxu0 %v8279_v29 }
 0x8d9   : > { %7464 = vmatprep.subr.bf16.mxu0 %v3023_v20 }
 0x993   : > { %v3060_v33 = vpop.f32.mrf.mxu0 }
 0x994   : > { %v3067_v31 = vrot.slane %v3060_v33, 4 }
 0x995   : > { %v7454_v60 = vpop.f32.mrf.mxu0 }
 0x996   : > { %3068 = vrot.lane.b32.xlu0 %v3067_v31, %s8937_s6 }
 0x997   : > { %v3063_v34 = vpop.f32.mrf.mxu0 }
 0x999   : > { %v7455_v35 = vpop.f32.mrf.mxu0 }
 0xa08   : > { %v3069_v32 = vpop.permute.xlu0 %3068 }
 0xa09   : > { %v3071_v36 = vsel %vm1618_vm6, %v3060_v33, %v3069_v32 }
 0xa0a   : > { %v3072_v61 = vpack.c.bf16 %v3071_v36, %v3071_v36 }
 0xa0c   : > { %7461 = vmatmul.mubr.msk.bf16.vlgmr.msra.gmra.mxu0 %vm1361_vm5, %v3072_v61 }
 0xa0d   : > { %7465 = vmatpush3.bf16.msra.mxu0 %v3023_v20  ;;  %7466 = vmatprep.mubr.msk.bf16.mxu0 %vm1618_vm6, %v8280_v38 }
 0xa14   : > { %7467 = vmatmul.mubr.msk.bf16.vlgmr.msra.gmra.mxu0 %vm1618_vm6, %v8281_v46 }
 0xa15   : > { %7470 = vmatprep.mubr.msk.bf16.mxu0 %vm1618_vm6, %v8282_v62 }
 0xa1c   : > { %7471 = vmatmul.mubr.msk.bf16.gmra.mxu0 %vm1618_vm6, %v8283_v63 }
 0xa1d   : > { %7474 = vmatprep.mubr.msk.bf16.mxu0 %vm1618_vm6, %v8284_v52 }
 0xa24   : > { %7475 = vmatmul.mubr.msk.bf16.gmra.mxu0 %vm1618_vm6, %v8285_v40 }
 0xa25   : > { %7478 = vmatprep.mubr.msk.bf16.mxu0 %vm1618_vm6, %v8286_v41 }
 0xa2c   : > { %7479 = vmatmul.mubr.msk.bf16.gmra.mxu0 %vm1618_vm6, %v8287_v8 }
 0xacc   : > { %v3113_v7 = vpop.f32.mrf.mxu0 }
 0xacd   : > { %v3114_v44 = vadd.f32 %v3113_v7, %v3074_v54 }
 0xace   : > { %v7462_v11 = vpop.f32.mrf.mxu0 }
 0xacf   : > { %vm3119_vm8 = vcmp.gt.f32.partialorder %v3114_v44, 0.0  ;;  %v3120_v12 = vmul.f32 0.2, %v3114_v44 }
 0xad0   : > { %v3116_v13 = vpop.f32.mrf.mxu0 }
 0xad1   : > { %v3121_v6 = vsel %vm3119_vm8, %v3114_v44, %v3120_v12 }
 0xad2   : > { %v7463_v45 = vpop.f32.mrf.mxu0  ;;  %v9744_v22 = vadd.f32 %v3121_v6, %v9511_v28  ;;  %v9747_v23 = vadd.f32 %v3121_v6, %v9514_v30  ;;  %v9750_v59 = vadd.f32 %v3121_v6, %v9438_v49  ;;  %v9753_v4 = vadd.f32 %v3121_v6, %v9441_v50 }
 0xad3   : > { %v9760_v58 = vadd.f32 %v3121_v6, %v9432_v47  ;;  %v9763_v28 = vadd.f32 %v3121_v6, %v9435_v48  ;;  %v9768_v50 = vadd.f32 %v3121_v6, %v9444_v55  ;;  %v9771_v30 = vadd.f32 %v3121_v6, %v9447_v56 }
 0xad4   : > { %v3160_v26 = vcombine.low %v9744_v22, %v9747_v23  ;;  %v3154_v0 = vcombine.low %v9750_v59, %v9753_v4  ;;  %v9776_v47 = vadd.f32 %v3121_v6, %v9463_v1  ;;  %v9779_v48 = vadd.f32 %v3121_v6, %v9466_v2 }
 0xad5   : > { %v3155_v49 = vcombine.low %v9760_v58, %v9763_v28  ;;  %v3156_v17 = vcombine.low %v9768_v50, %v9771_v30  ;;  %v9784_v55 = vadd.f32 %v3121_v6, %v9481_v9  ;;  %v9787_v56 = vadd.f32 %v3121_v6, %v9484_v10 }
 0xad6   : > { %3182 = vmax.xlane.f32.xlu0 %v3160_v26  ;;  %3170 = vmax.xlane.f32.xlu1 %v3154_v0  ;;  %v3157_v3 = vcombine.low %v9776_v47, %v9779_v48  ;;  %v9792_v1 = vadd.f32 %v3121_v6, %v9495_v18  ;;  %v9795_v2 = vadd.f32 %v3121_v6, %v9508_v27  ;;  %v7468_v18 = vpop.f32.mrf.mxu0 }
 0xad7   : > { %v3158_v20 = vcombine.low %v9784_v55, %v9787_v56  ;;  %v9800_v9 = vadd.f32 %v3121_v6, %v9525_v37  ;;  %v9803_v10 = vadd.f32 %v3121_v6, %v9536_v42 }
 0xad8   : > { %v3159_v24 = vcombine.low %v9792_v1, %v9795_v2  ;;  %v3648_v29 = vpop.f32.mrf.mxu0 }
 0xad9   : > { %v3161_v53 = vcombine.low %v9800_v9, %v9803_v10 }
 0xada   : > { %3172 = vmax.xlane.f32.xlu1 %v3155_v49  ;;  %v7469_v33 = vpop.f32.mrf.mxu0 }
 0xadb   : > { %v3712_v7 = vpack.c.bf16 %v7469_v33, %v7468_v18 }
 0xadc   : > { %v3651_v27 = vpop.f32.mrf.mxu0 }
 0xadd   : > { %v3711_v44 = vpack.c.bf16 %v3651_v27, %v3648_v29 }
 0xade   : > { %3174 = vmax.xlane.f32.xlu1 %v3156_v17  ;;  %v7472_v31 = vpop.f32.mrf.mxu0 }
 0xae0   : > { %v3664_v60 = vpop.f32.mrf.mxu0 }
 0xae2   : > { %3176 = vmax.xlane.f32.xlu1 %v3157_v3  ;;  %v7473_v34 = vpop.f32.mrf.mxu0 }
 0xae3   : > { %v3714_v8 = vpack.c.bf16 %v7473_v34, %v7472_v31 }
 0xae4   : > { %v3667_v35 = vpop.f32.mrf.mxu0 }
 0xae5   : > { %v3713_v54 = vpack.c.bf16 %v3667_v35, %v3664_v60 }
 0xae6   : > { %3178 = vmax.xlane.f32.xlu1 %v3158_v20  ;;  %v7476_v32 = vpop.f32.mrf.mxu0 }
 0xae8   : > { %v3680_v36 = vpop.f32.mrf.mxu0 }
 0xaea   : > { %3180 = vmax.xlane.f32.xlu1 %v3159_v24  ;;  %v7477_v37 = vpop.f32.mrf.mxu0 }
 0xaeb   : > { %v3716_v40 = vpack.c.bf16 %v7477_v37, %v7476_v32 }
 0xaec   : > { %v3683_v61 = vpop.f32.mrf.mxu0 }
 0xaed   : > { %v3715_v41 = vpack.c.bf16 %v3683_v61, %v3680_v36 }
 0xaee   : > { %3184 = vmax.xlane.f32.xlu1 %v3161_v53  ;;  %v7480_v38 = vpop.f32.mrf.mxu0 }
 0xaf0   : > { %v3696_v42 = vpop.f32.mrf.mxu0 }
 0xaf2   : > { %v7481_v46 = vpop.f32.mrf.mxu0 }
 0xaf3   : > { %v3718_v62 = vpack.c.bf16 %v7481_v46, %v7480_v38 }
 0xaf4   : > { %v3699_v63 = vpop.f32.mrf.mxu0 }
 0xaf5   : > { %7482 = vmatprep.subr.bf16.mxu0 %v3718_v62  ;;  %v3717_v52 = vpack.c.bf16 %v3699_v63, %v3696_v42 }
 0xaf6   : > { %7483 = vmatpush3.bf16.msra.mxu0 %v3718_v62 }
 0xaf7   : > { %7484 = vmatprep.subr.bf16.mxu0 %v3717_v52 }
 0xafa   : > { %7485 = vmatpush3.bf16.msra.mxu0 %v3717_v52 }
 0xafb   : > { %7486 = vmatprep.subr.bf16.mxu0 %v3716_v40 }
 0xafe   : > { %7487 = vmatpush3.bf16.msra.mxu0 %v3716_v40 }
 0xaff   : > { %7488 = vmatprep.subr.bf16.mxu0 %v3715_v41 }
 0xb02   : > { %7489 = vmatpush3.bf16.msra.mxu0 %v3715_v41 }
 0xb03   : > { %7490 = vmatprep.subr.bf16.mxu0 %v3714_v8 }
 0xb06   : > { %7491 = vmatpush3.bf16.msra.mxu0 %v3714_v8 }
 0xb07   : > { %7492 = vmatprep.subr.bf16.mxu0 %v3713_v54 }
 0xb0a   : > { %7493 = vmatpush3.bf16.msra.mxu0 %v3713_v54 }
 0xb0b   : > { %7494 = vmatprep.subr.bf16.mxu0 %v3712_v7 }
 0xb0e   : > { %7495 = vmatpush3.bf16.msra.mxu0 %v3712_v7 }
 0xb0f   : > { %7496 = vmatprep.subr.bf16.mxu0 %v3711_v44 }
 0xb12   : > { %7497 = vmatpush3.bf16.msra.mxu0 %v3711_v44 }
 0xb5f   : > { %v3183_v11 = vpop.xlane.xlu0 %3182  ;;  %v3171_v12 = vpop.xlane.xlu1 %3170 }
 0xb60   : > { %v3284_v13 = vrot.slane %v3183_v11, %v9549_v57  ;;  %v3291_v6 = vrot.slane %v3183_v11, %v9552_v5  ;;  %v3200_v45 = vrot.slane %v3171_v12, %v9549_v57  ;;  %v3207_v26 = vrot.slane %v3171_v12, %v9552_v5 }
 0xb62   : > { %v3334_v0 = vsub.f32 %v9744_v22, %v3284_v13  ;;  %v3335_v49 = vsub.f32 %v9747_v23, %v3291_v6  ;;  %v3322_v17 = vsub.f32 %v9750_v59, %v3200_v45  ;;  %v3323_v3 = vsub.f32 %v9753_v4, %v3207_v26 }
 0xb63   : > { %v3173_v20 = vpop.xlane.xlu1 %3172 }
 0xb64   : > { %v3362_v24 = vmul.f32 1.442695, %v3334_v0  ;;  %v3364_v53 = vmul.f32 1.442695, %v3335_v49  ;;  %v3338_v18 = vmul.f32 1.442695, %v3322_v17  ;;  %v3214_v29 = vrot.slane %v3173_v20, %v9549_v57 }
 0xb65   : > { %v3340_v33 = vmul.f32 1.442695, %v3323_v3  ;;  %v3221_v27 = vrot.slane %v3173_v20, %v9552_v5 }
 0xb66   : > { %8162 = vpow2.f32 %v3362_v24  ;;  %v3324_v31 = vsub.f32 %v9760_v58, %v3214_v29 }
 0xb67   : > { %8164 = vpow2.f32 %v3364_v53  ;;  %v3325_v22 = vsub.f32 %v9763_v28, %v3221_v27  ;;  %v3175_v23 = vpop.xlane.xlu1 %3174 }
 0xb68   : > { %8166 = vpow2.f32 %v3338_v18  ;;  %v3342_v59 = vmul.f32 1.442695, %v3324_v31  ;;  %v3228_v4 = vrot.slane %v3175_v23, %v9549_v57  ;;  %v3235_v60 = vrot.slane %v3175_v23, %v9552_v5 }
 0xb69   : > { %8168 = vpow2.f32 %v3340_v33  ;;  %v3344_v34 = vmul.f32 1.442695, %v3325_v22 }
 0xb6a   : > { %8170 = vpow2.f32 %v3342_v59  ;;  %v3326_v35 = vsub.f32 %v9768_v50, %v3228_v4  ;;  %v3327_v32 = vsub.f32 %v9771_v30, %v3235_v60 }
 0xb6b   : > { %8172 = vpow2.f32 %v3344_v34  ;;  %v3177_v36 = vpop.xlane.xlu1 %3176 }
 0xb6c   : > { %v3346_v58 = vmul.f32 1.442695, %v3326_v35  ;;  %v3348_v37 = vmul.f32 1.442695, %v3327_v32  ;;  %v3242_v28 = vrot.slane %v3177_v36, %v9549_v57  ;;  %v3249_v61 = vrot.slane %v3177_v36, %v9552_v5 }
 0xb6e   : > { %8174 = vpow2.f32 %v3346_v58  ;;  %v3328_v38 = vsub.f32 %v9776_v47, %v3242_v28  ;;  %v3329_v42 = vsub.f32 %v9779_v48, %v3249_v61  ;;  %v7878_v58 = vld [vmem:[#allocation19 + $0x178] sm:$0xff]  }
 0xb6f   : > { %8176 = vpow2.f32 %v3348_v37  ;;  %v3179_v46 = vpop.xlane.xlu1 %3178  ;;  %v7879_v37 = vld [vmem:[#allocation19 + $0x1f8] sm:$0xff]   ;;  %7242 = vmatprep.subr.bf16.mxu1 %v7878_v58 }
 0xb70   : > { %v3350_v62 = vmul.f32 1.442695, %v3328_v38  ;;  %v3352_v63 = vmul.f32 1.442695, %v3329_v42  ;;  %v3256_v50 = vrot.slane %v3179_v46, %v9549_v57  ;;  %v3263_v30 = vrot.slane %v3179_v46, %v9552_v5  ;;  %v7880_v28 = vld [vmem:[#allocation19 + $0x138] sm:$0xff]   ;;  %7264 = vmatprep.subr.bf16.mxu0 %v7879_v37 }
 0xb71   : > { %7243 = vmatpush3.bf16.msra.mxu1 %v7880_v28 }
 0xb72   : > { %8178 = vpow2.f32 %v3350_v62  ;;  %v3330_v52 = vsub.f32 %v9784_v55, %v3256_v50  ;;  %v3331_v40 = vsub.f32 %v9787_v56, %v3263_v30 }
 0xb73   : > { %v9831_v41 = vpop.eup %8162  ;;  %8180 = vpow2.f32 %v3352_v63  ;;  %v3181_v8 = vpop.xlane.xlu1 %3180 }
 0xb74   : > { %v9833_v47 = vpop.eup %8164  ;;  %v3354_v48 = vmul.f32 1.442695, %v3330_v52  ;;  %v3356_v54 = vmul.f32 1.442695, %v3331_v40  ;;  %v3270_v7 = vrot.slane %v3181_v8, %v9549_v57  ;;  %v3277_v44 = vrot.slane %v3181_v8, %v9552_v5 }
 0xb75   : > { %v9837_v11 = vpop.eup %8166  ;;  %v3392_v12 = vcombine.low %v9831_v41, %v9833_v47 }
 0xb76   : > { %v9841_v55 = vpop.eup %8168  ;;  %8182 = vpow2.f32 %v3354_v48  ;;  %v3332_v56 = vsub.f32 %v9792_v1, %v3270_v7  ;;  %v3333_v13 = vsub.f32 %v9795_v2, %v3277_v44 }
 0xb77   : > { %v9845_v6 = vpop.eup %8170  ;;  %8184 = vpow2.f32 %v3356_v54  ;;  %3414 = vadd.xlane.f32.xlu0 %v3392_v12  ;;  %v3386_v45 = vcombine.low %v9837_v11, %v9841_v55  ;;  %v3185_v26 = vpop.xlane.xlu1 %3184 }
 0xb78   : > { %v9849_v0 = vpop.eup %8172  ;;  %v3358_v49 = vmul.f32 1.442695, %v3332_v56  ;;  %v3360_v17 = vmul.f32 1.442695, %v3333_v13  ;;  %v3298_v3 = vrot.slane %v3185_v26, %v9549_v57  ;;  %v3305_v20 = vrot.slane %v3185_v26, %v9552_v5 }
 0xb79   : > { %3402 = vadd.xlane.f32.xlu1 %v3386_v45  ;;  %v3387_v1 = vcombine.low %v9845_v6, %v9849_v0 }
 0xb7a   : > { %8186 = vpow2.f32 %v3358_v49  ;;  %v3336_v2 = vsub.f32 %v9800_v9, %v3298_v3  ;;  %v3337_v24 = vsub.f32 %v9803_v10, %v3305_v20 }
 0xb7b   : > { %v9857_v53 = vpop.eup %8174  ;;  %8188 = vpow2.f32 %v3360_v17 }
 0xb7c   : > { %v9859_v18 = vpop.eup %8176  ;;  %v3366_v29 = vmul.f32 1.442695, %v3336_v2  ;;  %v3368_v33 = vmul.f32 1.442695, %v3337_v24 }
 0xb7d   : > { %3404 = vadd.xlane.f32.xlu1 %v3387_v1  ;;  %v3388_v27 = vcombine.low %v9857_v53, %v9859_v18 }
 0xb7e   : > { %8190 = vpow2.f32 %v3366_v29 }
 0xb7f   : > { %v8179_v31 = vpop.eup %8178  ;;  %8192 = vpow2.f32 %v3368_v33 }
 0xb80   : > { %v8181_v22 = vpop.eup %8180 }
 0xb81   : > { %3406 = vadd.xlane.f32.xlu1 %v3388_v27  ;;  %v3389_v23 = vcombine.low %v8179_v31, %v8181_v22 }
 0xb83   : > { %v9863_v9 = vpop.eup %8182 }
 0xb84   : > { %v9865_v10 = vpop.eup %8184 }
 0xb85   : > { %3408 = vadd.xlane.f32.xlu1 %v3389_v23  ;;  %v3390_v59 = vcombine.low %v9863_v9, %v9865_v10 }
 0xb87   : > { %v9869_v4 = vpop.eup %8186 }
 0xb88   : > { %v9871_v60 = vpop.eup %8188 }
 0xb89   : > { %3410 = vadd.xlane.f32.xlu1 %v3390_v59  ;;  %v3391_v34 = vcombine.low %v9869_v4, %v9871_v60 }
 0xb8b   : > { %v9875_v35 = vpop.eup %8190 }
 0xb8c   : > { %v9877_v32 = vpop.eup %8192 }
 0xb8d   : > { %3412 = vadd.xlane.f32.xlu1 %v3391_v34  ;;  %v3393_v36 = vcombine.low %v9875_v35, %v9877_v32 }
 0xb91   : > { %3416 = vadd.xlane.f32.xlu1 %v3393_v36  ;;  %v7881_v36 = vld [vmem:[#allocation19 + $0x1b8] sm:$0xff]  }
 0xc00   : > { %v3415_v63 = vpop.xlane.xlu0 %3414 }
 0xc02   : > { %v3403_v61 = vpop.xlane.xlu1 %3402 }
 0xc03   : > { %8194 = vrcp.f32 %v3403_v61 }
 0xc06   : > { %v3405_v38 = vpop.xlane.xlu1 %3404 }
 0xc07   : > { %8196 = vrcp.f32 %v3405_v38 }
 0xc0a   : > { %v3407_v42 = vpop.xlane.xlu1 %3406 }
 0xc0b   : > { %8198 = vrcp.f32 %v3407_v42 }
 0xc0e   : > { %v3409_v46 = vpop.xlane.xlu1 %3408 }
 0xc0f   : > { %8200 = vrcp.f32 %v3409_v46 }
 0xc10   : > { %v8195_v62 = vpop.eup %8194 }
 0xc11   : > { %v3440_v50 = vrot.slane %v8195_v62, %v9549_v57  ;;  %v3447_v30 = vrot.slane %v8195_v62, %v9552_v5 }
 0xc12   : > { %v3411_v52 = vpop.xlane.xlu1 %3410 }
 0xc13   : > { %8202 = vrcp.f32 %v3411_v52  ;;  %v3562_v54 = vmul.f32 %v9837_v11, %v3440_v50  ;;  %v3563_v7 = vmul.f32 %v9841_v55, %v3447_v30 }
 0xc14   : > { %v8197_v40 = vpop.eup %8196  ;;  %8204 = vrcp.f32 %v3415_v63 }
 0xc15   : > { %v3454_v8 = vrot.slane %v8197_v40, %v9549_v57  ;;  %v3461_v48 = vrot.slane %v8197_v40, %v9552_v5  ;;  %v3594_v49 = vcombine.low %v3562_v54, %v3563_v7  ;;  %v7882_v54 = vld [vmem:[#allocation19 + $0x170] sm:$0xff]  }
 0xc16   : > { %v3413_v44 = vpop.xlane.xlu1 %3412  ;;  %v7884_v7 = vld [vmem:[#allocation19 + $0x130] sm:$0xff]   ;;  %7244 = vmatprep.subr.bf16.mxu1 %v7882_v54 }
 0xc17   : > { %8206 = vrcp.f32 %v3413_v44  ;;  %v3564_v12 = vmul.f32 %v9845_v6, %v3454_v8  ;;  %v3565_v56 = vmul.f32 %v9849_v0, %v3461_v48  ;;  %7245 = vmatpush3.bf16.msra.mxu1 %v7884_v7  ;;  %v7888_v44 = vld [vmem:[#allocation19 + $0x128] sm:$0xff]  }
 0xc18   : > { %v8199_v13 = vpop.eup %8198 }
 0xc19   : > { %v3468_v45 = vrot.slane %v8199_v13, %v9549_v57  ;;  %v3475_v26 = vrot.slane %v8199_v13, %v9552_v5  ;;  %v3595_v17 = vcombine.low %v3564_v12, %v3565_v56  ;;  %v7889_v12 = vld [vmem:[#allocation19 + $0x1a8] sm:$0xff]   ;;  %v7892_v56 = vld [vmem:[#allocation19 + $0x120] sm:$0xff]  }
 0xc1a   : > { %v3417_v3 = vpop.xlane.xlu1 %3416  ;;  %v7893_v13 = vld [vmem:[#allocation19 + $0x1a0] sm:$0xff]  }
 0xc1b   : > { %8208 = vrcp.f32 %v3417_v3  ;;  %v3610_v20 = vpack.c.bf16 %v3595_v17, %v3594_v49  ;;  %v3566_v6 = vmul.f32 %v9857_v53, %v3468_v45  ;;  %v3567_v0 = vmul.f32 %v9859_v18, %v3475_v26  ;;  %v7894_v45 = vld [vmem:[#allocation19 + $0x158] sm:$0xff]   ;;  %v7898_v3 = vld [vmem:[#allocation19 + $0x150] sm:$0xff]  }
 0xc1c   : > { %v8201_v1 = vpop.eup %8200  ;;  %v7895_v26 = vld [vmem:[#allocation19 + $0x1d8] sm:$0xff]  }
 0xc1d   : > { %v3482_v11 = vrot.slane %v8201_v1, %v9549_v57  ;;  %v3489_v55 = vrot.slane %v8201_v1, %v9552_v5  ;;  %7498 = vmatprep.mubr.bf16.mxu0 %v3610_v20  ;;  %v3596_v27 = vcombine.low %v3566_v6, %v3567_v0  ;;  %v7896_v49 = vld [vmem:[#allocation19 + $0x118] sm:$0xff]   ;;  %v7899_v20 = vld [vmem:[#allocation19 + $0x1d0] sm:$0xff]   ;;  %v7903_v6 = vld [vmem:[#allocation19 + $0x1c8] sm:$0xff]  }
 0xc1e   : > { %v7897_v17 = vld [vmem:[#allocation19 + $0x198] sm:$0xff]   ;;  %v7900_v1 = vld [vmem:[#allocation19 + $0x110] sm:$0xff]   ;;  %v7904_v0 = vld [vmem:[#allocation19 + $0x108] sm:$0xff]  }
 0xc1f   : > { %v3568_v2 = vmul.f32 %v8179_v31, %v3482_v11  ;;  %v3569_v24 = vmul.f32 %v8181_v22, %v3489_v55  ;;  %v7901_v11 = vld [vmem:[#allocation19 + $0x190] sm:$0xff]   ;;  %v7902_v55 = vld [vmem:[#allocation19 + $0x148] sm:$0xff]  }
 0xc20   : > { %v8203_v29 = vpop.eup %8202 }
 0xc21   : > { %v8205_v33 = vpop.eup %8204  ;;  %v3597_v23 = vcombine.low %v3568_v2, %v3569_v24  ;;  %v3496_v59 = vrot.slane %v8203_v29, %v9549_v57  ;;  %v3503_v34 = vrot.slane %v8203_v29, %v9552_v5  ;;  %v7905_v2 = vld [vmem:[#allocation19 + $0x188] sm:$0xff]   ;;  %v7906_v24 = vld [vmem:[#allocation19 + $0x140] sm:$0xff]  }
 0xc22   : > { %v3524_v28 = vrot.slane %v8205_v33, %v9549_v57  ;;  %v3531_v61 = vrot.slane %v8205_v33, %v9552_v5  ;;  %v7907_v29 = vld [vmem:[#allocation19 + $0x1c0] sm:$0xff]  }
 0xc23   : > { %v3611_v58 = vpack.c.bf16 %v3597_v23, %v3596_v27  ;;  %v3570_v31 = vmul.f32 %v9863_v9, %v3496_v59  ;;  %v3571_v22 = vmul.f32 %v9865_v10, %v3503_v34  ;;  %v7908_v33 = vld [vmem:[#allocation19 + $0x100] sm:$0xff]   ;;  %v9911_v23 = vld [vmem:[#allocation25 + $0x2e4] ss:$16 sps:$4 sm:$0xff]  }
 0xc24   : > { %v8207_v37 = vpop.eup %8206  ;;  %v3574_v62 = vmul.f32 %v9831_v41, %v3524_v28  ;;  %v3575_v63 = vmul.f32 %v9833_v47, %v3531_v61  ;;  %v7883_v41 = vld [vmem:[#allocation19 + $0x1f0] sm:$0xff]   ;;  %v7909_v27 = vld [vmem:[#allocation19 + $0x180] sm:$0xff]   ;;  %v9913_v59 = vld [vmem:[#allocation25 + $0xe4] ss:$16 sps:$4 sm:$0xff]  }
 0xc25   : > { %7499 = vmatmul.mubr.bf16.vlgmr.msra.gmra.mxu0 %v3611_v58  ;;  %v3510_v53 = vrot.slane %v8207_v37, %v9549_v57  ;;  %v3517_v18 = vrot.slane %v8207_v37, %v9552_v5  ;;  %v3598_v50 = vcombine.low %v3570_v31, %v3571_v22  ;;  %v7885_v47 = vld [vmem:[#allocation19 + $0x1b0] sm:$0xff]  }
 0xc26   : > { %7265 = vmatpush3.bf16.msra.mxu0 %v7881_v36 }
 0xc27   : > { %v3572_v38 = vmul.f32 %v9869_v4, %v3510_v53  ;;  %v3573_v42 = vmul.f32 %v9871_v60, %v3517_v18  ;;  %v3600_v4 = vcombine.low %v3574_v62, %v3575_v63  ;;  %7266 = vmatprep.subr.bf16.mxu0 %v7883_v41 }
 0xc28   : > { %v8209_v46 = vpop.eup %8208 }
 0xc29   : > { %v3599_v30 = vcombine.low %v3572_v38, %v3573_v42  ;;  %v3538_v52 = vrot.slane %v8209_v46, %v9549_v57  ;;  %v3545_v40 = vrot.slane %v8209_v46, %v9552_v5  ;;  %v7886_v57 = vld [vmem:[#allocation19 + $0x168] sm:$0xff]  }
 0xc2a   : > { %7267 = vmatpush3.bf16.msra.mxu0 %v7885_v47  ;;  %v7887_v5 = vld [vmem:[#allocation19 + $0x1e8] sm:$0xff]   ;;  %7246 = vmatprep.subr.bf16.mxu1 %v7886_v57 }
 0xc2b   : > { %v3612_v8 = vpack.c.bf16 %v3599_v30, %v3598_v50  ;;  %v3576_v9 = vmul.f32 %v9875_v35, %v3538_v52  ;;  %v3577_v10 = vmul.f32 %v9877_v32, %v3545_v40  ;;  %7268 = vmatprep.subr.bf16.mxu0 %v7887_v5  ;;  %7247 = vmatpush3.bf16.msra.mxu1 %v7888_v44  ;;  %v7890_v35 = vld [vmem:[#allocation19 + $0x160] sm:$0xff]  }
 0xc2c   : > { %v7891_v32 = vld [vmem:[#allocation19 + $0x1e0] sm:$0xff]   ;;  %7248 = vmatprep.subr.bf16.mxu1 %v7890_v35 }
 0xc2d   : > { %7502 = vmatprep.mubr.bf16.mxu0 %v3612_v8  ;;  %v3601_v48 = vcombine.low %v3576_v9, %v3577_v10 }
 0xc2e   : > { %7269 = vmatpush3.bf16.msra.mxu0 %v7889_v12 }
 0xc2f   : > { %v3613_v60 = vpack.c.bf16 %v3601_v48, %v3600_v4  ;;  %7270 = vmatprep.subr.bf16.mxu0 %v7891_v32  ;;  %7249 = vmatpush3.bf16.msra.mxu1 %v7892_v56 }
 0xc30   : > { %7250 = vmatprep.subr.bf16.mxu1 %v7894_v45 }
 0xc31   : > { %7503 = vmatmul.mubr.bf16.gmra.mxu0 %v3613_v60 }
 0xc32   : > { %7271 = vmatpush3.bf16.msra.mxu0 %v7893_v13 }
 0xc33   : > { %7272 = vmatprep.subr.bf16.mxu0 %v7895_v26  ;;  %7251 = vmatpush3.bf16.msra.mxu1 %v7896_v49 }
 0xc34   : > { %7252 = vmatprep.subr.bf16.mxu1 %v7898_v3 }
 0xc36   : > { %7273 = vmatpush3.bf16.msra.mxu0 %v7897_v17 }
 0xc37   : > { %7274 = vmatprep.subr.bf16.mxu0 %v7899_v20  ;;  %7253 = vmatpush3.bf16.msra.mxu1 %v7900_v1  ;;  %v9933_v1 = vld [vmem:[#allocation25 + $0x2e0] ss:$16 sps:$4 sm:$0xff]  }
 0xc38   : > { %7254 = vmatprep.subr.bf16.mxu1 %v7902_v55  ;;  %10884 = vst [vmem:[#allocation49_spill] sm:$0xff] %v9933_v1  ;;  %v9937_v55 = vld [vmem:[#allocation25 + $0x2c4] ss:$16 sps:$4 sm:$0xff]  }
 0xc39   : > { %10885 = vst [vmem:[#allocation50_spill] sm:$0xff] %v9937_v55 }
 0xc3a   : > { %7275 = vmatpush3.bf16.msra.mxu0 %v7901_v11  ;;  %v9935_v11 = vld [vmem:[#allocation25 + $0xe0] ss:$16 sps:$4 sm:$0xff]  }
 0xc3b   : > { %7276 = vmatprep.subr.bf16.mxu0 %v7903_v6  ;;  %7255 = vmatpush3.bf16.msra.mxu1 %v7904_v0  ;;  %v9939_v6 = vld [vmem:[#allocation25 + $0xc4] ss:$16 sps:$4 sm:$0xff]   ;;  %v9945_v0 = vld [vmem:[#allocation25 + $0xc0] ss:$16 sps:$4 sm:$0xff]  }
 0xc3c   : > { %7256 = vmatprep.subr.bf16.mxu1 %v7906_v24  ;;  %v9951_v24 = vld [vmem:[#allocation25 + $0xa4] ss:$16 sps:$4 sm:$0xff]  }
 0xc3d   : > { %10888 = vst [vmem:[#allocation53_spill] sm:$0xff] %v9951_v24 }
 0xc3e   : > { %7277 = vmatpush3.bf16.msra.mxu0 %v7905_v2  ;;  %v9949_v2 = vld [vmem:[#allocation25 + $0x2a4] ss:$16 sps:$4 sm:$0xff]  }
 0xc3f   : > { %7278 = vmatprep.subr.bf16.mxu0 %v7907_v29  ;;  %7257 = vmatpush3.bf16.msra.mxu1 %v7908_v33  ;;  %10887 = vst [vmem:[#allocation52_spill] sm:$0xff] %v9949_v2  ;;  %v10727_v29 = vmov 0   ;;  %v10729_v33 = vmov 0.0|0.0  }
 0xc40   : > { %4923 = vmatprep.subr.bf16.mxu1 %v9913_v59 }
 0xc42   : > { %7279 = vmatpush3.bf16.msra.mxu0 %v7909_v27  ;;  %v9957_v27 = vld [vmem:[#allocation25 + $0x2a0] ss:$16 sps:$4 sm:$0xff]  }
 0xc43   : > { %4964 = vmatprep.subr.bf16.mxu0 %v9911_v23  ;;  %10889 = vst [vmem:[#allocation54_spill] sm:$0xff] %v9957_v27 }
 0xce5   : > { %v7500_v34 = vpop.f32.mrf.mxu0 }
 0xce6   : > { %v3804_v22 = vrot.slane %v7500_v34, %v9668_v16  ;;  %v9959_v34 = vld [vmem:[#allocation25 + $0xa0] ss:$16 sps:$4 sm:$0xff]  }
 0xce7   : > { %v3753_v36 = vpop.f32.mrf.mxu0  ;;  %10890 = vst [vmem:[#allocation55_spill] sm:$0xff] %v9959_v34 }
 0xce8   : > { %v3790_v53 = vrot.slane %v3753_v36, %v9668_v16  ;;  %v9963_v36 = vld [vmem:[#allocation25 + $0x284] ss:$16 sps:$4 sm:$0xff]  }
 0xce9   : > { %v7501_v58 = vpop.f32.mrf.mxu0  ;;  %10891 = vst [vmem:[#allocation56_spill] sm:$0xff] %v9963_v36 }
 0xcea   : > { %v3811_v18 = vrot.slane %v7501_v58, %v9668_v16  ;;  %v9965_v58 = vld [vmem:[#allocation25 + $0x84] ss:$16 sps:$4 sm:$0xff]  }
 0xceb   : > { %v3756_v37 = vpop.f32.mrf.mxu0  ;;  %10892 = vst [vmem:[#allocation57_spill] sm:$0xff] %v9965_v58 }
 0xcec   : > { %v3797_v28 = vrot.slane %v3756_v37, %v9668_v16  ;;  %v3850_v50 = vcombine.low %v3804_v22, %v3811_v18  ;;  %v3851_v30 = vcombine.high %v3804_v22, %v3811_v18  ;;  %v9969_v37 = vld [vmem:[#allocation25 + $0x280] ss:$16 sps:$4 sm:$0xff]   ;;  %v9987_v22 = vld [vmem:[#allocation25 + $0x244] ss:$16 sps:$4 sm:$0xff]  }
 0xced   : > { %10893 = vst [vmem:[#allocation58_spill] sm:$0xff] %v9969_v37  ;;  %v9981_v18 = vld [vmem:[#allocation25 + $0x260] ss:$16 sps:$4 sm:$0xff]   ;;  %10899 = vst [vmem:[#allocation64_spill] sm:$0xff] %v9987_v22 }
 0xcee   : > { %v3848_v38 = vcombine.low %v3790_v53, %v3797_v28  ;;  %v3849_v42 = vcombine.high %v3790_v53, %v3797_v28  ;;  %v3872_v41 = vrot.slane %v3850_v50, %v9677_v21  ;;  %v3879_v7 = vrot.slane %v3851_v30, %v9677_v21  ;;  %v9971_v28 = vld [vmem:[#allocation25 + $0x80] ss:$16 sps:$4 sm:$0xff]   ;;  %v9977_v53 = vld [vmem:[#allocation25 + $0x64] ss:$16 sps:$4 sm:$0xff]   ;;  %10897 = vst [vmem:[#allocation62_spill] sm:$0xff] %v9981_v18 }
 0xcef   : > { %10894 = vst [vmem:[#allocation59_spill] sm:$0xff] %v9971_v28  ;;  %10896 = vst [vmem:[#allocation61_spill] sm:$0xff] %v9977_v53  ;;  %v10005_v50 = vld [vmem:[#allocation25 + $0x220] ss:$16 sps:$4 sm:$0xff]  }
 0xcf0   : > { %v3858_v4 = vrot.slane %v3848_v38, %v9677_v21  ;;  %v3865_v48 = vrot.slane %v3849_v42, %v9677_v21  ;;  %v9989_v38 = vld [vmem:[#allocation25 + $0x44] ss:$16 sps:$4 sm:$0xff]   ;;  %v9993_v42 = vld [vmem:[#allocation25 + $0x240] ss:$16 sps:$4 sm:$0xff]   ;;  %10905 = vst [vmem:[#allocation70_spill] sm:$0xff] %v10005_v50 }
 0xcf1   : > { %v7504_v61 = vpop.f32.mrf.mxu0  ;;  %10900 = vst [vmem:[#allocation65_spill] sm:$0xff] %v9989_v38  ;;  %10901 = vst [vmem:[#allocation66_spill] sm:$0xff] %v9993_v42  ;;  %v10007_v30 = vld [vmem:[#allocation25 + $0x20] ss:$16 sps:$4 sm:$0xff]  }
 0xcf2   : > { %v3832_v62 = vrot.slane %v7504_v61, %v9668_v16  ;;  %v3880_v12 = vcombine.low %v3858_v4, %v3872_v41  ;;  %v3881_v35 = vcombine.high %v3858_v4, %v3872_v41  ;;  %v3883_v32 = vcombine.high %v3865_v48, %v3879_v7  ;;  %v9975_v61 = vld [vmem:[#allocation25 + $0x264] ss:$16 sps:$4 sm:$0xff]   ;;  %10906 = vst [vmem:[#allocation71_spill] sm:$0xff] %v10007_v30 }
 0xcf3   : > { %v3769_v31 = vpop.f32.mrf.mxu0  ;;  %10895 = vst [vmem:[#allocation60_spill] sm:$0xff] %v9975_v61  ;;  %v10025_v4 = vld [vmem:[#allocation25 + $0x1e4] ss:$16 sps:$4 sm:$0xff]  }
 0xcf4   : > { %v3818_v40 = vrot.slane %v3769_v31, %v9668_v16  ;;  %v9983_v31 = vld [vmem:[#allocation25 + $0x60] ss:$16 sps:$4 sm:$0xff]   ;;  %10912 = vst [vmem:[#allocation77_spill] sm:$0xff] %v10025_v4  ;;  %v10037_v41 = vld [vmem:[#allocation25 + $0x1c4] ss:$16 sps:$4 sm:$0xff]  }
 0xcf5   : > { %v7505_v46 = vpop.f32.mrf.mxu0  ;;  %10898 = vst [vmem:[#allocation63_spill] sm:$0xff] %v9983_v31  ;;  %10914 = vst [vmem:[#allocation79_spill] sm:$0xff] %v10037_v41 }
 0xcf6   : > { %v3839_v63 = vrot.slane %v7505_v46, %v9668_v16  ;;  %v9995_v46 = vld [vmem:[#allocation25 + $0x40] ss:$16 sps:$4 sm:$0xff]  }
 0xcf7   : > { %v3772_v52 = vpop.f32.mrf.mxu0  ;;  %10902 = vst [vmem:[#allocation67_spill] sm:$0xff] %v9995_v46 }
 0xcf8   : > { %v3886_v8 = vcombine.low %v3832_v62, %v3839_v63  ;;  %v3887_v9 = vcombine.high %v3832_v62, %v3839_v63  ;;  %v3825_v10 = vrot.slane %v3772_v52, %v9668_v16  ;;  %v3882_v16 = vcombine.low %v3865_v48, %v3879_v7  ;;  %v9999_v62 = vld [vmem:[#allocation25 + $0x224] ss:$16 sps:$4 sm:$0xff]   ;;  %v10029_v48 = vld [vmem:[#allocation25 + $0xe8] ss:$16 sps:$4 sm:$0xff]  }
 0xcf9   : > { %10903 = vst [vmem:[#allocation68_spill] sm:$0xff] %v9999_v62  ;;  %v10001_v63 = vld [vmem:[#allocation25 + $0x24] ss:$16 sps:$4 sm:$0xff]   ;;  %v10042_v7 = vld [vmem:[#allocation25 + $0xc8] ss:$16 sps:$4 sm:$0xff]  }
 0xcfa   : > { %v3884_v60 = vcombine.low %v3818_v40, %v3825_v10  ;;  %v3885_v54 = vcombine.high %v3818_v40, %v3825_v10  ;;  %v3908_v47 = vrot.slane %v3886_v8, %v9677_v21  ;;  %v3915_v57 = vrot.slane %v3887_v9, %v9677_v21  ;;  %10904 = vst [vmem:[#allocation69_spill] sm:$0xff] %v10001_v63  ;;  %v10011_v52 = vld [vmem:[#allocation25 + $0x204] ss:$16 sps:$4 sm:$0xff]   ;;  %v10017_v8 = vld [vmem:[#allocation25 + $0x200] ss:$16 sps:$4 sm:$0xff]  }
 0xcfb   : > { %10907 = vst [vmem:[#allocation72_spill] sm:$0xff] %v10011_v52  ;;  %v10013_v40 = vld [vmem:[#allocation25 + $0x4] ss:$16 sps:$4 sm:$0xff]   ;;  %10909 = vst [vmem:[#allocation74_spill] sm:$0xff] %v10017_v8  ;;  %v10019_v9 = vld [vmem:[#allocation25] ss:$16 sps:$4 sm:$0xff]  }
 0xcfc   : > { %v3894_v5 = vrot.slane %v3884_v60, %v9677_v21  ;;  %v3901_v44 = vrot.slane %v3885_v54, %v9677_v21  ;;  %v9943_v21 = vld [vmem:[#allocation25 + $0x2c0] ss:$16 sps:$4 sm:$0xff]   ;;  %10908 = vst [vmem:[#allocation73_spill] sm:$0xff] %v10013_v40  ;;  %10910 = vst [vmem:[#allocation75_spill] sm:$0xff] %v10019_v9  ;;  %v10023_v10 = vld [vmem:[#allocation25 + $0xec] ss:$16 sps:$4 sm:$0xff]  }
 0xcfd   : > { %10886 = vst [vmem:[#allocation51_spill] sm:$0xff] %v9943_v21  ;;  %10911 = vst [vmem:[#allocation76_spill] sm:$0xff] %v10023_v10  ;;  %v10031_v60 = vld [vmem:[#allocation25 + $0x1e0] ss:$16 sps:$4 sm:$0xff]   ;;  %v10035_v54 = vld [vmem:[#allocation25 + $0xcc] ss:$16 sps:$4 sm:$0xff]  }
 0xcfe   : > { %v3916_v56 = vcombine.low %v3894_v5, %v3908_v47  ;;  %v3918_v13 = vcombine.low %v3901_v44, %v3915_v57  ;;  %v3917_v45 = vcombine.high %v3894_v5, %v3908_v47  ;;  %v3919_v26 = vcombine.high %v3901_v44, %v3915_v57  ;;  %10913 = vst [vmem:[#allocation78_spill] sm:$0xff] %v10031_v60  ;;  %v10044_v47 = vld [vmem:[#allocation25 + $0x1c0] ss:$16 sps:$4 sm:$0xff]   ;;  %v10048_v57 = vld [vmem:[#allocation25 + $0xac] ss:$16 sps:$4 sm:$0xff]  }
 0xcff   : > { %10915 = vst [vmem:[#allocation80_spill] sm:$0xff] %v10044_v47  ;;  %v10050_v5 = vld [vmem:[#allocation25 + $0x1a4] ss:$16 sps:$4 sm:$0xff]   ;;  %v10055_v44 = vld [vmem:[#allocation25 + $0xa8] ss:$16 sps:$4 sm:$0xff]  }
 0xd00   : > { %v3930_v49 = vpack.c.bf16 %v3918_v13, %v3882_v16  ;;  %v3929_v17 = vpack.c.bf16 %v3917_v45, %v3881_v35  ;;  %v3931_v3 = vpack.c.bf16 %v3919_v26, %v3883_v32  ;;  %v3928_v20 = vpack.c.bf16 %v3916_v56, %v3880_v12  ;;  %10916 = vst [vmem:[#allocation81_spill] sm:$0xff] %v10050_v5  ;;  %v10057_v12 = vld [vmem:[#allocation25 + $0x1a0] ss:$16 sps:$4 sm:$0xff]   ;;  %v10061_v16 = vld [vmem:[#allocation25 + $0x8c] ss:$16 sps:$4 sm:$0xff]  }
 0xd01   : > { %10917 = vst [vmem:[#allocation82_spill] sm:$0xff] %v10057_v12  ;;  %v10063_v35 = vld [vmem:[#allocation25 + $0x184] ss:$16 sps:$4 sm:$0xff]   ;;  %v10067_v32 = vld [vmem:[#allocation25 + $0x88] ss:$16 sps:$4 sm:$0xff]  }
 0xd02   : > { %4229 = vmatprep.mubr.bf16.mxu1 %v3929_v17  ;;  %4270 = vmatprep.mubr.bf16.mxu0 %v3931_v3  ;;  %10918 = vst [vmem:[#allocation83_spill] sm:$0xff] %v10063_v35  ;;  %v10069_v56 = vld [vmem:[#allocation25 + $0x180] ss:$16 sps:$4 sm:$0xff]   ;;  %v10073_v13 = vld [vmem:[#allocation25 + $0x6c] ss:$16 sps:$4 sm:$0xff]  }
 0xd03   : > { %4230 = vmatmul.mubr.bf16.vlgmr.msra.gmra.mxu1 %v3928_v20  ;;  %4271 = vmatmul.mubr.bf16.vlgmr.msra.gmra.mxu0 %v3930_v49  ;;  %10919 = vst [vmem:[#allocation84_spill] sm:$0xff] %v10069_v56  ;;  %v10075_v45 = vld [vmem:[#allocation25 + $0x164] ss:$16 sps:$4 sm:$0xff]   ;;  %v10079_v26 = vld [vmem:[#allocation25 + $0x68] ss:$16 sps:$4 sm:$0xff]  }
 0xd04   : > { %4965 = vmatpush1.bf16.msra.mxu0 %v9933_v1  ;;  %4924 = vmatpush1.bf16.msra.mxu1 %v9935_v11  ;;  %10920 = vst [vmem:[#allocation85_spill] sm:$0xff] %v10075_v45  ;;  %v10081_v49 = vld [vmem:[#allocation25 + $0x160] ss:$16 sps:$4 sm:$0xff]   ;;  %v10085_v17 = vld [vmem:[#allocation25 + $0x4c] ss:$16 sps:$4 sm:$0xff]  }
 0xd05   : > { %4966 = vmatprep.subr.bf16.mxu0 %v9937_v55  ;;  %4925 = vmatprep.subr.bf16.mxu1 %v9939_v6  ;;  %10921 = vst [vmem:[#allocation86_spill] sm:$0xff] %v10081_v49  ;;  %v10089_v3 = vld [vmem:[#allocation25 + $0x48] ss:$16 sps:$4 sm:$0xff]   ;;  %v10093_v20 = vld [vmem:[#allocation25 + $0x140] ss:$16 sps:$4 sm:$0xff]  }
 0xd06   : > { %4996 = vmatprep.mubr.bf16.mxu0 %v10727_v29  ;;  %4955 = vmatprep.mubr.bf16.mxu1 %v10729_v33  ;;  %10922 = vst [vmem:[#allocation87_spill] sm:$0xff] %v10093_v20  ;;  %v10101_v29 = vld [vmem:[#allocation25 + $0x28] ss:$16 sps:$4 sm:$0xff]  }
 0xd08   : > { %4967 = vmatpush1.bf16.msra.mxu0 %v9943_v21  ;;  %4926 = vmatpush1.bf16.msra.mxu1 %v9945_v0 }
 0xd09   : > { %4968 = vmatprep.subr.bf16.mxu0 %v9949_v2  ;;  %4927 = vmatprep.subr.bf16.mxu1 %v9951_v24  ;;  %v10216_v24 = vld [vmem:[#allocation25 + $0x208] ss:$16 sps:$4 sm:$0xff]  }
 0xd0a   : > { %10946 = vst [vmem:[#allocation109_spill] sm:$0xff] %v10216_v24 }
 0xd0c   : > { %4969 = vmatpush1.bf16.msra.mxu0 %v9957_v27  ;;  %4928 = vmatpush1.bf16.msra.mxu1 %v9959_v34  ;;  %v10206_v34 = vld [vmem:[#allocation25 + $0x228] ss:$16 sps:$4 sm:$0xff]  }
 0xd0d   : > { %4970 = vmatprep.subr.bf16.mxu0 %v9963_v36  ;;  %4929 = vmatprep.subr.bf16.mxu1 %v9965_v58  ;;  %v10203_v58 = vld [vmem:[#allocation25 + $0x10c] ss:$16 sps:$4 sm:$0xff]   ;;  %10943 = vst [vmem:[#allocation106_spill] sm:$0xff] %v10206_v34 }
 0xd10   : > { %4971 = vmatpush1.bf16.msra.mxu0 %v9969_v37  ;;  %4930 = vmatpush1.bf16.msra.mxu1 %v9971_v28  ;;  %v10194_v28 = vld [vmem:[#allocation25 + $0x248] ss:$16 sps:$4 sm:$0xff]  }
 0xd11   : > { %4972 = vmatprep.subr.bf16.mxu0 %v9975_v61  ;;  %4931 = vmatprep.subr.bf16.mxu1 %v9977_v53  ;;  %v10191_v53 = vld [vmem:[#allocation25 + $0x12c] ss:$16 sps:$4 sm:$0xff]   ;;  %10941 = vst [vmem:[#allocation104_spill] sm:$0xff] %v10194_v28 }
 0xd14   : > { %4973 = vmatpush1.bf16.msra.mxu0 %v9981_v18  ;;  %4932 = vmatpush1.bf16.msra.mxu1 %v9983_v31  ;;  %v10182_v31 = vld [vmem:[#allocation25 + $0x268] ss:$16 sps:$4 sm:$0xff]  }
 0xd15   : > { %4974 = vmatprep.subr.bf16.mxu0 %v9987_v22  ;;  %4933 = vmatprep.subr.bf16.mxu1 %v9989_v38  ;;  %v10179_v38 = vld [vmem:[#allocation25 + $0x14c] ss:$16 sps:$4 sm:$0xff]   ;;  %10939 = vst [vmem:[#allocation102_spill] sm:$0xff] %v10182_v31 }
 0xd18   : > { %4975 = vmatpush1.bf16.msra.mxu0 %v9993_v42  ;;  %4934 = vmatpush1.bf16.msra.mxu1 %v9995_v46  ;;  %v10170_v46 = vld [vmem:[#allocation25 + $0x288] ss:$16 sps:$4 sm:$0xff]  }
 0xd19   : > { %4976 = vmatprep.subr.bf16.mxu0 %v9999_v62  ;;  %4935 = vmatprep.subr.bf16.mxu1 %v10001_v63  ;;  %v10167_v63 = vld [vmem:[#allocation25 + $0x16c] ss:$16 sps:$4 sm:$0xff]   ;;  %10937 = vst [vmem:[#allocation100_spill] sm:$0xff] %v10170_v46 }
 0xd1c   : > { %4977 = vmatpush1.bf16.msra.mxu0 %v10005_v50  ;;  %4936 = vmatpush1.bf16.msra.mxu1 %v10007_v30  ;;  %v10161_v30 = vld [vmem:[#allocation25 + $0x28c] ss:$16 sps:$4 sm:$0xff]  }
 0xd1d   : > { %4978 = vmatprep.subr.bf16.mxu0 %v10011_v52  ;;  %4937 = vmatprep.subr.bf16.mxu1 %v10013_v40  ;;  %v10155_v40 = vld [vmem:[#allocation25 + $0x18c] ss:$16 sps:$4 sm:$0xff]   ;;  %10936 = vst [vmem:[#allocation99_spill] sm:$0xff] %v10161_v30 }
 0xd20   : > { %4979 = vmatpush1.bf16.msra.mxu0 %v10017_v8  ;;  %4938 = vmatpush1.bf16.msra.mxu1 %v10019_v9  ;;  %v10152_v9 = vld [vmem:[#allocation25 + $0x1a8] ss:$16 sps:$4 sm:$0xff]  }
 0xd21   : > { %5005 = vmatprep.subr.bf16.mxu0 %v10023_v10  ;;  %4939 = vmatprep.subr.bf16.mxu1 %v10025_v4  ;;  %v10934_v4 = vmov 0  }
 0xd23   : > { %4997 = vmatmul.mubr.bf16.vlgmr.msra.gmra.mxu0 %v10729_v33 }
 0xd24   : > { %5006 = vmatpush1.bf16.msra.mxu0 %v10029_v48  ;;  %4940 = vmatpush2.bf16.msra.mxu1 %v10031_v60  ;;  %v10139_v60 = vld [vmem:[#allocation25 + $0x2cc] ss:$16 sps:$4 sm:$0xff]  }
 0xd25   : > { %5007 = vmatprep.subr.bf16.mxu0 %v10035_v54  ;;  %4941 = vmatprep.subr.bf16.mxu1 %v10037_v41  ;;  %v10930_v41 = vmov 0.0|0.0   ;;  %10931 = vst [vmem:[#allocation95_spill] sm:$0xff] %v10139_v60 }
 0xd26   : > { %5037 = vmatprep.mubr.bf16.mxu0 %v10729_v33  ;;  %v10104_v33 = vld [vmem:[#allocation25 + $0x124] ss:$16 sps:$4 sm:$0xff]  }
 0xd27   : > { %10924 = vst [vmem:[#allocation89_spill] sm:$0xff] %v10104_v33 }
 0xd28   : > { %5008 = vmatpush1.bf16.msra.mxu0 %v10042_v7  ;;  %4942 = vmatpush2.bf16.msra.mxu1 %v10044_v47  ;;  %v10136_v47 = vld [vmem:[#allocation25 + $0x1cc] ss:$16 sps:$4 sm:$0xff]  }
 0xd29   : > { %5009 = vmatprep.subr.bf16.mxu0 %v10048_v57  ;;  %4943 = vmatprep.subr.bf16.mxu1 %v10050_v5  ;;  %v10134_v5 = vld [vmem:[#allocation25 + $0x1c8] ss:$16 sps:$4 sm:$0xff]  }
 0xd2c   : > { %5010 = vmatpush1.bf16.msra.mxu0 %v10055_v44  ;;  %4944 = vmatpush2.bf16.msra.mxu1 %v10057_v12  ;;  %v10123_v12 = vld [vmem:[#allocation25 + $0x1ec] ss:$16 sps:$4 sm:$0xff]  }
 0xd2d   : > { %5011 = vmatprep.subr.bf16.mxu0 %v10061_v16  ;;  %4945 = vmatprep.subr.bf16.mxu1 %v10063_v35  ;;  %v10121_v35 = vld [vmem:[#allocation25 + $0x1e8] ss:$16 sps:$4 sm:$0xff]  }
 0xd30   : > { %5012 = vmatpush1.bf16.msra.mxu0 %v10067_v32  ;;  %4946 = vmatpush2.bf16.msra.mxu1 %v10069_v56  ;;  %v10119_v56 = vld [vmem:[#allocation25 + $0x100] ss:$16 sps:$4 sm:$0xff]  }
 0xd31   : > { %5013 = vmatprep.subr.bf16.mxu0 %v10073_v13  ;;  %4947 = vmatprep.subr.bf16.mxu1 %v10075_v45  ;;  %v10110_v45 = vld [vmem:[#allocation25 + $0xc] ss:$16 sps:$4 sm:$0xff]   ;;  %10927 = vst [vmem:[#allocation92_spill] sm:$0xff] %v10119_v56 }
 0xd34   : > { %5014 = vmatpush1.bf16.msra.mxu0 %v10079_v26  ;;  %4948 = vmatpush2.bf16.msra.mxu1 %v10081_v49  ;;  %v10107_v49 = vld [vmem:[#allocation25 + $0x120] ss:$16 sps:$4 sm:$0xff]  }
 0xd35   : > { %5015 = vmatprep.subr.bf16.mxu0 %v10085_v17  ;;  %4949 = vmatprep.subr.bf16.mxu1 %v10095_v25  ;;  %10925 = vst [vmem:[#allocation90_spill] sm:$0xff] %v10107_v49  ;;  %v10113_v25 = vld [vmem:[#allocation25 + $0x8] ss:$16 sps:$4 sm:$0xff]  }
 0xd38   : > { %5016 = vmatpush1.bf16.msra.mxu0 %v10089_v3  ;;  %4950 = vmatpush2.bf16.msra.mxu1 %v10093_v20  ;;  %v10116_v20 = vld [vmem:[#allocation25 + $0x104] ss:$16 sps:$4 sm:$0xff]  }
 0xd39   : > { %5017 = vmatprep.subr.bf16.mxu0 %v10098_v51  ;;  %4951 = vmatprep.subr.bf16.mxu1 %v10104_v33  ;;  %10926 = vst [vmem:[#allocation91_spill] sm:$0xff] %v10116_v20  ;;  %v10126_v33 = vld [vmem:[#allocation25 + $0x2ec] ss:$16 sps:$4 sm:$0xff]  }
 0xd3a   : > { %10928 = vst [vmem:[#allocation93_spill] sm:$0xff] %v10126_v33 }
 0xd3c   : > { %5018 = vmatpush1.bf16.msra.mxu0 %v10101_v29  ;;  %4952 = vmatpush2.bf16.msra.mxu1 %v10107_v49  ;;  %v10130_v49 = vld [vmem:[#allocation25 + $0x2e8] ss:$16 sps:$4 sm:$0xff]  }
 0xd3d   : > { %5019 = vmatprep.subr.bf16.mxu0 %v10110_v45  ;;  %4953 = vmatprep.subr.bf16.mxu1 %v10116_v20  ;;  %10929 = vst [vmem:[#allocation94_spill] sm:$0xff] %v10130_v49  ;;  %v10141_v20 = vld [vmem:[#allocation25 + $0x1ac] ss:$16 sps:$4 sm:$0xff]  }
 0xd40   : > { %5020 = vmatpush1.bf16.msra.mxu0 %v10113_v25  ;;  %4954 = vmatpush2.bf16.msra.mxu1 %v10119_v56  ;;  %v10145_v56 = vld [vmem:[#allocation25 + $0x2c8] ss:$16 sps:$4 sm:$0xff]  }
 0xd41   : > { %5021 = vmatprep.subr.bf16.mxu0 %v10123_v12  ;;  %5046 = vmatprep.subr.bf16.mxu1 %v10126_v33  ;;  %10932 = vst [vmem:[#allocation96_spill] sm:$0xff] %v10145_v56  ;;  %v10148_v33 = vld [vmem:[#allocation25 + $0x2ac] ss:$16 sps:$4 sm:$0xff]  }
 0xd42   : > { %10933 = vst [vmem:[#allocation97_spill] sm:$0xff] %v10148_v33 }
 0xd43   : > { %4956 = vmatmul.mubr.bf16.vlgmr.msra.gmra.mxu1 %v10930_v41 }
 0xd44   : > { %5022 = vmatpush2.bf16.msra.mxu0 %v10121_v35  ;;  %5047 = vmatpush1.bf16.msra.mxu1 %v10130_v49  ;;  %v10158_v49 = vld [vmem:[#allocation25 + $0x2a8] ss:$16 sps:$4 sm:$0xff]  }
 0xd45   : > { %5023 = vmatprep.subr.bf16.mxu0 %v10136_v47  ;;  %5048 = vmatprep.subr.bf16.mxu1 %v10139_v60  ;;  %10935 = vst [vmem:[#allocation98_spill] sm:$0xff] %v10158_v49  ;;  %v10164_v60 = vld [vmem:[#allocation25 + $0x188] ss:$16 sps:$4 sm:$0xff]  }
 0xd46   : > { %5078 = vmatprep.mubr.bf16.mxu1 %v10934_v4 }
 0xd48   : > { %5024 = vmatpush2.bf16.msra.mxu0 %v10134_v5  ;;  %5049 = vmatpush1.bf16.msra.mxu1 %v10145_v56  ;;  %v10173_v56 = vld [vmem:[#allocation25 + $0x26c] ss:$16 sps:$4 sm:$0xff]  }
 0xd49   : > { %5025 = vmatprep.subr.bf16.mxu0 %v10141_v20  ;;  %5050 = vmatprep.subr.bf16.mxu1 %v10148_v33  ;;  %10938 = vst [vmem:[#allocation101_spill] sm:$0xff] %v10173_v56  ;;  %v10176_v33 = vld [vmem:[#allocation25 + $0x168] ss:$16 sps:$4 sm:$0xff]  }
 0xd4c   : > { %5026 = vmatpush2.bf16.msra.mxu0 %v10152_v9  ;;  %5051 = vmatpush1.bf16.msra.mxu1 %v10158_v49  ;;  %v10185_v49 = vld [vmem:[#allocation25 + $0x24c] ss:$16 sps:$4 sm:$0xff]  }
 0xd4d   : > { %5027 = vmatprep.subr.bf16.mxu0 %v10155_v40  ;;  %5052 = vmatprep.subr.bf16.mxu1 %v10161_v30  ;;  %10940 = vst [vmem:[#allocation103_spill] sm:$0xff] %v10185_v49  ;;  %v10188_v30 = vld [vmem:[#allocation25 + $0x148] ss:$16 sps:$4 sm:$0xff]  }
 0xd50   : > { %5028 = vmatpush2.bf16.msra.mxu0 %v10164_v60  ;;  %5053 = vmatpush1.bf16.msra.mxu1 %v10170_v46  ;;  %v10197_v46 = vld [vmem:[#allocation25 + $0x22c] ss:$16 sps:$4 sm:$0xff]  }
 0xd51   : > { %5029 = vmatprep.subr.bf16.mxu0 %v10167_v63  ;;  %5054 = vmatprep.subr.bf16.mxu1 %v10173_v56  ;;  %10942 = vst [vmem:[#allocation105_spill] sm:$0xff] %v10197_v46  ;;  %v10200_v56 = vld [vmem:[#allocation25 + $0x128] ss:$16 sps:$4 sm:$0xff]  }
 0xd54   : > { %5030 = vmatpush2.bf16.msra.mxu0 %v10176_v33  ;;  %5055 = vmatpush1.bf16.msra.mxu1 %v10182_v31  ;;  %v10209_v31 = vld [vmem:[#allocation25 + $0x20c] ss:$16 sps:$4 sm:$0xff]  }
 0xd55   : > { %5031 = vmatprep.subr.bf16.mxu0 %v10179_v38  ;;  %5056 = vmatprep.subr.bf16.mxu1 %v10185_v49  ;;  %10944 = vst [vmem:[#allocation107_spill] sm:$0xff] %v10209_v31  ;;  %v10212_v49 = vld [vmem:[#allocation25 + $0x108] ss:$16 sps:$4 sm:$0xff]  }
 0xd56   : > { %10945 = vst [vmem:[#allocation108_spill] sm:$0xff] %v10212_v49 }
 0xd58   : > { %5032 = vmatpush2.bf16.msra.mxu0 %v10188_v30  ;;  %5057 = vmatpush1.bf16.msra.mxu1 %v10194_v28 }
 0xd59   : > { %5033 = vmatprep.subr.bf16.mxu0 %v10191_v53  ;;  %5058 = vmatprep.subr.bf16.mxu1 %v10197_v46 }
 0xd5c   : > { %5034 = vmatpush2.bf16.msra.mxu0 %v10200_v56  ;;  %5059 = vmatpush1.bf16.msra.mxu1 %v10206_v34 }
 0xd5d   : > { %5035 = vmatprep.subr.bf16.mxu0 %v10203_v58  ;;  %5060 = vmatprep.subr.bf16.mxu1 %v10209_v31  ;;  %v6929_v31 = vld [vmem:[#allocation21 + $0x1] ss:$0 sm:$0xff] }
 0xd60   : > { %5036 = vmatpush2.bf16.msra.mxu0 %v10212_v49  ;;  %5061 = vmatpush1.bf16.msra.mxu1 %v10216_v24 }
 0xd61   : > { %5309 = vmatprep.subr.bf16.mxu0 %v9911_v23  ;;  %7506 = vmatprep.subr.mxu1 %v10883_v43 }
 0xd63   : > { %5038 = vmatmul.mubr.bf16.vlgmr.msra.gmra.mxu0 %v10930_v41  ;;  %5079 = vmatmul.mubr.bf16.vlgmr.msra.gmra.mxu1 %v10930_v41 }
 0xd64   : > { %5310 = vmatpush1.bf16.msra.mxu0 %v9933_v1  ;;  %5341 = vmatprep.mubr.bf16.mxu0 %v10934_v4 }
 0xd65   : > { %5311 = vmatprep.subr.bf16.mxu0 %v9937_v55  ;;  %7510 = vmatprep.mubr.msk.f32.mxu1 %vm8936_vm0, %v10883_v43 }
 0xd68   : > { %5312 = vmatpush1.bf16.msra.mxu0 %v9943_v21  ;;  %v4421_v21 = vld [vmem:[#allocation27] sm:$0xf] }
 0xd69   : > { %5313 = vmatprep.subr.bf16.mxu0 %v9949_v2 }
 0xd6c   : > { %5314 = vmatpush1.bf16.msra.mxu0 %v9957_v27 }
 0xd6d   : > { %5315 = vmatprep.subr.bf16.mxu0 %v9963_v36 }
 0xd70   : > { %5316 = vmatpush1.bf16.msra.mxu0 %v9969_v37 }
 0xd71   : > { %5317 = vmatprep.subr.bf16.mxu0 %v9975_v61 }
 0xd74   : > { %5318 = vmatpush1.bf16.msra.mxu0 %v9981_v18 }
 0xd75   : > { %5319 = vmatprep.subr.bf16.mxu0 %v9987_v22 }
 0xd78   : > { %5320 = vmatpush1.bf16.msra.mxu0 %v9993_v42 }
 0xd79   : > { %5321 = vmatprep.subr.bf16.mxu0 %v9999_v62 }
 0xd7c   : > { %5322 = vmatpush1.bf16.msra.mxu0 %v10005_v50 }
 0xd7d   : > { %5323 = vmatprep.subr.bf16.mxu0 %v10011_v52 }
 0xd80   : > { %5324 = vmatpush1.bf16.msra.mxu0 %v10017_v8 }
 0xd81   : > { %5350 = vmatprep.subr.bf16.mxu0 %v10023_v10 }
 0xdc3   : > { %v7258_v41 = vpop.f32.mrf.mxu1  ;;  %v7280_v24 = vpop.f32.mrf.mxu0 }
 0xdc5   : > { %v7259_v34 = vpop.f32.mrf.mxu1  ;;  %v7281_v46 = vpop.f32.mrf.mxu0 }
 0xdc6   : > { %v7260_v28 = vadd.f32 %v7259_v34, %v7258_v41  ;;  %v7282_v42 = vadd.f32 %v7281_v46, %v7280_v24  ;;  %v10817_v24 = vsub.s32 1, %v9413_v19 }
 0xdc7   : > { %v7261_v18 = vpop.f32.mrf.mxu1  ;;  %v7283_v22 = vpop.f32.mrf.mxu0 }
 0xdc8   : > { %v4232_v61 = vadd.f32 %v7260_v28, %v6929_v31  ;;  %v10252_v28 = vrot.slane %v4421_v21, %v9426_v39 }
 0xdc9   : > { %v7262_v37 = vpop.f32.mrf.mxu1  ;;  %v7284_v62 = vpop.f32.mrf.mxu0 }
 0xdca   : > { %v7263_v36 = vadd.f32 %v7262_v37, %v7261_v18  ;;  %v10244_v50 = vadd.f32 %v7282_v42, %v4232_v61  ;;  %v7285_v27 = vadd.f32 %v7284_v62, %v7283_v22  ;;  %10947 = vst [vmem:[#allocation110_spill] sm:$0xff] %v10252_v28 }
 0xdcc   : > { %v4235_v52 = vadd.f32 %v7263_v36, %v6929_v31  ;;  %4279 = vadd.xlane.f32.xlu1 %v10244_v50  ;;  %v10256_v36 = vrot.slane %v4421_v21, %v10817_v24  ;;  %v4917_v24 = vsub.s32 3, %v9413_v19 }
 0xdce   : > { %v10247_v10 = vadd.f32 %v7285_v27, %v4235_v52 }
 0xdd0   : > { %4281 = vadd.xlane.f32.xlu0 %v10247_v10 }
 0xde3   : > { %v4998_v8 = vpop.f32.mrf.mxu0 }
 0xde5   : > { %v5000_v2 = vpop.f32.mrf.mxu0 }
 0xde7   : > { %v5002_v34 = vpop.f32.mrf.mxu0 }
 0xde8   : > { %v4913_v34 = vsub.s32 2, %v9413_v19 }
 0xde9   : > { %v5003_v41 = vpop.f32.mrf.mxu0 }
 0xdea   : > { %v10262_v1 = vrot.slane %v4421_v21, %v4913_v34 }
 0xe03   : > { %v4957_v37 = vpop.f32.mrf.mxu1 }
 0xe04   : > { %v4958_v27 = vadd.f32 %v4957_v37, %v10252_v28  ;;  %v10264_v28 = vrot.slane %v4421_v21, %v4917_v24 }
 0xe05   : > { %v4959_v61 = vpop.f32.mrf.mxu1 }
 0xe06   : > { %v4960_v18 = vadd.f32 %v4959_v61, %v10256_v36  ;;  %v4999_v22 = vadd.f32 %v4998_v8, %v4958_v27 }
 0xe07   : > { %v4961_v31 = vpop.f32.mrf.mxu1 }
 0xe08   : > { %v5001_v42 = vadd.f32 %v5000_v2, %v4960_v18  ;;  %v7060_v52 = vmul.f32 -1.442695, %v4999_v22 }
 0xe09   : > { %v4962_v46 = vpop.f32.mrf.mxu1 }
 0xe0a   : > { %v7061_v62 = vmul.f32 -1.442695, %v5001_v42 }
 0xe0c   : > { %8210 = vpow2.f32 %v7061_v62 }
 0xe0d   : > { %8212 = vpow2.f32 %v7060_v52 }
 0xe19   : > { %v8211_v41 = vpop.eup %8210 }
 0xe1a   : > { %v8213_v39 = vpop.eup %8212  ;;  %v5096_v55 = vadd.f32 1.0, %v8211_v41 }
 0xe1b   : > { %v5090_v37 = vadd.f32 1.0, %v8213_v39 }
 0xe1c   : > { %8214 = vrcp.f32 %v5096_v55 }
 0xe1d   : > { %8216 = vrcp.f32 %v5090_v37 }
 0xe23   : > { %v5039_v61 = vpop.f32.mrf.mxu0  ;;  %v5080_v27 = vpop.f32.mrf.mxu1 }
 0xe24   : > { %v5040_v2 = vadd.f32 %v5039_v61, %v10262_v1 }
 0xe25   : > { %v5041_v8 = vpop.f32.mrf.mxu0  ;;  %v5082_v22 = vpop.f32.mrf.mxu1 }
 0xe26   : > { %v5042_v18 = vadd.f32 %v5041_v8, %v10264_v28  ;;  %v5081_v31 = vadd.f32 %v5080_v27, %v5040_v2 }
 0xe27   : > { %v5043_v42 = vpop.f32.mrf.mxu0  ;;  %v5084_v52 = vpop.f32.mrf.mxu1 }
 0xe28   : > { %8218 = vtanh.f32 %v5081_v31  ;;  %v5083_v46 = vadd.f32 %v5082_v22, %v5042_v18 }
 0xe29   : > { %v5044_v62 = vpop.f32.mrf.mxu0  ;;  %v5085_v39 = vpop.f32.mrf.mxu1 }
 0xe2a   : > { %v7062_v34 = vmul.f32 -1.442695, %v5083_v46  ;;  %v8215_v21 = vpop.eup %8214 }
 0xe2b   : > { %v8217_v24 = vpop.eup %8216  ;;  %v5106_v55 = vmul.f32 0.0, %v8215_v21 }
 0xe2c   : > { %8220 = vpow2.f32 %v7062_v34 }
 0xe35   : > { %v8219_v41 = vpop.eup %8218 }
 0xe36   : > { %v5107_v61 = vmul.f32 %v8219_v41, %v8217_v24 }
 0xe38   : > { %v10268_v19 = vadd.f32 %v5107_v61, %v5106_v55 }
 0xe39   : > { %v8221_v37 = vpop.eup %8220 }
 0xe3a   : > { %8222 = vtanh.f32 %v10268_v19  ;;  %v5103_v2 = vadd.f32 1.0, %v8221_v37 }
 0xe3c   : > { %8224 = vrcp.f32 %v5103_v2 }
 0xe47   : > { %v8223_v8 = vpop.eup %8222 }
 0xe49   : > { %v8225_v27 = vpop.eup %8224 }
 0xe4a   : > { %v10271_v22 = vmul.f32 %v8225_v27, %v8223_v8  ;;  %v6962_v8 = vld [vmem:[#allocation22 + $0x1] ss:$0 sm:$0xff] }
 0xe4c   : > { %v10276_v46 = vpack.c.bf16 %v10271_v22, %v10271_v22 }
 0xe4e   : > { %5342 = vmatmul.mubr.bf16.vlgmr.msra.gmra.mxu0 %v10276_v46 }
 0xe4f   : > { %5351 = vmatpush1.bf16.msra.mxu0 %v10029_v48 }
 0xe50   : > { %5352 = vmatprep.subr.bf16.mxu0 %v10035_v54 }
 0xe53   : > { %5353 = vmatpush1.bf16.msra.mxu0 %v10042_v7 }
 0xe54   : > { %5354 = vmatprep.subr.bf16.mxu0 %v10048_v57 }
 0xe55   : > { %v4280_v18 = vpop.xlane.xlu1 %4279 }
 0xe56   : > { %v4283_v31 = vmul.f32 0.0078125, %v4280_v18 }
 0xe57   : > { %5355 = vmatpush1.bf16.msra.mxu0 %v10055_v44 }
 0xe58   : > { %v4285_v42 = vsub.f32 %v10244_v50, %v4283_v31  ;;  %5356 = vmatprep.subr.bf16.mxu0 %v10061_v16 }
 0xe59   : > { %v4282_v62 = vpop.xlane.xlu0 %4281 }
 0xe5a   : > { %v4284_v52 = vmul.f32 0.0078125, %v4282_v62  ;;  %v4287_v34 = vmul.f32 %v4285_v42, %v4285_v42  ;;  %v6963_v62 = vld [vmem:[#allocation24 + $0x1] ss:$0 sm:$0xff] }
 0xe5b   : > { %5357 = vmatpush1.bf16.msra.mxu0 %v10067_v32 }
 0xe5c   : > { %v4286_v39 = vsub.f32 %v10247_v10, %v4284_v52  ;;  %4289 = vadd.xlane.f32.xlu1 %v4287_v34  ;;  %5358 = vmatprep.subr.bf16.mxu0 %v10073_v13 }
 0xe5e   : > { %v4288_v21 = vmul.f32 %v4286_v39, %v4286_v39 }
 0xe5f   : > { %5359 = vmatpush1.bf16.msra.mxu0 %v10079_v26 }
 0xe60   : > { %4291 = vadd.xlane.f32.xlu0 %v4288_v21  ;;  %5360 = vmatprep.subr.bf16.mxu0 %v10085_v17 }
 0xe63   : > { %5361 = vmatpush1.bf16.msra.mxu0 %v10089_v3 }
 0xe64   : > { %5362 = vmatprep.subr.bf16.mxu0 %v10098_v51 }
 0xe67   : > { %5363 = vmatpush1.bf16.msra.mxu0 %v10101_v29 }
 0xe68   : > { %5364 = vmatprep.subr.bf16.mxu0 %v10110_v45 }
 0xe6b   : > { %5365 = vmatpush1.bf16.msra.mxu0 %v10113_v25 }
 0xe6c   : > { %5366 = vmatprep.subr.bf16.mxu0 %v10123_v12 }
 0xe6f   : > { %5367 = vmatpush2.bf16.msra.mxu0 %v10121_v35 }
 0xe70   : > { %5368 = vmatprep.subr.bf16.mxu0 %v10136_v47 }
 0xe73   : > { %5369 = vmatpush2.bf16.msra.mxu0 %v10134_v5 }
 0xe74   : > { %5370 = vmatprep.subr.bf16.mxu0 %v10141_v20 }
 0xe77   : > { %5371 = vmatpush2.bf16.msra.mxu0 %v10152_v9 }
 0xe78   : > { %5372 = vmatprep.subr.bf16.mxu0 %v10155_v40 }
 0xe7b   : > { %5373 = vmatpush2.bf16.msra.mxu0 %v10164_v60 }
 0xe7c   : > { %5374 = vmatprep.subr.bf16.mxu0 %v10167_v63 }
 0xe7f   : > { %5375 = vmatpush2.bf16.msra.mxu0 %v10176_v33 }
 0xe80   : > { %5376 = vmatprep.subr.bf16.mxu0 %v10179_v38 }
 0xe83   : > { %5377 = vmatpush2.bf16.msra.mxu0 %v10188_v30 }
 0xe84   : > { %5378 = vmatprep.subr.bf16.mxu0 %v10191_v53 }
 0xe87   : > { %5379 = vmatpush2.bf16.msra.mxu0 %v10200_v56 }
 0xe88   : > { %5380 = vmatprep.subr.bf16.mxu0 %v10203_v58 }
 0xe8b   : > { %5381 = vmatpush2.bf16.msra.mxu0 %v10212_v49 }
 0xe8c   : > { %5653 = vmatprep.subr.bf16.mxu0 %v9911_v23  ;;  %v10948_v23 = vmax.f32 %v9695_v15, 0.0 }
 0xee5   : > { %v4290_v50 = vpop.xlane.xlu1 %4289 }
 0xee6   : > { %v4293_v10 = vmul.f32 0.0078125, %v4290_v50 }
 0xee8   : > { %v4295_v24 = vadd.f32 1e-05, %v4293_v10  ;;  %v10949_v10 = vmax.f32 %v9692_v14, 0.0 }
 0xee9   : > { %v4292_v55 = vpop.xlane.xlu0 %4291 }
 0xeea   : > { %8226 = vrsqrt.f32 %v4295_v24  ;;  %v4294_v41 = vmul.f32 0.0078125, %v4292_v55 }
 0xeec   : > { %v4296_v61 = vadd.f32 1e-05, %v4294_v41 }
 0xeee   : > { %8228 = vrsqrt.f32 %v4296_v61 }
 0xef7   : > { %v8227_v37 = vpop.eup %8226 }
 0xef8   : > { %v4299_v2 = vmul.f32 %v8227_v37, %v4285_v42 }
 0xefa   : > { %v4309_v18 = vmul.f32 %v6962_v8, %v4299_v2 }
 0xefb   : > { %v8229_v27 = vpop.eup %8228 }
 0xefc   : > { %v4300_v31 = vmul.f32 %v8229_v27, %v4286_v39  ;;  %v4319_v34 = vadd.f32 %v6963_v62, %v4309_v18 }
 0xefe   : > { %v4310_v52 = vmul.f32 %v6962_v8, %v4300_v31  ;;  %v4321_v24 = vadd.f32 %v4319_v34, %v10949_v10  ;;  %v10952_v34 = vld [vmem:[#allocation57_spill] sm:$0xff]  ;;  %v10955_v10 = vld [vmem:[#allocation63_spill] sm:$0xff] }
 0xf00   : > { %v4320_v21 = vadd.f32 %v6963_v62, %v4310_v52  ;;  %v10320_v42 = vmax.f32 %v4321_v24, 0.0  ;;  %v10950_v62 = vld [vmem:[#allocation53_spill] sm:$0xff]  ;;  %v10951_v52 = vld [vmem:[#allocation55_spill] sm:$0xff] }
 0xf01   : > { %v10956_v24 = vld [vmem:[#allocation65_spill] sm:$0xff] }
 0xf02   : > { %v4322_v49 = vadd.f32 %v4320_v21, %v10948_v23  ;;  %v10953_v21 = vld [vmem:[#allocation59_spill] sm:$0xff]  ;;  %v10954_v23 = vld [vmem:[#allocation61_spill] sm:$0xff] }
 0xf04   : > { %v10314_v50 = vmax.f32 %v4322_v49, 0.0 }
 0xf06   : > { %7507 = vmatpush3.xpose.msra.mxu1 %v10314_v50 }
 0xf07   : > { %7508 = vmatprep.subr.mxu1 %v10883_v43 }
 0xf0a   : > { %7509 = vmatpush3.xpose.msra.mxu1 %v10320_v42 }
 0xf0b   : > { %7513 = vmatprep.subr.mxu1 %v10883_v43 }
 0xf0d   : > { %7511 = vmatmul.mubr.f32.vlgmr.msra.gmra.mxu1 %v10271_v22 }
 0xf0e   : > { %7514 = vmatpush3.msra.mxu1 %v10314_v50  ;;  %7517 = vmatprep.mubr.msk.f32.mxu1 %vm8936_vm0, %v10883_v43  ;;  %v10331_v14 = vpop.f32.mrf.mxu0 }
 0xf0f   : > { %7515 = vmatprep.subr.mxu1 %v10883_v43 }
 0xf10   : > { %7516 = vmatpush3.msra.mxu1 %v10320_v42  ;;  %v10333_v15 = vpop.f32.mrf.mxu0 }
 0xf11   : > { %5268 = vmatprep.subr.bf16.mxu1 %v9913_v59 }
 0xf12   : > { %v5347_v49 = vpop.f32.mrf.mxu0 }
 0xf13   : > { %v10957_v49 = vld [vmem:[#allocation67_spill] sm:$0xff] }
 0xf14   : > { %v5348_v39 = vpop.f32.mrf.mxu0 }
 0xf15   : > { %v10961_v39 = vld [vmem:[#allocation75_spill] sm:$0xff] }
 0xfcd   : > { %v5177_v55 = vpop.f32.mrf.mxu1 }
 0xfce   : > { %v5182_v22 = vsel %vm5181_vm9, %v5177_v55, -inf }
 0xfcf   : > { %5183 = vmax.xlane.f32.xlu0 %v5182_v22  ;;  %v7512_v41 = vpop.f32.mrf.mxu1  ;;  %v10963_v22 = vld [vmem:[#allocation78_spill] sm:$0xff] }
 0xfd0   : > { %v10964_v41 = vld [vmem:[#allocation79_spill] sm:$0xff] }
0x1058   : > { %v5184_v61 = vpop.xlane.xlu0 %5183 }
0x1059   : > { %v5185_v37 = vsub.f32 %v5177_v55, %v5184_v61  ;;  %v10962_v55 = vld [vmem:[#allocation77_spill] sm:$0xff]  ;;  %v10965_v61 = vld [vmem:[#allocation80_spill] sm:$0xff] }
0x105b   : > { %v5186_v2 = vmul.f32 1.442695, %v5185_v37  ;;  %v10966_v37 = vld [vmem:[#allocation81_spill] sm:$0xff] }
0x105d   : > { %8230 = vpow2.f32 %v5186_v2  ;;  %v10967_v2 = vld [vmem:[#allocation82_spill] sm:$0xff] }
0x106a   : > { %v8231_v8 = vpop.eup %8230 }
0x106b   : > { %v5188_v27 = vsel %vm5181_vm9, %v8231_v8, 0.0 }
0x106c   : > { %5189 = vadd.xlane.f32.xlu1 %v5188_v27  ;;  %v10969_v27 = vld [vmem:[#allocation84_spill] sm:$0xff] }
0x10f5   : > { %v5190_v59 = vpop.xlane.xlu1 %5189 }
0x10f6   : > { %8232 = vrcp.f32 %v5190_v59  ;;  %v10970_v59 = vld [vmem:[#allocation85_spill] sm:$0xff] }
0x1103   : > { %v8233_v18 = vpop.eup %8232 }
0x1104   : > { %v5192_v31 = vmul.f32 %v8233_v18, %v8231_v8  ;;  %v10968_v8 = vld [vmem:[#allocation83_spill] sm:$0xff]  ;;  %v10971_v18 = vld [vmem:[#allocation86_spill] sm:$0xff] }
0x1106   : > { %7518 = vmatmul.mubr.msk.f32.vlgmr.msra.gmra.mxu1 %vm1618_vm6, %v5192_v31  ;;  %v10972_v31 = vld [vmem:[#allocation88_spill] sm:$0xff] }
0x1107   : > { %5269 = vmatpush1.bf16.msra.mxu1 %v9935_v11  ;;  %v10958_v11 = vld [vmem:[#allocation69_spill] sm:$0xff] }
0x1108   : > { %5270 = vmatprep.subr.bf16.mxu1 %v9939_v6  ;;  %v10959_v6 = vld [vmem:[#allocation71_spill] sm:$0xff] }
0x110b   : > { %5271 = vmatpush1.bf16.msra.mxu1 %v9945_v0  ;;  %v10960_v0 = vld [vmem:[#allocation73_spill] sm:$0xff] }
0x110c   : > { %5272 = vmatprep.subr.bf16.mxu1 %v10950_v62  ;;  %v10973_v62 = vld [vmem:[#allocation87_spill] sm:$0xff] }
0x110f   : > { %5273 = vmatpush1.bf16.msra.mxu1 %v10951_v52  ;;  %v10974_v52 = vld [vmem:[#allocation89_spill] sm:$0xff] }
0x1110   : > { %5274 = vmatprep.subr.bf16.mxu1 %v10952_v34  ;;  %v10975_v34 = vld [vmem:[#allocation90_spill] sm:$0xff] }
0x1113   : > { %5275 = vmatpush1.bf16.msra.mxu1 %v10953_v21  ;;  %v10976_v21 = vld [vmem:[#allocation91_spill] sm:$0xff] }
0x1114   : > { %5276 = vmatprep.subr.bf16.mxu1 %v10954_v23  ;;  %v10977_v23 = vld [vmem:[#allocation92_spill] sm:$0xff] }
0x1117   : > { %5277 = vmatpush1.bf16.msra.mxu1 %v10955_v10  ;;  %v10978_v10 = vld [vmem:[#allocation93_spill] sm:$0xff] }
0x1118   : > { %5278 = vmatprep.subr.bf16.mxu1 %v10956_v24 }
0x111b   : > { %5279 = vmatpush1.bf16.msra.mxu1 %v10957_v49 }
0x111c   : > { %5280 = vmatprep.subr.bf16.mxu1 %v10958_v11 }
0x111f   : > { %5281 = vmatpush1.bf16.msra.mxu1 %v10959_v6  ;;  %v10979_v6 = vld [vmem:[#allocation94_spill] sm:$0xff] }
0x1120   : > { %5282 = vmatprep.subr.bf16.mxu1 %v10960_v0  ;;  %v10980_v0 = vld [vmem:[#allocation95_spill] sm:$0xff] }
0x1123   : > { %5283 = vmatpush1.bf16.msra.mxu1 %v10961_v39  ;;  %v10981_v39 = vld [vmem:[#allocation49_spill] sm:$0xff] }
0x1124   : > { %5284 = vmatprep.subr.bf16.mxu1 %v10962_v55  ;;  %v10982_v55 = vld [vmem:[#allocation50_spill] sm:$0xff] }
0x1127   : > { %5285 = vmatpush2.bf16.msra.mxu1 %v10963_v22  ;;  %v10983_v22 = vld [vmem:[#allocation96_spill] sm:$0xff] }
0x1128   : > { %5286 = vmatprep.subr.bf16.mxu1 %v10964_v41  ;;  %v10984_v41 = vld [vmem:[#allocation97_spill] sm:$0xff] }
0x112b   : > { %5287 = vmatpush2.bf16.msra.mxu1 %v10965_v61  ;;  %v10985_v61 = vld [vmem:[#allocation51_spill] sm:$0xff] }
0x112c   : > { %5288 = vmatprep.subr.bf16.mxu1 %v10966_v37  ;;  %v10986_v37 = vld [vmem:[#allocation52_spill] sm:$0xff] }
0x112f   : > { %5289 = vmatpush2.bf16.msra.mxu1 %v10967_v2 }
0x1130   : > { %5290 = vmatprep.subr.bf16.mxu1 %v10968_v8 }
0x1133   : > { %5291 = vmatpush2.bf16.msra.mxu1 %v10969_v27 }
0x1134   : > { %5292 = vmatprep.subr.bf16.mxu1 %v10970_v59 }
0x1137   : > { %5293 = vmatpush2.bf16.msra.mxu1 %v10971_v18 }
0x1138   : > { %5294 = vmatprep.subr.bf16.mxu1 %v10972_v31 }
0x113b   : > { %5295 = vmatpush2.bf16.msra.mxu1 %v10973_v62 }
0x113c   : > { %5296 = vmatprep.subr.bf16.mxu1 %v10974_v52 }
0x113f   : > { %5297 = vmatpush2.bf16.msra.mxu1 %v10975_v34 }
0x1140   : > { %5298 = vmatprep.subr.bf16.mxu1 %v10976_v21 }
0x1143   : > { %5299 = vmatpush2.bf16.msra.mxu1 %v10977_v23 }
0x1144   : > { %5391 = vmatprep.subr.bf16.mxu1 %v10978_v10 }
0x11c6   : > { %v5262_v24 = vpop.f32.mrf.mxu1 }
0x11c7   : > { %v5267_v49 = vpack.c.bf16 %v5262_v24, %v5262_v24  ;;  %v10987_v24 = vld [vmem:[#allocation98_spill] sm:$0xff] }
0x11c8   : > { %v7519_v11 = vpop.f32.mrf.mxu1 }
0x11c9   : > { %5300 = vmatprep.mubr.bf16.mxu1 %v5267_v49  ;;  %5382 = vmatprep.mubr.bf16.mxu0 %v5267_v49  ;;  %v10988_v49 = vld [vmem:[#allocation99_spill] sm:$0xff]  ;;  %v10989_v11 = vld [vmem:[#allocation54_spill] sm:$0xff] }
0x11ca   : > { %5301 = vmatmul.mubr.bf16.vlgmr.msra.gmra.mxu1 %v10276_v46  ;;  %5383 = vmatmul.mubr.bf16.vlgmr.msra.gmra.mxu0 %v10276_v46 }
0x11cb   : > { %5392 = vmatpush1.bf16.msra.mxu1 %v10979_v6  ;;  %5423 = vmatprep.mubr.bf16.mxu1 %v10934_v4 }
0x11cc   : > { %5393 = vmatprep.subr.bf16.mxu1 %v10980_v0  ;;  %5654 = vmatpush1.bf16.msra.mxu0 %v10981_v39  ;;  %v10990_v0 = vld [vmem:[#allocation56_spill] sm:$0xff] }
0x11cd   : > { %5655 = vmatprep.subr.bf16.mxu0 %v10982_v55  ;;  %5685 = vmatprep.mubr.bf16.mxu0 %v10934_v4  ;;  %v10991_v39 = vld [vmem:[#allocation100_spill] sm:$0xff]  ;;  %v10992_v55 = vld [vmem:[#allocation101_spill] sm:$0xff]  ;;  %v10993_v4 = vld [vmem:[#allocation58_spill] sm:$0xff] }
0x11cf   : > { %5394 = vmatpush1.bf16.msra.mxu1 %v10983_v22  ;;  %v10994_v22 = vld [vmem:[#allocation60_spill] sm:$0xff] }
0x11d0   : > { %5395 = vmatprep.subr.bf16.mxu1 %v10984_v41  ;;  %5656 = vmatpush1.bf16.msra.mxu0 %v10985_v61  ;;  %v10995_v41 = vld [vmem:[#allocation102_spill] sm:$0xff]  ;;  %v10996_v61 = vld [vmem:[#allocation103_spill] sm:$0xff] }
0x11d1   : > { %5657 = vmatprep.subr.bf16.mxu0 %v10986_v37  ;;  %v10997_v37 = vld [vmem:[#allocation62_spill] sm:$0xff] }
0x11d3   : > { %5396 = vmatpush1.bf16.msra.mxu1 %v10987_v24  ;;  %v10998_v24 = vld [vmem:[#allocation64_spill] sm:$0xff] }
0x11d4   : > { %5397 = vmatprep.subr.bf16.mxu1 %v10988_v49  ;;  %5658 = vmatpush1.bf16.msra.mxu0 %v10989_v11  ;;  %v10999_v49 = vld [vmem:[#allocation104_spill] sm:$0xff]  ;;  %v11000_v11 = vld [vmem:[#allocation105_spill] sm:$0xff] }
0x11d5   : > { %5659 = vmatprep.subr.bf16.mxu0 %v10990_v0  ;;  %v11001_v0 = vld [vmem:[#allocation66_spill] sm:$0xff] }
0x11d7   : > { %5398 = vmatpush1.bf16.msra.mxu1 %v10991_v39  ;;  %v11002_v39 = vld [vmem:[#allocation68_spill] sm:$0xff] }
0x11d8   : > { %5399 = vmatprep.subr.bf16.mxu1 %v10992_v55  ;;  %5660 = vmatpush1.bf16.msra.mxu0 %v10993_v4  ;;  %v11003_v55 = vld [vmem:[#allocation106_spill] sm:$0xff]  ;;  %v11004_v4 = vld [vmem:[#allocation107_spill] sm:$0xff] }
0x11d9   : > { %5661 = vmatprep.subr.bf16.mxu0 %v10994_v22  ;;  %v11005_v22 = vld [vmem:[#allocation70_spill] sm:$0xff] }
0x11db   : > { %5400 = vmatpush1.bf16.msra.mxu1 %v10995_v41  ;;  %v11006_v41 = vld [vmem:[#allocation72_spill] sm:$0xff] }
0x11dc   : > { %5401 = vmatprep.subr.bf16.mxu1 %v10996_v61  ;;  %5662 = vmatpush1.bf16.msra.mxu0 %v10997_v37  ;;  %v11007_v61 = vld [vmem:[#allocation109_spill] sm:$0xff]  ;;  %v11009_v37 = vld [vmem:[#allocation76_spill] sm:$0xff] }
0x11dd   : > { %5663 = vmatprep.subr.bf16.mxu0 %v10998_v24  ;;  %v11008_v24 = vld [vmem:[#allocation74_spill] sm:$0xff] }
0x11df   : > { %5402 = vmatpush1.bf16.msra.mxu1 %v10999_v49 }
0x11e0   : > { %5403 = vmatprep.subr.bf16.mxu1 %v11000_v11  ;;  %5664 = vmatpush1.bf16.msra.mxu0 %v11001_v0  ;;  %v11010_v0 = vld [vmem:[#allocation110_spill] sm:$0xff] }
0x11e1   : > { %5665 = vmatprep.subr.bf16.mxu0 %v11002_v39 }
0x11e3   : > { %5404 = vmatpush1.bf16.msra.mxu1 %v11003_v55 }
0x11e4   : > { %5405 = vmatprep.subr.bf16.mxu1 %v11004_v4  ;;  %5666 = vmatpush1.bf16.msra.mxu0 %v11005_v22 }
0x11e5   : > { %5667 = vmatprep.subr.bf16.mxu0 %v11006_v41 }
0x11e7   : > { %5406 = vmatpush1.bf16.msra.mxu1 %v11007_v61 }
0x11e8   : > { %7520 = vmatprep.subr.mxu1 %v10883_v43  ;;  %5668 = vmatpush1.bf16.msra.mxu0 %v11008_v24 }
0x11e9   : > { %5694 = vmatprep.subr.bf16.mxu0 %v11009_v37 }
0x11ea   : > { %5424 = vmatmul.mubr.bf16.vlgmr.msra.gmra.mxu1 %v10276_v46 }
0x11eb   : > { %7521 = vmatpush3.xpose.msra.mxu1 %v10314_v50  ;;  %7524 = vmatprep.mubr.msk.f32.mxu1 %vm8936_vm0, %v10883_v43 }
0x11ec   : > { %7522 = vmatprep.subr.mxu1 %v10883_v43 }
0x11ef   : > { %7523 = vmatpush3.xpose.msra.mxu1 %v10320_v42 }
0x11f0   : > { %7527 = vmatprep.subr.mxu1 %v10883_v43 }
0x128a   : > { %v5302_v41 = vpop.f32.mrf.mxu1  ;;  %v5384_v39 = vpop.f32.mrf.mxu0 }
0x128b   : > { %v5303_v22 = vadd.f32 %v5302_v41, %v11010_v0  ;;  %v5385_v0 = vadd.f32 %v5384_v39, %v10262_v1 }
0x128c   : > { %v5304_v24 = vpop.f32.mrf.mxu1  ;;  %v5386_v61 = vpop.f32.mrf.mxu0 }
0x128d   : > { %v5305_v37 = vadd.f32 %v5304_v24, %v10256_v36  ;;  %v5344_v11 = vadd.f32 %v10331_v14, %v5303_v22 }
0x128e   : > { %v5306_v46 = vpop.f32.mrf.mxu1  ;;  %v5388_v4 = vpop.f32.mrf.mxu0 }
0x128f   : > { %v5346_v55 = vadd.f32 %v10333_v15, %v5305_v37  ;;  %v7064_v23 = vmul.f32 -1.442695, %v5344_v11  ;;  %v5387_v4 = vadd.f32 %v5386_v61, %v10264_v28  ;;  %v8303_v46 = vld [vmem:[#allocation25] ss:$16 sps:$4 sm:$0xff]  }
0x1290   : > { %v5307_v49 = vpop.f32.mrf.mxu1  ;;  %v5389_v6 = vpop.f32.mrf.mxu0 }
0x1291   : > { %v7065_v10 = vmul.f32 -1.442695, %v5346_v55 }
0x1293   : > { %8234 = vpow2.f32 %v7065_v10 }
0x1294   : > { %8236 = vpow2.f32 %v7064_v23 }
0x12a0   : > { %v8235_v21 = vpop.eup %8234 }
0x12a1   : > { %v8237_v34 = vpop.eup %8236  ;;  %v5441_v52 = vadd.f32 1.0, %v8235_v21 }
0x12a2   : > { %v5435_v41 = vadd.f32 1.0, %v8237_v34 }
0x12a3   : > { %8238 = vrcp.f32 %v5441_v52 }
0x12a4   : > { %8240 = vrcp.f32 %v5435_v41  ;;  %v8304_v41 = vld [vmem:[#allocation25 + $0x1e4] ss:$16 sps:$4 sm:$0xff]  }
0x12aa   : > { %v5425_v62 = vpop.f32.mrf.mxu1 }
0x12ab   : > { %v5426_v24 = vadd.f32 %v5425_v62, %v5385_v0 }
0x12ac   : > { %v5427_v15 = vpop.f32.mrf.mxu1 }
0x12ad   : > { %8242 = vtanh.f32 %v5426_v24  ;;  %v5428_v14 = vadd.f32 %v5427_v15, %v5387_v4  ;;  %v8305_v4 = vld [vmem:[#allocation25 + $0x1e0] ss:$16 sps:$4 sm:$0xff]   ;;  %v8306_v24 = vld [vmem:[#allocation25 + $0x1c4] ss:$16 sps:$4 sm:$0xff]  }
0x12ae   : > { %v5429_v6 = vpop.f32.mrf.mxu1  ;;  %v8307_v15 = vld [vmem:[#allocation25 + $0x1c0] ss:$16 sps:$4 sm:$0xff]  }
0x12af   : > { %v7066_v49 = vmul.f32 -1.442695, %v5428_v14  ;;  %v8308_v14 = vld [vmem:[#allocation25 + $0x1a4] ss:$16 sps:$4 sm:$0xff]  }
0x12b0   : > { %v5430_v55 = vpop.f32.mrf.mxu1  ;;  %v8239_v23 = vpop.eup %8238  ;;  %v11012_v6 = vld [vmem:[#allocation87_spill] sm:$0xff] }
0x12b1   : > { %8244 = vpow2.f32 %v7066_v49  ;;  %v8241_v10 = vpop.eup %8240  ;;  %v5451_v34 = vmul.f32 %v8239_v23, %v10268_v19  ;;  %v8288_v19 = vld [vmem:[#allocation25 + $0xe4] ss:$16 sps:$4 sm:$0xff]   ;;  %v11014_v55 = vld [vmem:[#allocation90_spill] sm:$0xff] }
0x12b2   : > { %v11013_v49 = vld [vmem:[#allocation89_spill] sm:$0xff]  ;;  %v11015_v23 = vld [vmem:[#allocation91_spill] sm:$0xff] }
0x12ba   : > { %v8243_v11 = vpop.eup %8242 }
0x12bb   : > { %v5452_v21 = vmul.f32 %v8243_v11, %v8241_v10  ;;  %v11016_v10 = vld [vmem:[#allocation92_spill] sm:$0xff] }
0x12bd   : > { %v10420_v39 = vadd.f32 %v5452_v21, %v5451_v34  ;;  %v11021_v34 = vld [vmem:[#allocation96_spill] sm:$0xff]  ;;  %v11022_v21 = vld [vmem:[#allocation97_spill] sm:$0xff] }
0x12be   : > { %v8245_v52 = vpop.eup %8244 }
0x12bf   : > { %v5448_v22 = vadd.f32 1.0, %v8245_v52  ;;  %8246 = vtanh.f32 %v10420_v39  ;;  %v11023_v52 = vld [vmem:[#allocation98_spill] sm:$0xff] }
0x12c1   : > { %8248 = vrcp.f32 %v5448_v22  ;;  %v11024_v22 = vld [vmem:[#allocation99_spill] sm:$0xff] }
0x12cc   : > { %v8247_v62 = vpop.eup %8246 }
0x12ce   : > { %v8249_v61 = vpop.eup %8248 }
0x12cf   : > { %v5455_v0 = vmul.f32 %v8249_v61, %v8247_v62  ;;  %v11025_v62 = vld [vmem:[#allocation100_spill] sm:$0xff]  ;;  %v11026_v61 = vld [vmem:[#allocation101_spill] sm:$0xff] }
0x12d1   : > { %7525 = vmatmul.mubr.f32.vlgmr.msra.gmra.mxu1 %v5455_v0  ;;  %v10423_v37 = vpack.c.bf16 %v5455_v0, %v5455_v0  ;;  %v11027_v0 = vld [vmem:[#allocation102_spill] sm:$0xff] }
0x12d2   : > { %7528 = vmatpush3.msra.mxu1 %v10314_v50  ;;  %7531 = vmatprep.mubr.msk.f32.mxu1 %vm8936_vm0, %v10883_v43 }
0x12d3   : > { %7529 = vmatprep.subr.mxu1 %v10883_v43  ;;  %5686 = vmatmul.mubr.bf16.vlgmr.msra.gmra.mxu0 %v10423_v37 }
0x12d4   : > { %7530 = vmatpush3.msra.mxu1 %v10320_v42  ;;  %5695 = vmatpush1.bf16.msra.mxu0 %v10029_v48 }
0x12d5   : > { %5612 = vmatprep.subr.bf16.mxu1 %v8288_v19  ;;  %5696 = vmatprep.subr.bf16.mxu0 %v10035_v54  ;;  %v11028_v19 = vld [vmem:[#allocation103_spill] sm:$0xff] }
0x12d8   : > { %5697 = vmatpush1.bf16.msra.mxu0 %v10042_v7 }
0x12d9   : > { %5698 = vmatprep.subr.bf16.mxu0 %v10048_v57  ;;  %v8289_v57 = vld [vmem:[#allocation25 + $0xe0] ss:$16 sps:$4 sm:$0xff]  }
0x12dc   : > { %5699 = vmatpush1.bf16.msra.mxu0 %v10055_v44  ;;  %v8291_v44 = vld [vmem:[#allocation25 + $0xc0] ss:$16 sps:$4 sm:$0xff]  }
0x12dd   : > { %5700 = vmatprep.subr.bf16.mxu0 %v10061_v16  ;;  %v8293_v16 = vld [vmem:[#allocation25 + $0xa0] ss:$16 sps:$4 sm:$0xff]  }
0x12e0   : > { %5701 = vmatpush1.bf16.msra.mxu0 %v10067_v32  ;;  %v8295_v32 = vld [vmem:[#allocation25 + $0x80] ss:$16 sps:$4 sm:$0xff]  }
0x12e1   : > { %5702 = vmatprep.subr.bf16.mxu0 %v10073_v13  ;;  %v8297_v13 = vld [vmem:[#allocation25 + $0x60] ss:$16 sps:$4 sm:$0xff]  }
0x12e4   : > { %5703 = vmatpush1.bf16.msra.mxu0 %v10079_v26  ;;  %v8299_v26 = vld [vmem:[#allocation25 + $0x40] ss:$16 sps:$4 sm:$0xff]  }
0x12e5   : > { %5704 = vmatprep.subr.bf16.mxu0 %v10085_v17  ;;  %v8300_v17 = vld [vmem:[#allocation25 + $0x24] ss:$16 sps:$4 sm:$0xff]  }
0x12e8   : > { %5705 = vmatpush1.bf16.msra.mxu0 %v10089_v3  ;;  %v8301_v3 = vld [vmem:[#allocation25 + $0x20] ss:$16 sps:$4 sm:$0xff]  }
0x12e9   : > { %5706 = vmatprep.subr.bf16.mxu0 %v10098_v51 }
0x12ec   : > { %5707 = vmatpush1.bf16.msra.mxu0 %v10101_v29 }
0x12ed   : > { %5708 = vmatprep.subr.bf16.mxu0 %v10110_v45  ;;  %v8298_v45 = vld [vmem:[#allocation25 + $0x44] ss:$16 sps:$4 sm:$0xff]  }
0x12f0   : > { %5709 = vmatpush1.bf16.msra.mxu0 %v10113_v25  ;;  %v11011_v25 = vld [vmem:[#allocation108_spill] sm:$0xff] }
0x12f1   : > { %5710 = vmatprep.subr.bf16.mxu0 %v10123_v12  ;;  %v8292_v12 = vld [vmem:[#allocation25 + $0xa4] ss:$16 sps:$4 sm:$0xff]  }
0x12f4   : > { %5711 = vmatpush2.bf16.msra.mxu0 %v10121_v35  ;;  %v8294_v35 = vld [vmem:[#allocation25 + $0x84] ss:$16 sps:$4 sm:$0xff]  }
0x12f5   : > { %5712 = vmatprep.subr.bf16.mxu0 %v10136_v47 }
0x12f8   : > { %5713 = vmatpush2.bf16.msra.mxu0 %v10134_v5  ;;  %v8290_v5 = vld [vmem:[#allocation25 + $0xc4] ss:$16 sps:$4 sm:$0xff]  }
0x12f9   : > { %5714 = vmatprep.subr.bf16.mxu0 %v10141_v20  ;;  %v8302_v20 = vld [vmem:[#allocation25 + $0x4] ss:$16 sps:$4 sm:$0xff]  }
0x12fc   : > { %5715 = vmatpush2.bf16.msra.mxu0 %v10152_v9 }
0x12fd   : > { %5716 = vmatprep.subr.bf16.mxu0 %v10155_v40 }
0x1300   : > { %5717 = vmatpush2.bf16.msra.mxu0 %v10164_v60 }
0x1301   : > { %5718 = vmatprep.subr.bf16.mxu0 %v10167_v63 }
0x1304   : > { %5719 = vmatpush2.bf16.msra.mxu0 %v10176_v33 }
0x1305   : > { %5720 = vmatprep.subr.bf16.mxu0 %v10179_v38 }
0x1308   : > { %5721 = vmatpush2.bf16.msra.mxu0 %v10188_v30 }
0x1309   : > { %5722 = vmatprep.subr.bf16.mxu0 %v10191_v53 }
0x130c   : > { %5723 = vmatpush2.bf16.msra.mxu0 %v10200_v56  ;;  %v8296_v56 = vld [vmem:[#allocation25 + $0x64] ss:$16 sps:$4 sm:$0xff]  }
0x130d   : > { %5724 = vmatprep.subr.bf16.mxu0 %v10203_v58 }
0x1310   : > { %5725 = vmatpush2.bf16.msra.mxu0 %v11011_v25  ;;  %v11029_v25 = vld [vmem:[#allocation104_spill] sm:$0xff] }
0x1391   : > { %v5522_v51 = vpop.f32.mrf.mxu1 }
0x1392   : > { %v5526_v29 = vsel %vm5181_vm9, %v5522_v51, -inf }
0x1393   : > { %v10463_v40 = vpop.f32.mrf.mxu0  ;;  %5527 = vmax.xlane.f32.xlu0 %v5526_v29  ;;  %v7526_v63 = vpop.f32.mrf.mxu1  ;;  %v11031_v29 = vld [vmem:[#allocation106_spill] sm:$0xff] }
0x1394   : > { %v11032_v63 = vld [vmem:[#allocation107_spill] sm:$0xff] }
0x1395   : > { %v10465_v33 = vpop.f32.mrf.mxu0 }
0x1397   : > { %v5691_v38 = vpop.f32.mrf.mxu0 }
0x1398   : > { %v11033_v38 = vld [vmem:[#allocation109_spill] sm:$0xff] }
0x1399   : > { %v5692_v9 = vpop.f32.mrf.mxu0 }
0x141c   : > { %v5528_v30 = vpop.xlane.xlu0 %5527 }
0x141d   : > { %v5529_v48 = vsub.f32 %v5522_v51, %v5528_v30  ;;  %v11030_v51 = vld [vmem:[#allocation105_spill] sm:$0xff] }
0x141f   : > { %v5530_v53 = vmul.f32 1.442695, %v5529_v48  ;;  %v11034_v48 = vld [vmem:[#allocation110_spill] sm:$0xff] }
0x1421   : > { %8250 = vpow2.f32 %v5530_v53 }
0x142e   : > { %v8251_v60 = vpop.eup %8250 }
0x142f   : > { %v5532_v58 = vsel %vm5181_vm9, %v8251_v60, 0.0 }
0x1430   : > { %5533 = vadd.xlane.f32.xlu1 %v5532_v58 }
0x14b9   : > { %v5534_v54 = vpop.xlane.xlu1 %5533 }
0x14ba   : > { %8252 = vrcp.f32 %v5534_v54 }
0x14c7   : > { %v8253_v7 = vpop.eup %8252 }
0x14c8   : > { %v5536_v47 = vmul.f32 %v8253_v7, %v8251_v60 }
0x14ca   : > { %7532 = vmatmul.mubr.msk.f32.vlgmr.msra.gmra.mxu1 %vm1618_vm6, %v5536_v47 }
0x14cb   : > { %5613 = vmatpush1.bf16.msra.mxu1 %v8289_v57 }
0x14cc   : > { %5614 = vmatprep.subr.bf16.mxu1 %v8290_v5 }
0x14cf   : > { %5615 = vmatpush1.bf16.msra.mxu1 %v8291_v44 }
0x14d0   : > { %5616 = vmatprep.subr.bf16.mxu1 %v8292_v12 }
0x14d3   : > { %5617 = vmatpush1.bf16.msra.mxu1 %v8293_v16 }
0x14d4   : > { %5618 = vmatprep.subr.bf16.mxu1 %v8294_v35 }
0x14d7   : > { %5619 = vmatpush1.bf16.msra.mxu1 %v8295_v32 }
0x14d8   : > { %5620 = vmatprep.subr.bf16.mxu1 %v8296_v56 }
0x14db   : > { %5621 = vmatpush1.bf16.msra.mxu1 %v8297_v13 }
0x14dc   : > { %5622 = vmatprep.subr.bf16.mxu1 %v8298_v45 }
0x14df   : > { %5623 = vmatpush1.bf16.msra.mxu1 %v8299_v26 }
0x14e0   : > { %5624 = vmatprep.subr.bf16.mxu1 %v8300_v17 }
0x14e3   : > { %5625 = vmatpush1.bf16.msra.mxu1 %v8301_v3 }
0x14e4   : > { %5626 = vmatprep.subr.bf16.mxu1 %v8302_v20 }
0x14e7   : > { %5627 = vmatpush1.bf16.msra.mxu1 %v8303_v46 }
0x14e8   : > { %5628 = vmatprep.subr.bf16.mxu1 %v8304_v41 }
0x14eb   : > { %5629 = vmatpush2.bf16.msra.mxu1 %v8305_v4 }
0x14ec   : > { %5630 = vmatprep.subr.bf16.mxu1 %v8306_v24 }
0x14ef   : > { %5631 = vmatpush2.bf16.msra.mxu1 %v8307_v15 }
0x14f0   : > { %5632 = vmatprep.subr.bf16.mxu1 %v8308_v14 }
0x14f3   : > { %5633 = vmatpush2.bf16.msra.mxu1 %v10967_v2  ;;  %v11017_v2 = vld [vmem:[#allocation93_spill] sm:$0xff] }
0x14f4   : > { %5634 = vmatprep.subr.bf16.mxu1 %v10968_v8 }
0x14f7   : > { %5635 = vmatpush2.bf16.msra.mxu1 %v10969_v27 }
0x14f8   : > { %5636 = vmatprep.subr.bf16.mxu1 %v10970_v59  ;;  %v11018_v59 = vld [vmem:[#allocation94_spill] sm:$0xff] }
0x14fb   : > { %5637 = vmatpush2.bf16.msra.mxu1 %v10971_v18  ;;  %v11019_v18 = vmov 0  }
0x14fc   : > { %5638 = vmatprep.subr.bf16.mxu1 %v10972_v31  ;;  %v11020_v31 = vld [vmem:[#allocation95_spill] sm:$0xff] }
0x14ff   : > { %5639 = vmatpush2.bf16.msra.mxu1 %v11012_v6 }
0x1500   : > { %5640 = vmatprep.subr.bf16.mxu1 %v11013_v49 }
0x1503   : > { %5641 = vmatpush2.bf16.msra.mxu1 %v11014_v55 }
0x1504   : > { %5642 = vmatprep.subr.bf16.mxu1 %v11015_v23 }
0x1507   : > { %5643 = vmatpush2.bf16.msra.mxu1 %v11016_v10 }
0x1508   : > { %5735 = vmatprep.subr.bf16.mxu1 %v11017_v2 }
0x158a   : > { %v5606_v8 = vpop.f32.mrf.mxu1 }
0x158b   : > { %v5611_v27 = vpack.c.bf16 %v5606_v8, %v5606_v8 }
0x158c   : > { %v7533_v11 = vpop.f32.mrf.mxu1 }
0x158d   : > { %5644 = vmatprep.mubr.bf16.mxu1 %v5611_v27  ;;  %5726 = vmatprep.mubr.bf16.mxu0 %v5611_v27 }
0x158e   : > { %5645 = vmatmul.mubr.bf16.vlgmr.msra.gmra.mxu1 %v10423_v37  ;;  %5727 = vmatmul.mubr.bf16.vlgmr.msra.gmra.mxu0 %v10423_v37 }
0x158f   : > { %5736 = vmatpush1.bf16.msra.mxu1 %v11018_v59  ;;  %5767 = vmatprep.mubr.bf16.mxu1 %v11019_v18 }
0x1590   : > { %5737 = vmatprep.subr.bf16.mxu1 %v11020_v31  ;;  %v8054_v31 = vld [vmem:[%s10702_s20 + $0x78] sm:$0xff]  }
0x1591   : > { %7304 = vmatprep.subr.bf16.mxu0 %v8054_v31 }
0x1593   : > { %5738 = vmatpush1.bf16.msra.mxu1 %v11021_v34  ;;  %v8057_v34 = vld [vmem:[%s10702_s20 + $0x70] sm:$0xff]  }
0x1594   : > { %5739 = vmatprep.subr.bf16.mxu1 %v11022_v21  ;;  %v8058_v21 = vld [vmem:[%s10702_s20 + $0x30] sm:$0xff]  }
0x1597   : > { %5740 = vmatpush1.bf16.msra.mxu1 %v11023_v52  ;;  %v8060_v52 = vld [vmem:[%s10702_s20 + $0x68] sm:$0xff]  }
0x1598   : > { %5741 = vmatprep.subr.bf16.mxu1 %v11024_v22  ;;  %v8061_v22 = vld [vmem:[%s10702_s20 + $0x28] sm:$0xff]  }
0x159b   : > { %5742 = vmatpush1.bf16.msra.mxu1 %v11025_v62  ;;  %v8063_v62 = vld [vmem:[%s10702_s20 + $0x60] sm:$0xff]  }
0x159c   : > { %5743 = vmatprep.subr.bf16.mxu1 %v11026_v61  ;;  %v8064_v61 = vld [vmem:[%s10702_s20 + $0x20] sm:$0xff]  }
0x159f   : > { %5744 = vmatpush1.bf16.msra.mxu1 %v11027_v0  ;;  %v8066_v0 = vld [vmem:[%s10702_s20 + $0x58] sm:$0xff]  }
0x15a0   : > { %5745 = vmatprep.subr.bf16.mxu1 %v11028_v19  ;;  %v8067_v19 = vld [vmem:[%s10702_s20 + $0x18] sm:$0xff]  }
0x15a3   : > { %5746 = vmatpush1.bf16.msra.mxu1 %v11029_v25  ;;  %v8069_v25 = vld [vmem:[%s10702_s20 + $0x50] sm:$0xff]  }
0x15a4   : > { %5747 = vmatprep.subr.bf16.mxu1 %v11030_v51  ;;  %v8070_v51 = vld [vmem:[%s10702_s20 + $0x10] sm:$0xff]  }
0x15a7   : > { %5748 = vmatpush1.bf16.msra.mxu1 %v11031_v29  ;;  %v8072_v29 = vld [vmem:[%s10702_s20 + $0x48] sm:$0xff]  }
0x15a8   : > { %5749 = vmatprep.subr.bf16.mxu1 %v11032_v63  ;;  %v8073_v63 = vld [vmem:[%s10702_s20 + $0x8] sm:$0xff]  }
0x15ab   : > { %5750 = vmatpush1.bf16.msra.mxu1 %v11033_v38 }
0x15ac   : > { %7534 = vmatprep.subr.mxu1 %v10883_v43 }
0x15ae   : > { %5768 = vmatmul.mubr.bf16.vlgmr.msra.gmra.mxu1 %v10423_v37 }
0x15af   : > { %7535 = vmatpush3.xpose.msra.mxu1 %v10314_v50  ;;  %7538 = vmatprep.mubr.msk.f32.mxu1 %vm8936_vm0, %v10883_v43 }
0x15b0   : > { %7536 = vmatprep.subr.mxu1 %v10883_v43 }
0x15b3   : > { %7537 = vmatpush3.xpose.msra.mxu1 %v10320_v42 }
0x15b4   : > { %7541 = vmatprep.subr.mxu1 %v10883_v43 }
0x164e   : > { %v5646_v9 = vpop.f32.mrf.mxu1  ;;  %v5728_v30 = vpop.f32.mrf.mxu0 }
0x164f   : > { %v5647_v53 = vadd.f32 %v5646_v9, %v11034_v48  ;;  %v5729_v45 = vadd.f32 %v5728_v30, %v10262_v1  ;;  %v8056_v30 = vld [vmem:[%s10702_s20 + $0xb8] sm:$0xff]  }
0x1650   : > { %v5648_v60 = vpop.f32.mrf.mxu1  ;;  %v5730_v58 = vpop.f32.mrf.mxu0 }
0x1651   : > { %v5649_v54 = vadd.f32 %v5648_v60, %v10256_v36  ;;  %v5688_v57 = vadd.f32 %v10463_v40, %v5647_v53  ;;  %v5731_v36 = vadd.f32 %v5730_v58, %v10264_v28  ;;  %v8059_v53 = vld [vmem:[%s10702_s20 + $0xb0] sm:$0xff]   ;;  %v8062_v60 = vld [vmem:[%s10702_s20 + $0xa8] sm:$0xff]   ;;  %v8065_v58 = vld [vmem:[%s10702_s20 + $0xa0] sm:$0xff]  }
0x1652   : > { %v5650_v37 = vpop.f32.mrf.mxu1  ;;  %v5732_v7 = vpop.f32.mrf.mxu0 }
0x1653   : > { %v5690_v47 = vadd.f32 %v10465_v33, %v5649_v54  ;;  %v7068_v16 = vmul.f32 -1.442695, %v5688_v57  ;;  %v8068_v54 = vld [vmem:[%s10702_s20 + $0x98] sm:$0xff]   ;;  %v8071_v37 = vld [vmem:[%s10702_s20 + $0x90] sm:$0xff]   ;;  %v8074_v7 = vld [vmem:[%s10702_s20 + $0x88] sm:$0xff]  }
0x1654   : > { %v5651_v5 = vpop.f32.mrf.mxu1  ;;  %v5733_v44 = vpop.f32.mrf.mxu0  ;;  %v8076_v57 = vld [vmem:[%s10702_s20] sm:$0xff]  }
0x1655   : > { %v7069_v12 = vmul.f32 -1.442695, %v5690_v47  ;;  %v8075_v47 = vld [vmem:[%s10702_s20 + $0x40] sm:$0xff]   ;;  %v11035_v44 = vmov 0.0|0.0  }
0x1656   : > { %v8077_v5 = vld [vmem:[%s10702_s20 + $0x80] sm:$0xff]  }
0x1657   : > { %8254 = vpow2.f32 %v7069_v12 }
0x1658   : > { %8256 = vpow2.f32 %v7068_v16 }
0x1664   : > { %v8255_v35 = vpop.eup %8254 }
0x1665   : > { %v8257_v32 = vpop.eup %8256  ;;  %v5785_v56 = vadd.f32 1.0, %v8255_v35  ;;  %v8078_v35 = vld [vmem:[#allocation30 + $0x38] sm:$0xff]  }
0x1666   : > { %v5779_v13 = vadd.f32 1.0, %v8257_v32 }
0x1667   : > { %8258 = vrcp.f32 %v5785_v56 }
0x1668   : > { %8260 = vrcp.f32 %v5779_v13  ;;  %v8079_v13 = vld [vmem:[#allocation30 + $0x30] sm:$0xff]  }
0x166e   : > { %v5769_v26 = vpop.f32.mrf.mxu1 }
0x166f   : > { %v5770_v17 = vadd.f32 %v5769_v26, %v5729_v45  ;;  %v8080_v45 = vld [vmem:[#allocation30 + $0x28] sm:$0xff]   ;;  %v8082_v26 = vld [vmem:[#allocation30 + $0x18] sm:$0xff]  }
0x1670   : > { %v5771_v33 = vpop.f32.mrf.mxu1 }
0x1671   : > { %8262 = vtanh.f32 %v5770_v17  ;;  %v5772_v40 = vadd.f32 %v5771_v33, %v5731_v36  ;;  %v8083_v17 = vld [vmem:[#allocation30 + $0x10] sm:$0xff]  }
0x1672   : > { %v5773_v3 = vpop.f32.mrf.mxu1 }
0x1673   : > { %v7070_v20 = vmul.f32 -1.442695, %v5772_v40  ;;  %v8084_v3 = vld [vmem:[#allocation30 + $0x8] sm:$0xff]  }
0x1674   : > { %v5774_v46 = vpop.f32.mrf.mxu1  ;;  %v8259_v41 = vpop.eup %8258 }
0x1675   : > { %8264 = vpow2.f32 %v7070_v20  ;;  %v8261_v4 = vpop.eup %8260  ;;  %v5795_v15 = vmul.f32 %v8259_v41, %v10420_v39  ;;  %v8085_v46 = vld [vmem:[#allocation30] sm:$0xff]  }
0x1676   : > { %v8086_v41 = vld [vmem:[%s10706_s24 + $0x70] ss:$8 sps:$4 sm:$0xff]  }
0x167e   : > { %v8263_v24 = vpop.eup %8262 }
0x167f   : > { %v5796_v14 = vmul.f32 %v8263_v24, %v8261_v4  ;;  %v8088_v4 = vld [vmem:[%s10706_s24 + $0x74] ss:$8 sps:$4 sm:$0xff]   ;;  %v8091_v24 = vld [vmem:[%s10706_s24 + $0x64] ss:$8 sps:$4 sm:$0xff]  }
0x1681   : > { %v5797_v1 = vadd.f32 %v5796_v14, %v5795_v15  ;;  %v8094_v15 = vld [vmem:[%s10706_s24 + $0x54] ss:$8 sps:$4 sm:$0xff]   ;;  %v8092_v14 = vld [vmem:[%s10706_s24 + $0x50] ss:$8 sps:$4 sm:$0xff]  }
0x1682   : > { %v8265_v6 = vpop.eup %8264 }
0x1683   : > { %v5792_v49 = vadd.f32 1.0, %v8265_v6  ;;  %8266 = vtanh.f32 %v5797_v1  ;;  %v8097_v1 = vld [vmem:[%s10706_s24 + $0x44] ss:$8 sps:$4 sm:$0xff]   ;;  %v8095_v6 = vld [vmem:[%s10706_s24 + $0x40] ss:$8 sps:$4 sm:$0xff]  }
0x1685   : > { %8268 = vrcp.f32 %v5792_v49  ;;  %v8100_v49 = vld [vmem:[%s10706_s24 + $0x34] ss:$8 sps:$4 sm:$0xff]  }
0x1690   : > { %v8267_v28 = vpop.eup %8266 }
0x1692   : > { %v8269_v55 = vpop.eup %8268 }
0x1693   : > { %v10514_v23 = vmul.f32 %v8269_v55, %v8267_v28  ;;  %v8098_v28 = vld [vmem:[%s10706_s24 + $0x30] ss:$8 sps:$4 sm:$0xff]   ;;  %v8103_v55 = vld [vmem:[%s10706_s24 + $0x24] ss:$8 sps:$4 sm:$0xff]  }
0x1695   : > { %7539 = vmatmul.mubr.f32.vlgmr.msra.gmra.mxu1 %v10514_v23  ;;  %v5954_v56 = vpack.c.bf16 %v10514_v23, %v10514_v23  ;;  %v8101_v23 = vld [vmem:[%s10706_s24 + $0x20] ss:$8 sps:$4 sm:$0xff]  }
0x1696   : > { %7542 = vmatpush3.msra.mxu1 %v10314_v50  ;;  %7545 = vmatprep.mubr.msk.f32.mxu1 %vm8936_vm0, %v10883_v43 }
0x1697   : > { %7543 = vmatprep.subr.mxu1 %v10883_v43 }
0x1698   : > { %7544 = vmatpush3.msra.mxu1 %v10320_v42  ;;  %v8055_v42 = vld [vmem:[%s10702_s20 + $0x38] sm:$0xff]  }
0x1699   : > { %7548 = vmatprep.subr.bf16.mxu1 %v10883_v43  ;;  %7305 = vmatpush3.bf16.msra.mxu0 %v8055_v42 }
0x169a   : > { %7306 = vmatprep.subr.bf16.mxu0 %v8057_v34 }
0x169d   : > { %7307 = vmatpush3.bf16.msra.mxu0 %v8058_v21 }
0x169e   : > { %7308 = vmatprep.subr.bf16.mxu0 %v8060_v52  ;;  %v8109_v52 = vld [vmem:[%s10706_s24 + $0x4] ss:$8 sps:$4 sm:$0xff]  }
0x16a1   : > { %7309 = vmatpush3.bf16.msra.mxu0 %v8061_v22  ;;  %v8107_v22 = vld [vmem:[%s10706_s24] ss:$8 sps:$4 sm:$0xff]  }
0x16a2   : > { %7310 = vmatprep.subr.bf16.mxu0 %v8063_v62  ;;  %v6247_v62 = vld [vmem:[#allocation31] sm:$0x1] }
0x16a5   : > { %7311 = vmatpush3.bf16.msra.mxu0 %v8064_v61 }
0x16a6   : > { %7312 = vmatprep.subr.bf16.mxu0 %v8066_v0 }
0x16a9   : > { %7313 = vmatpush3.bf16.msra.mxu0 %v8067_v19 }
0x16aa   : > { %7314 = vmatprep.subr.bf16.mxu0 %v8069_v25 }
0x16ad   : > { %7315 = vmatpush3.bf16.msra.mxu0 %v8070_v51 }
0x16ae   : > { %7316 = vmatprep.subr.bf16.mxu0 %v8072_v29 }
0x16b1   : > { %7317 = vmatpush3.bf16.msra.mxu0 %v8073_v63 }
0x16b2   : > { %7318 = vmatprep.subr.bf16.mxu0 %v8075_v47 }
0x16b5   : > { %7319 = vmatpush3.bf16.msra.mxu0 %v8076_v57 }
0x16b6   : > { %7568 = vmatprep.subr.bf16.mxu0 %v10883_v43 }
0x1755   : > { %v5866_v39 = vpop.f32.mrf.mxu1 }
0x1756   : > { %v5870_v10 = vsel %vm5181_vm9, %v5866_v39, -inf }
0x1757   : > { %5871 = vmax.xlane.f32.xlu0 %v5870_v10  ;;  %v7540_v2 = vpop.f32.mrf.mxu1  ;;  %v8104_v10 = vld [vmem:[%s10706_s24 + $0x10] ss:$8 sps:$4 sm:$0xff]  }
0x17e0   : > { %v5872_v8 = vpop.xlane.xlu0 %5871 }
0x17e1   : > { %v5873_v27 = vsub.f32 %v5866_v39, %v5872_v8  ;;  %v8106_v39 = vld [vmem:[%s10706_s24 + $0x14] ss:$8 sps:$4 sm:$0xff]   ;;  %v6004_v8 = vld [vmem:[#allocation28] sm:$0x1] }
0x17e3   : > { %v5874_v11 = vmul.f32 1.442695, %v5873_v27 }
0x17e5   : > { %8270 = vpow2.f32 %v5874_v11 }
0x17f2   : > { %v8271_v59 = vpop.eup %8270 }
0x17f3   : > { %v5876_v50 = vsel %vm5181_vm9, %v8271_v59, 0.0 }
0x17f4   : > { %5877 = vadd.xlane.f32.xlu1 %v5876_v50 }
0x187d   : > { %v5878_v38 = vpop.xlane.xlu1 %5877 }
0x187e   : > { %8272 = vrcp.f32 %v5878_v38  ;;  %v6354_v38 = vld [vmem:[#allocation33] sm:$0x3] }
0x188b   : > { %v8273_v9 = vpop.eup %8272 }
0x188c   : > { %v5880_v48 = vmul.f32 %v8273_v9, %v8271_v59  ;;  %v11036_v9 = vld [vmem:[#allocation48_spill] sm:$0xff] }
0x188e   : > { %7546 = vmatmul.mubr.msk.f32.vlgmr.msra.gmra.mxu1 %vm1618_vm6, %v5880_v48  ;;  %v11037_v48 = vld [vmem:[#allocation46_spill] sm:$0xff] }
0x188f   : > { %7549 = vmatpush3.bf16.msra.mxu1 %v8056_v30  ;;  %7564 = vmatprep.mubr.msk.bf16.mxu1 %vm8936_vm0, %v10883_v43  ;;  %v6439_v30 = vrot.slane %v6354_v38, %v11036_v9 }
0x1890   : > { %7550 = vmatprep.subr.bf16.mxu1 %v10883_v43 }
0x1893   : > { %7551 = vmatpush3.bf16.msra.mxu1 %v8059_v53  ;;  %v11038_v53 = vsub.s32 1, %v11037_v48 }
0x1894   : > { %7552 = vmatprep.subr.bf16.mxu1 %v10883_v43 }
0x1897   : > { %7553 = vmatpush3.bf16.msra.mxu1 %v8062_v60  ;;  %v6443_v60 = vrot.slane %v6354_v38, %v11038_v53 }
0x1898   : > { %7554 = vmatprep.subr.bf16.mxu1 %v10883_v43 }
0x189b   : > { %7555 = vmatpush3.bf16.msra.mxu1 %v8065_v58 }
0x189c   : > { %7556 = vmatprep.subr.bf16.mxu1 %v10883_v43 }
0x189f   : > { %7557 = vmatpush3.bf16.msra.mxu1 %v8068_v54 }
0x18a0   : > { %7558 = vmatprep.subr.bf16.mxu1 %v10883_v43 }
0x18a3   : > { %7559 = vmatpush3.bf16.msra.mxu1 %v8071_v37 }
0x18a4   : > { %7560 = vmatprep.subr.bf16.mxu1 %v10883_v43 }
0x18a7   : > { %7561 = vmatpush3.bf16.msra.mxu1 %v8074_v7 }
0x18a8   : > { %7562 = vmatprep.subr.bf16.mxu1 %v10883_v43 }
0x18ab   : > { %7563 = vmatpush3.bf16.msra.mxu1 %v8077_v5 }
0x18ac   : > { %6446 = vmatprep.subr.bf16.mxu1 %v8088_v4 }
0x18ae   : > { %7565 = vmatmul.mubr.bf16.vlgmr.msra.gmra.mxu1 %v11035_v44 }
0x18af   : > { %6478 = vmatprep.mubr.bf16.mxu1 %v11019_v18  ;;  %v8081_v18 = vld [vmem:[#allocation30 + $0x20] sm:$0xff]   ;;  %6447 = vmatpush1.bf16.msra.mxu1 %v8086_v41  ;;  %v11039_v41 = vld [vmem:[#allocation47_spill] sm:$0xff] }
0x18b0   : > { %6448 = vmatprep.subr.bf16.mxu1 %v8091_v24  ;;  %v11041_v24 = vlaneseq }
0x18b2   : > { %vm6528_vm13 = vcmp.lt.s32.totalorder %v11041_v24, 256 }
0x194e   : > { %v5950_v12 = vpop.f32.mrf.mxu1 }
0x194f   : > { %v5955_v16 = vpack.c.bf16 %v5950_v12, %v5950_v12 }
0x1950   : > { %v7547_v32 = vpop.f32.mrf.mxu1 }
0x1951   : > { %6181 = vmatprep.mubr.bf16.mxu0 %v5955_v16 }
0x1952   : > { %6182 = vmatmul.mubr.bf16.vlgmr.msra.gmra.mxu0 %v5954_v56 }
0x1953   : > { %7569 = vmatpush3.bf16.msra.mxu0 %v8078_v35  ;;  %7584 = vmatprep.mubr.msk.bf16.mxu0 %vm8936_vm0, %v10883_v43 }
0x1954   : > { %7570 = vmatprep.subr.bf16.mxu0 %v10883_v43 }
0x1957   : > { %7571 = vmatpush3.bf16.msra.mxu0 %v8079_v13 }
0x1958   : > { %7572 = vmatprep.subr.bf16.mxu0 %v10883_v43 }
0x195b   : > { %7573 = vmatpush3.bf16.msra.mxu0 %v8080_v45 }
0x195c   : > { %7574 = vmatprep.subr.bf16.mxu0 %v10883_v43 }
0x195f   : > { %7575 = vmatpush3.bf16.msra.mxu0 %v8081_v18 }
0x1960   : > { %7576 = vmatprep.subr.bf16.mxu0 %v10883_v43 }
0x1963   : > { %7577 = vmatpush3.bf16.msra.mxu0 %v8082_v26 }
0x1964   : > { %7578 = vmatprep.subr.bf16.mxu0 %v10883_v43 }
0x1967   : > { %7579 = vmatpush3.bf16.msra.mxu0 %v8083_v17 }
0x1968   : > { %7580 = vmatprep.subr.bf16.mxu0 %v10883_v43 }
0x196b   : > { %7581 = vmatpush3.bf16.msra.mxu0 %v8084_v3 }
0x196c   : > { %7582 = vmatprep.subr.bf16.mxu0 %v10883_v43  ;;  %v8089_v43 = vld [vmem:[%s10706_s24 + $0x60] ss:$8 sps:$4 sm:$0xff]  }
0x196d   : > { %6449 = vmatpush1.bf16.msra.mxu1 %v8089_v43 }
0x196e   : > { %v6223_v36 = vpop.f32.mrf.mxu1  ;;  %6450 = vmatprep.subr.bf16.mxu1 %v8094_v15 }
0x196f   : > { %7583 = vmatpush3.bf16.msra.mxu0 %v8085_v46 }
0x1970   : > { %v7566_v33 = vpop.f32.mrf.mxu1 }
0x1971   : > { %6451 = vmatpush1.bf16.msra.mxu1 %v8092_v14 }
0x1972   : > { %v6226_v40 = vpop.f32.mrf.mxu1  ;;  %6452 = vmatprep.subr.bf16.mxu1 %v8097_v1 }
0x1974   : > { %v7567_v20 = vpop.f32.mrf.mxu1 }
0x1975   : > { %6453 = vmatpush1.bf16.msra.mxu1 %v8095_v6 }
0x1976   : > { %6454 = vmatprep.subr.bf16.mxu1 %v8100_v49 }
0x1979   : > { %6455 = vmatpush1.bf16.msra.mxu1 %v8098_v28 }
0x197a   : > { %6456 = vmatprep.subr.bf16.mxu1 %v8103_v55 }
0x197d   : > { %6457 = vmatpush1.bf16.msra.mxu1 %v8101_v23 }
0x197e   : > { %6458 = vmatprep.subr.bf16.mxu1 %v8106_v39 }
0x1981   : > { %6459 = vmatpush1.bf16.msra.mxu1 %v8104_v10 }
0x1982   : > { %6460 = vmatprep.subr.bf16.mxu1 %v8109_v52 }
0x1985   : > { %6461 = vmatpush1.bf16.msra.mxu1 %v8107_v22 }
0x1a12   : > { %v7320_v2 = vpop.f32.mrf.mxu0 }
0x1a14   : > { %v7321_v27 = vpop.f32.mrf.mxu0 }
0x1a15   : > { %v7322_v11 = vadd.f32 %v7321_v27, %v7320_v2 }
0x1a16   : > { %v7323_v59 = vpop.f32.mrf.mxu0 }
0x1a17   : > { %v6184_v50 = vadd.f32 %v7322_v11, %v6004_v8 }
0x1a18   : > { %v7324_v31 = vpop.f32.mrf.mxu0 }
0x1a19   : > { %v6224_v42 = vadd.f32 %v6223_v36, %v6184_v50 }
0x1a1b   : > { %v6229_v34 = vmax.f32 %v6224_v42, 0.0 }
0x1a1d   : > { %v6230_v21 = vpack.c.bf16 %v6229_v34, %v6229_v34 }
0x1a1f   : > { %7585 = vmatmul.mubr.bf16.vlgmr.msra.gmra.mxu0 %v6230_v21 }
0x1adf   : > { %v6330_v61 = vpop.f32.mrf.mxu0 }
0x1ae0   : > { %v6331_v0 = vadd.f32 %v6330_v61, %v6247_v62 }
0x1ae1   : > { %v7586_v19 = vpop.f32.mrf.mxu0 }
0x1ae2   : > { %v6336_v25 = vmax.f32 %v6331_v0, 0.0 }
0x1ae3   : > { %v6333_v51 = vpop.f32.mrf.mxu0 }
0x1ae4   : > { %v6337_v29 = vpack.c.bf16 %v6336_v25, %v6336_v25 }
0x1ae5   : > { %v7587_v63 = vpop.f32.mrf.mxu0 }
0x1ae6   : > { %6479 = vmatmul.mubr.bf16.vlgmr.msra.gmra.mxu1 %v6337_v29 }
0x1ba6   : > { %v6480_v58 = vpop.f32.mrf.mxu1 }
0x1ba7   : > { %v6481_v54 = vadd.f32 %v6480_v58, %v6439_v30 }
0x1ba8   : > { %v6482_v37 = vpop.f32.mrf.mxu1 }
0x1ba9   : > { %v6487_v7 = vmax.f32 %v6481_v54, 0.0  ;;  %v6483_v47 = vadd.f32 %v6482_v37, %v6443_v60 }
0x1baa   : > { %v6484_v57 = vpop.f32.mrf.mxu1 }
0x1bab   : > { %v6489_v5 = vmul.f32 %v6487_v7, %v6487_v7  ;;  %v6488_v44 = vmax.f32 %v6483_v47, 0.0 }
0x1bac   : > { %v6485_v12 = vpop.f32.mrf.mxu1 }
0x1bad   : > { %v6490_v16 = vmul.f32 %v6488_v44, %v6488_v44  ;;  %v6492_v35 = vsel %vm6491_vm10, %v6489_v5, 0.0 }
0x1baf   : > { %v6493_v32 = vsel %vm6491_vm10, %v6490_v16, 0.0 }
0x1bb0   : > { %v6494_v56 = vadd.f32 %v6493_v32, %v6492_v35 }
0x1bb2   : > { %6495 = vadd.xlane.f32.xlu0 %v6494_v56 }
0x1c3b   : > { %v6496_v13 = vpop.xlane.xlu0 %6495 }
0x1c3c   : > { %8274 = vrsqrt.f32 %v6496_v13  ;;  %vm6499_vm11 = vcmp.eq.f32.partialorder %v6496_v13, inf  ;;  %v6502_v26 = vand.u32 2147483648, %v6496_v13  ;;  %vm6501_vm12 = vcmp.eq.f32.partialorder %v6496_v13, 0.0 }
0x1c49   : > { %v8275_v45 = vpop.eup %8274 }
0x1c4a   : > { %v6498_v18 = vmul.f32 %v8275_v45, %v6496_v13 }
0x1c4c   : > { %v6500_v36 = vsel %vm6499_vm11, %v6496_v13, %v6498_v18 }
0x1c4d   : > { %v6503_v17 = vsel %vm6501_vm12, %v6502_v26, %v6500_v36 }
0x1c4e   : > { %v6504_v33 = vmax.f32 %v6503_v17, 1e-12 }
0x1c50   : > { %8276 = vrcp.f32 %v6504_v33 }
0x1c5d   : > { %v8277_v40 = vpop.eup %8276 }
0x1c5e   : > { %v6506_v3 = vmul.f32 %v8277_v40, %v6487_v7  ;;  %v6507_v20 = vmul.f32 %v8277_v40, %v6488_v44 }
0x1c60   : > { %v6510_v46 = vcombine.low %v6506_v3, %v6507_v20 }
0x1c62   : > { %v6517_v4 = vrot.slane %v6510_v46, %v11039_v41 }
0x1c64   : > { %v6524_v43 = vrot.slane %v6517_v4, %v11039_v41 }
0x1c66   : > { %6530 = vst.msk [vmem:[%s1094_s2] sm:$0x3] %vm6528_vm13, %v6524_v43 }
0x1c67 PF: > { %s11042_s4 = sld [smem:[#allocation45_spill]] }
0x1c6d   : > { %s47_s27 = sadd.s32 1, %s11042_s4  }
0x1c6e   : > { %p44_p11 = scmp.ge.s32.totalorder %s47_s27, 6  }
0x1c70   :  { %46 = sbr.rel (!%p44_p11) target bundleno = 24 (0x18), region = 247 }
0x1c75   :  { %6550 = vsyncpa [#allocation3], 1 }
0x1c76   :  { %6552 = vsyncpa [#allocation3 + $0x1], 1 }
0x1c77   :  { %6553 = vsyncpa [#allocation5], 1 }
0x1c78   :  { %6554 = vsyncpa [#allocation8], 1 }
0x1c79   :  { %6555 = vsyncpa [#allocation11], 1 }
0x1c7a   :  { %6556 = vsyncpa [#allocation14], 1 }
0x1c7b   :  { %6557 = vsyncpa [#allocation17], 1 }
0x1c7c   :  { %6558 = vsyncpa [#allocation20], 1 }
0x1c7d   :  { %6559 = vsyncpa [#allocation23], 1 }
0x1c7e   :  { %6560 = vsyncpa [#allocation26], 1 }
0x1c7f   :  { %6561 = vsyncpa [#allocation29], 1 }
0x1c80   :  { %6562 = vsyncpa [#allocation32], 1 }

</bundles_post_ra>
